<compile_context>
chip_gen: v7x
topology: tpu7x:2x2x1
jax: 0.10.0
libtpu: 0.0.40
codegen_flags: <defaults>
</compile_context>

<pallas_src>
import functools
import math

import jax
import jax.numpy as jnp
from jax import lax
from jax.experimental import pallas as pl
from jax.experimental.pallas import tpu as pltpu


def _round_up(x, m):
    return ((x + m - 1) // m) * m


def _pick_time_chunk(T, bp, d_in_max, hp, budget_bytes=16 * 1024 * 1024, cap=128):
    """Largest time-chunk (timesteps per grid step) that fits a VMEM budget.

    Per-timestep VMEM held inside one chunk:
      pre scratch (f32, 1 buf) + x chunk (bf16, 2 bufs) + y chunk (bf16, 2 bufs).
    Ragged tails are handled in-kernel, so tc need not divide T.
    """
    per_step = bp * (4 * hp * 4 + 2 * d_in_max * 2 + 2 * hp * 2)
    fit = max(1, budget_bytes // max(per_step, 1))
    return int(max(1, min(T, fit, cap)))


def _vmem_limit_bytes(tc, bp, d_in, hp, op, last):
    """Rough per-layer VMEM footprint -> compiler scoped-VMEM limit."""
    est = tc * bp * 4 * hp * 4            # pre scratch (f32)
    est += 2 * tc * bp * d_in * 2         # x chunk (bf16, double buffered)
    est += (d_in + hp) * 4 * hp * 2       # W_ih^T + W_hh^T (bf16, single buffered)
    est += 4 * hp * 4                     # bias (f32)
    est += 2 * bp * hp * 4                # h0 + c0 (f32)
    est += 2 * 2 * bp * hp * 4            # hT/cT outputs
    if last:
        est += hp * op * 2 + op * 4 + 2 * bp * op * 4
    else:
        est += 2 * tc * bp * hp * 2       # y chunk (bf16, double buffered)
    return int(min(128 * 1024 * 1024, max(2 * est, 32 * 1024 * 1024)))


# --------------------- per-layer recurrent kernels (time-chunked) ---------------------
def _lstm_chunk_kernel(x_ref, wih_ref, whh_ref, b_ref, h0_ref, c0_ref,
                       y_ref, hT_ref, cT_ref, pre_ref,
                       *, bp, hp, tc, T, unroll):
    """Intermediate LSTM layer. Grid = time chunks (sequential / 'arbitrary').

    x_ref   : (tc*bp, Din)  bf16 time-major inputs for this chunk, (t, b)-flattened
    wih_ref : (Din, 4*hp)   bf16 input->gate weights (gate order i, f, o, g), resident
    whh_ref : (hp, 4*hp)    bf16 hidden->gate weights, resident
    b_ref   : (1, 4*hp)     f32  b_ih + b_hh
    h0/c0   : (bp, hp)      f32  initial state
    y_ref   : (tc*bp, hp)   bf16 per-timestep hidden outputs for this chunk
    hT/cT   : (bp, hp)      f32  resident recurrent state == final state
    pre_ref : (tc*bp, 4*hp) f32  VMEM scratch: hoisted input projection
    """
    t = pl.program_id(0)
    n_chunks = pl.num_programs(0)
    ragged = (T % tc) != 0

    @pl.when(t == 0)
    def _():
        hT_ref[...] = h0_ref[...]
        cT_ref[...] = c0_ref[...]

    if ragged:
        # Deterministic tail: zero the last chunk's y block before partial writes.
        @pl.when(t == n_chunks - 1)
        def _():
            y_ref[...] = jnp.zeros_like(y_ref)

    # Hoisted input projection: one large-M bf16 GEMM per chunk (f32 accumulate);
    # only h @ W_hh stays on the sequential critical path.
    pre_ref[...] = (jnp.dot(x_ref[...], wih_ref[...],
                            preferred_element_type=jnp.float32)
                    + b_ref[...])

    steps = jnp.minimum(tc, T - t * tc) if ragged else tc

    def step(i, carry):
        h, c = carry
        row = pl.multiple_of(i * bp, bp)
        gates = pre_ref[pl.ds(row, bp), :] + jnp.dot(
            h.astype(jnp.bfloat16), whh_ref[...],
            preferred_element_type=jnp.float32)
        ifo = jax.nn.sigmoid(gates[:, :3 * hp])   # one sigmoid over (bp, 3*hp)
        g = jnp.tanh(gates[:, 3 * hp:])           # one tanh over (bp, hp)
        c_new = ifo[:, hp:2 * hp] * c + ifo[:, :hp] * g
        h_new = ifo[:, 2 * hp:] * jnp.tanh(c_new)
        if ragged:
            active = i < steps

            @pl.when(active)
            def _():
                y_ref[pl.ds(row, bp), :] = h_new.astype(y_ref.dtype)

            h_new = jnp.where(active, h_new, h)
            c_new = jnp.where(active, c_new, c)
        else:
            y_ref[pl.ds(row, bp), :] = h_new.astype(y_ref.dtype)
        return h_new, c_new

    h, c = lax.fori_loop(0, tc, step, (hT_ref[...], cT_ref[...]), unroll=unroll)
    hT_ref[...] = h
    cT_ref[...] = c


def _lstm_last_chunk_kernel(x_ref, wih_ref, whh_ref, b_ref, h0_ref, c0_ref,
                            fcw_ref, fcb_ref,
                            out_ref, hT_ref, cT_ref, pre_ref,
                            *, bp, hp, tc, T, unroll):
    """Last LSTM layer: no y writeback; final Linear fused on the last chunk."""
    t = pl.program_id(0)
    ragged = (T % tc) != 0

    @pl.when(t == 0)
    def _():
        hT_ref[...] = h0_ref[...]
        cT_ref[...] = c0_ref[...]
        out_ref[...] = jnp.zeros_like(out_ref)   # insurance vs. revisit writeback

    pre_ref[...] = (jnp.dot(x_ref[...], wih_ref[...],
                            preferred_element_type=jnp.float32)
                    + b_ref[...])

    steps = jnp.minimum(tc, T - t * tc) if ragged else tc

    def step(i, carry):
        h, c = carry
        row = pl.multiple_of(i * bp, bp)
        gates = pre_ref[pl.ds(row, bp), :] + jnp.dot(
            h.astype(jnp.bfloat16), whh_ref[...],
            preferred_element_type=jnp.float32)
        ifo = jax.nn.sigmoid(gates[:, :3 * hp])
        g = jnp.tanh(gates[:, 3 * hp:])
        c_new = ifo[:, hp:2 * hp] * c + ifo[:, :hp] * g
        h_new = ifo[:, 2 * hp:] * jnp.tanh(c_new)
        if ragged:
            active = i < steps
            h_new = jnp.where(active, h_new, h)
            c_new = jnp.where(active, c_new, c)
        return h_new, c_new

    h, c = lax.fori_loop(0, tc, step, (hT_ref[...], cT_ref[...]), unroll=unroll)
    hT_ref[...] = h
    cT_ref[...] = c

    @pl.when(t == pl.num_programs(0) - 1)
    def _():
        out_ref[...] = (jnp.dot(h.astype(jnp.bfloat16), fcw_ref[...],
                                preferred_element_type=jnp.float32)
                        + fcb_ref[...])


# ----------------------------- per-layer pallas_call builder -----------------------------
def _const_spec(shape, single_buffer):
    """BlockSpec for a resident (constant block index) operand."""
    idx = lambda t: (0,) * len(shape)
    if single_buffer:
        # Constant index_map -> double buffering is pure VMEM waste.
        return pl.BlockSpec(shape, idx, pipeline_mode=pl.Buffered(1))
    return pl.BlockSpec(shape, idx)


def _build_lstm_layer_call(x2d, w_ih_t, w_hh_t, bias, h0, c0, *, T, tc,
                           fc_w_t, fc_b, single_buffer):
    m, d_in = x2d.shape
    bp = h0.shape[0]
    hp = h0.shape[-1]
    n_chunks = pl.cdiv(T, tc)
    assert m == n_chunks * tc * bp
    grid = (n_chunks,)
    unroll = True if tc <= 8 else 8            # partial unroll for big chunks
    last = fc_w_t is not None
    op = fc_w_t.shape[-1] if last else 0

    in_specs = [
        pl.BlockSpec((tc * bp, d_in), lambda t: (t, 0)),      # x chunk (pipelined)
        _const_spec((d_in, 4 * hp), single_buffer),           # W_ih^T (bf16, resident)
        _const_spec((hp, 4 * hp), single_buffer),             # W_hh^T (bf16, resident)
        _const_spec((1, 4 * hp), single_buffer),              # bias (f32)
        _const_spec((bp, hp), single_buffer),                 # h0
        _const_spec((bp, hp), single_buffer),                 # c0
    ]
    scratch = [pltpu.VMEM((tc * bp, 4 * hp), jnp.float32)]    # hoisted preactivations
    cparams = pltpu.CompilerParams(
        dimension_semantics=("arbitrary",),
        vmem_limit_bytes=_vmem_limit_bytes(tc, bp, d_in, hp, op, last),
    )

    if not last:
        kernel = functools.partial(_lstm_chunk_kernel, bp=bp, hp=hp, tc=tc, T=T,
                                   unroll=unroll)
        return pl.pallas_call(
            kernel,
            out_shape=(
                jax.ShapeDtypeStruct((n_chunks * tc * bp, hp), jnp.bfloat16),  # y
                jax.ShapeDtypeStruct((bp, hp), jnp.float32),                   # h_T
                jax.ShapeDtypeStruct((bp, hp), jnp.float32),                   # c_T
            ),
            grid_spec=pltpu.PrefetchScalarGridSpec(
                num_scalar_prefetch=0,
                grid=grid,
                in_specs=in_specs,
                out_specs=[
                    pl.BlockSpec((tc * bp, hp), lambda t: (t, 0)),
                    pl.BlockSpec((bp, hp), lambda t: (0, 0)),
                    pl.BlockSpec((bp, hp), lambda t: (0, 0)),
                ],
                scratch_shapes=scratch,
            ),
            compiler_params=cparams,
        )(x2d, w_ih_t, w_hh_t, bias, h0, c0)

    kernel = functools.partial(_lstm_last_chunk_kernel, bp=bp, hp=hp, tc=tc, T=T,
                               unroll=unroll)
    return pl.pallas_call(
        kernel,
        out_shape=(
            jax.ShapeDtypeStruct((bp, op), jnp.float32),       # fused fc output
            jax.ShapeDtypeStruct((bp, hp), jnp.float32),       # h_T
            jax.ShapeDtypeStruct((bp, hp), jnp.float32),       # c_T
        ),
        grid_spec=pltpu.PrefetchScalarGridSpec(
            num_scalar_prefetch=0,
            grid=grid,
            in_specs=in_specs + [
                _const_spec((hp, op), single_buffer),          # fc W^T (bf16, resident)
                _const_spec((1, op), single_buffer),           # fc bias (f32)
            ],
            out_specs=[
                pl.BlockSpec((bp, op), lambda t: (0, 0)),
                pl.BlockSpec((bp, hp), lambda t: (0, 0)),
                pl.BlockSpec((bp, hp), lambda t: (0, 0)),
            ],
            scratch_shapes=scratch,
        ),
        compiler_params=cparams,
    )(x2d, w_ih_t, w_hh_t, bias, h0, c0, fc_w_t, fc_b)


_SINGLE_BUFFER_OK = [True]   # cached: does this jax build accept pl.Buffered(1)?


def _run_lstm_layer(x2d, w_ih_t, w_hh_t, bias, h0, c0, *, T, tc,
                    fc_w_t=None, fc_b=None):
    if _SINGLE_BUFFER_OK[0]:
        try:
            return _build_lstm_layer_call(x2d, w_ih_t, w_hh_t, bias, h0, c0,
                                          T=T, tc=tc, fc_w_t=fc_w_t, fc_b=fc_b,
                                          single_buffer=True)
        except Exception:
            # pipeline_mode=pl.Buffered(1) not supported -> fall back to defaults.
            _SINGLE_BUFFER_OK[0] = False
    return _build_lstm_layer_call(x2d, w_ih_t, w_hh_t, bias, h0, c0,
                                  T=T, tc=tc, fc_w_t=fc_w_t, fc_b=fc_b,
                                  single_buffer=False)


# -------------------------------- weight packing helpers --------------------------------
_GATE_PERM = (0, 1, 3, 2)   # PyTorch (i, f, g, o) -> kernel (i, f, o, g)


def _pack_gates(w, H, hp, d, dp):
    """w: (4H, d) PyTorch layout -> (dp, 4*hp) bf16, transposed, zero-padded, (i,f,o,g)."""
    out = jnp.zeros((dp, 4 * hp), jnp.float32)
    for new_g, old_g in enumerate(_GATE_PERM):
        blk = w[old_g * H:(old_g + 1) * H, :].T                 # (d, H)
        out = out.at[:d, new_g * hp:new_g * hp + H].set(blk)
    return out.astype(jnp.bfloat16)


def _pack_bias(b_ih, b_hh, H, hp):
    b = b_ih + b_hh
    out = jnp.zeros((1, 4 * hp), jnp.float32)
    for new_g, old_g in enumerate(_GATE_PERM):
        out = out.at[0, new_g * hp:new_g * hp + H].set(b[old_g * H:(old_g + 1) * H])
    return out


# ------------------------------------ Module wrapper ------------------------------------
class MemoryLSTMPallas:
    def __init__(self, input_size, hidden_size, num_layers, output_size, key):
        self.input_size = input_size
        self.hidden_size = hidden_size
        self.num_layers = num_layers
        self.output_size = output_size

        H = hidden_size
        self.hp = _round_up(H, 128)
        self.op = _round_up(output_size, 128)

        k = 1.0 / math.sqrt(H)
        keys = jax.random.split(key, 4 * num_layers + 2)
        self.layers = []
        for layer in range(num_layers):
            # Layer 0 keeps the true input_size as K (full-extent last block dim);
            # deeper layers consume the padded hp-wide y activations.
            D = input_size if layer == 0 else hidden_size
            dp = input_size if layer == 0 else self.hp
            k0, k1, k2, k3 = keys[4 * layer:4 * layer + 4]
            w_ih = jax.random.uniform(k0, (4 * H, D), jnp.float32, -k, k)
            w_hh = jax.random.uniform(k1, (4 * H, H), jnp.float32, -k, k)
            b_ih = jax.random.uniform(k2, (4 * H,), jnp.float32, -k, k)
            b_hh = jax.random.uniform(k3, (4 * H,), jnp.float32, -k, k)
            self.layers.append(dict(
                # raw params (for the pure-JAX reference)
                w_ih=w_ih, w_hh=w_hh, b_ih=b_ih, b_hh=b_hh,
                # packed / padded params for the kernel (bf16 MXU operands)
                w_ih_t=_pack_gates(w_ih, H, self.hp, D, dp),     # (dp, 4hp) bf16
                w_hh_t=_pack_gates(w_hh, H, self.hp, H, self.hp),
                bias=_pack_bias(b_ih, b_hh, H, self.hp),         # (1, 4hp) f32
            ))
        kw, kb = keys[-2], keys[-1]
        self.fc_w = jax.random.uniform(kw, (output_size, H), jnp.float32, -k, k)
        self.fc_b = jax.random.uniform(kb, (output_size,), jnp.float32, -k, k)
        self.fc_w_t = (jnp.zeros((self.hp, self.op), jnp.float32)
                       .at[:H, :output_size].set(self.fc_w.T)).astype(jnp.bfloat16)
        self.fc_b_p = (jnp.zeros((1, self.op), jnp.float32)
                       .at[0, :output_size].set(self.fc_b))

    def init_hidden(self, batch_size):
        z = jnp.zeros((self.num_layers, batch_size, self.hidden_size), jnp.float32)
        return (z, z)

    def __call__(self, x, hidden):
        """x: (B, T, input_size), batch-first. hidden: (h0, c0) each (num_layers, B, H)."""
        h0_all, c0_all = hidden
        B, T, D = x.shape
        H, hp = self.hidden_size, self.hp
        # bp multiple of 16: keeps bf16 chunk blocks sublane-pack aligned and feeds
        # more MXU rows per recurrent step (the real lever at small batch).
        bp = _round_up(B, 16)
        tc = _pick_time_chunk(T, bp, max(D, hp), hp)
        n_chunks = pl.cdiv(T, tc)
        Tp = n_chunks * tc

        # Time-major bf16 input, single padded materialization, flattened (t, b) rows.
        x_tb = jnp.transpose(x.astype(jnp.bfloat16), (1, 0, 2))         # (T, B, D)
        if (Tp, bp) != (T, B):
            x_tb = (jnp.zeros((Tp, bp, D), jnp.bfloat16)
                    .at[:T, :B, :].set(x_tb))
        cur = x_tb.reshape(Tp * bp, D)

        def pad_state(s):                                               # (B,H) -> (bp,hp)
            return jnp.zeros((bp, hp), jnp.float32).at[:B, :H].set(s.astype(jnp.float32))

        h_finals, c_finals = [], []
        out = None
        for layer, p in enumerate(self.layers):
            last = layer == self.num_layers - 1
            h0 = pad_state(h0_all[layer])
            c0 = pad_state(c0_all[layer])
            if not last:
                y, hT, cT = _run_lstm_layer(cur, p["w_ih_t"], p["w_hh_t"], p["bias"],
                                            h0, c0, T=T, tc=tc)
                cur = y                                                 # (Tp*bp, hp) bf16
            else:
                out_p, hT, cT = _run_lstm_layer(cur, p["w_ih_t"], p["w_hh_t"], p["bias"],
                                                h0, c0, T=T, tc=tc,
                                                fc_w_t=self.fc_w_t, fc_b=self.fc_b_p)
                out = out_p[:B, :self.output_size]
            h_finals.append(hT[:B, :H])
            c_finals.append(cT[:B, :H])

        return out, (jnp.stack(h_finals, 0), jnp.stack(c_finals, 0))

    # Pure-JAX reference for validation (PyTorch math, f32, gate order i,f,g,o).
    def reference(self, x, hidden):
        h0_all, c0_all = hidden
        B, T, _ = x.shape
        H = self.hidden_size
        cur = x.astype(jnp.float32)
        h_finals, c_finals = [], []
        for layer, p in enumerate(self.layers):
            h = h0_all[layer]
            c = c0_all[layer]
            ys = []
            for t in range(T):
                g = (cur[:, t, :] @ p["w_ih"].T + p["b_ih"]
                     + h @ p["w_hh"].T + p["b_hh"])
                i_g = jax.nn.sigmoid(g[:, 0 * H:1 * H])
                f_g = jax.nn.sigmoid(g[:, 1 * H:2 * H])
                g_g = jnp.tanh(g[:, 2 * H:3 * H])
                o_g = jax.nn.sigmoid(g[:, 3 * H:4 * H])
                c = f_g * c + i_g * g_g
                h = o_g * jnp.tanh(c)
                ys.append(h)
            cur = jnp.stack(ys, axis=1)
            h_finals.append(h)
            c_finals.append(c)
        out = cur[:, -1, :] @ self.fc_w.T + self.fc_b
        return out, (jnp.stack(h_finals, 0), jnp.stack(c_finals, 0))


if __name__ == "__main__":
    INPUT_SIZE, HIDDEN_SIZE, NUM_LAYERS, OUTPUT_SIZE = 16, 32, 2, 8
    BATCH, SEQ = 2, 8

    key = jax.random.PRNGKey(0)
    k_param, k_x = jax.random.split(key)

    model = MemoryLSTMPallas(INPUT_SIZE, HIDDEN_SIZE, NUM_LAYERS, OUTPUT_SIZE, k_param)

    x = jax.random.normal(k_x, (BATCH, SEQ, INPUT_SIZE), jnp.float32)
    hidden = model.init_hidden(BATCH)

    out, (h_n, c_n) = model(x, hidden)
    jax.block_until_ready((out, h_n, c_n))

    # Validate against a pure-JAX f32 reference of the same math (bf16 MXU operands
    # in the kernel -> tolerance loosened accordingly).
    ref_out, (ref_h, ref_c) = model.reference(x, hidden)
    assert out.shape == (BATCH, OUTPUT_SIZE)
    assert h_n.shape == (NUM_LAYERS, BATCH, HIDDEN_SIZE)
    assert c_n.shape == (NUM_LAYERS, BATCH, HIDDEN_SIZE)
    assert jnp.allclose(out, ref_out, atol=3e-2, rtol=3e-2)
    assert jnp.allclose(h_n, ref_h, atol=3e-2, rtol=3e-2)
    assert jnp.allclose(c_n, ref_c, atol=3e-2, rtol=3e-2)

    print("KERNEL_OK")
</pallas_src>

<mosaic_0001>
module attributes {stable_mosaic.version = 11 : i64} {
  func.func @_lstm_chunk_kernel(%arg0: i32, %arg1: memref<128x16xbf16, #tpu.memory_space<vmem>>, %arg2: memref<16x512xbf16, #tpu.memory_space<vmem>>, %arg3: memref<128x512xbf16, #tpu.memory_space<vmem>>, %arg4: memref<1x512xf32, #tpu.memory_space<vmem>>, %arg5: memref<16x128xf32, #tpu.memory_space<vmem>>, %arg6: memref<16x128xf32, #tpu.memory_space<vmem>>, %arg7: memref<128x128xbf16, #tpu.memory_space<vmem>>, %arg8: memref<16x128xf32, #tpu.memory_space<vmem>>, %arg9: memref<16x128xf32, #tpu.memory_space<vmem>>, %arg10: memref<128x512xf32, #tpu.memory_space<vmem>>) attributes {dimension_semantics = [#tpu.dimension_semantics<arbitrary>], iteration_bounds = array<i64: 1>, scalar_prefetch = 0 : i64, scratch_operands = 1 : i64, tpu.core_type = #tpu.core_type<tc>, window_params = [{transform_indices = @transform_0, window_bounds = array<i64: 128, 16>}, {pipeline_mode = #tpu.pipeline_mode<synchronous>, transform_indices = @transform_1, window_bounds = array<i64: 16, 512>}, {pipeline_mode = #tpu.pipeline_mode<synchronous>, transform_indices = @transform_2, window_bounds = array<i64: 128, 512>}, {pipeline_mode = #tpu.pipeline_mode<synchronous>, transform_indices = @transform_3, window_bounds = array<i64: 1, 512>}, {pipeline_mode = #tpu.pipeline_mode<synchronous>, transform_indices = @transform_4, window_bounds = array<i64: 16, 128>}, {pipeline_mode = #tpu.pipeline_mode<synchronous>, transform_indices = @transform_5, window_bounds = array<i64: 16, 128>}, {transform_indices = @transform_6, window_bounds = array<i64: 128, 128>}, {pipeline_mode = #tpu.pipeline_mode<synchronous>, transform_indices = @transform_7, window_bounds = array<i64: 16, 128>}, {pipeline_mode = #tpu.pipeline_mode<synchronous>, transform_indices = @transform_8, window_bounds = array<i64: 16, 128>}]} {
    %c0_i32 = arith.constant 0 : i32
    %0 = arith.cmpi eq, %arg0, %c0_i32 : i32
    %1 = arith.extui %0 : i1 to i32
    %c0_i32_0 = arith.constant 0 : i32
    %2 = arith.cmpi ne, %1, %c0_i32_0 : i32
    scf.if %2 {
      %c0_72 = arith.constant 0 : index
      %c0_73 = arith.constant 0 : index
      %230 = vector.load %arg5[%c0_72, %c0_73] : memref<16x128xf32, #tpu.memory_space<vmem>>, vector<16x128xf32>
      %c0_74 = arith.constant 0 : index
      %c0_75 = arith.constant 0 : index
      %231 = vector.load %arg8[%c0_74, %c0_75] : memref<16x128xf32, #tpu.memory_space<vmem>>, vector<16x128xf32>
      tpu.vector_store %arg8[%c0_74, %c0_75], %230 {strides = array<i32>} : memref<16x128xf32, #tpu.memory_space<vmem>>, vector<16x128xf32>,
      %c0_76 = arith.constant 0 : index
      %c0_77 = arith.constant 0 : index
      %232 = vector.load %arg6[%c0_76, %c0_77] : memref<16x128xf32, #tpu.memory_space<vmem>>, vector<16x128xf32>
      %c0_78 = arith.constant 0 : index
      %c0_79 = arith.constant 0 : index
      %233 = vector.load %arg9[%c0_78, %c0_79] : memref<16x128xf32, #tpu.memory_space<vmem>>, vector<16x128xf32>
      tpu.vector_store %arg9[%c0_78, %c0_79], %232 {strides = array<i32>} : memref<16x128xf32, #tpu.memory_space<vmem>>, vector<16x128xf32>,
    } else {
    }
    %c0 = arith.constant 0 : index
    %c0_1 = arith.constant 0 : index
    %3 = vector.load %arg1[%c0, %c0_1] : memref<128x16xbf16, #tpu.memory_space<vmem>>, vector<128x16xbf16>
    %c0_2 = arith.constant 0 : index
    %c0_3 = arith.constant 0 : index
    %4 = vector.load %arg2[%c0_2, %c0_3] : memref<16x512xbf16, #tpu.memory_space<vmem>>, vector<16x512xbf16>
    %cst = arith.constant dense<0.000000e+00> : vector<128x512xf32>
    %5 = tpu.matmul %3, %4, %cst {dimension_numbers = #tpu.dot_dimension_numbers<[1], [0], [0], [1], [0, 0, 1, 1], [], []>} : vector<128x16xbf16>, vector<16x512xbf16>, vector<128x512xf32> -> vector<128x512xf32>
    %c0_4 = arith.constant 0 : index
    %c0_5 = arith.constant 0 : index
    %6 = vector.load %arg4[%c0_4, %c0_5] : memref<1x512xf32, #tpu.memory_space<vmem>>, vector<1x512xf32>
    %7 = vector.broadcast %6 : vector<1x512xf32> to vector<128x512xf32>
    %8 = arith.addf %5, %7 : vector<128x512xf32>
    %c0_6 = arith.constant 0 : index
    %c0_7 = arith.constant 0 : index
    %9 = vector.load %arg10[%c0_6, %c0_7] : memref<128x512xf32, #tpu.memory_space<vmem>>, vector<128x512xf32>
    tpu.vector_store %arg10[%c0_6, %c0_7], %8 {strides = array<i32>} : memref<128x512xf32, #tpu.memory_space<vmem>>, vector<128x512xf32>,
    %c0_8 = arith.constant 0 : index
    %c0_9 = arith.constant 0 : index
    %10 = vector.load %arg8[%c0_8, %c0_9] : memref<16x128xf32, #tpu.memory_space<vmem>>, vector<16x128xf32>
    %c0_10 = arith.constant 0 : index
    %c0_11 = arith.constant 0 : index
    %11 = vector.load %arg9[%c0_10, %c0_11] : memref<16x128xf32, #tpu.memory_space<vmem>>, vector<16x128xf32>
    %c0_i32_12 = arith.constant 0 : i32
    %c16_i32 = arith.constant 16 : i32
    %12 = arith.muli %c0_i32_12, %c16_i32 : i32
    %13 = tpu.assume_multiple %12, 16 : i32
    %14 = arith.index_cast %13 : i32 to index
    %c0_13 = arith.constant 0 : index
    %15 = vector.load %arg10[%14, %c0_13] : memref<128x512xf32, #tpu.memory_space<vmem>>, vector<16x512xf32>
    %16 = arith.truncf %10 : vector<16x128xf32> to vector<16x128xbf16>
    %c0_14 = arith.constant 0 : index
    %c0_15 = arith.constant 0 : index
    %17 = vector.load %arg3[%c0_14, %c0_15] : memref<128x512xbf16, #tpu.memory_space<vmem>>, vector<128x512xbf16>
    %cst_16 = arith.constant dense<0.000000e+00> : vector<16x512xf32>
    %18 = tpu.matmul %16, %17, %cst_16 {dimension_numbers = #tpu.dot_dimension_numbers<[1], [0], [0], [1], [0, 0, 1, 1], [], []>} : vector<16x128xbf16>, vector<128x512xbf16>, vector<16x512xf32> -> vector<16x512xf32>
    %19 = arith.addf %15, %18 : vector<16x512xf32>
    %20 = vector.extract_strided_slice %19 {offsets = [0, 0], sizes = [16, 384], strides = [1, 1]} : vector<16x512xf32> to vector<16x384xf32>
    %21 = arith.negf %20 : vector<16x384xf32>
    %22 = math.exp %21 : vector<16x384xf32>
    %cst_17 = arith.constant 1.000000e+00 : f32
    %23 = vector.broadcast %cst_17 : f32 to vector<16x384xf32>
    %24 = arith.addf %23, %22 : vector<16x384xf32>
    %25 = arith.divf %23, %24 : vector<16x384xf32>
    %26 = vector.extract_strided_slice %19 {offsets = [0, 384], sizes = [16, 128], strides = [1, 1]} : vector<16x512xf32> to vector<16x128xf32>
    %27 = math.tanh %26 : vector<16x128xf32>
    %28 = vector.extract_strided_slice %25 {offsets = [0, 128], sizes = [16, 128], strides = [1, 1]} : vector<16x384xf32> to vector<16x128xf32>
    %29 = arith.mulf %28, %11 : vector<16x128xf32>
    %30 = vector.extract_strided_slice %25 {offsets = [0, 0], sizes = [16, 128], strides = [1, 1]} : vector<16x384xf32> to vector<16x128xf32>
    %31 = arith.mulf %30, %27 : vector<16x128xf32>
    %32 = arith.addf %29, %31 : vector<16x128xf32>
    %33 = vector.extract_strided_slice %25 {offsets = [0, 256], sizes = [16, 128], strides = [1, 1]} : vector<16x384xf32> to vector<16x128xf32>
    %34 = math.tanh %32 : vector<16x128xf32>
    %35 = arith.mulf %33, %34 : vector<16x128xf32>
    %36 = arith.truncf %35 : vector<16x128xf32> to vector<16x128xbf16>
    %37 = arith.index_cast %13 : i32 to index
    %c0_18 = arith.constant 0 : index
    %38 = vector.load %arg7[%37, %c0_18] : memref<128x128xbf16, #tpu.memory_space<vmem>>, vector<16x128xbf16>
    tpu.vector_store %arg7[%37, %c0_18], %36 {strides = array<i32>} : memref<128x128xbf16, #tpu.memory_space<vmem>>, vector<16x128xbf16>,
    %c1_i32 = arith.constant 1 : i32
    %c16_i32_19 = arith.constant 16 : i32
    %39 = arith.muli %c1_i32, %c16_i32_19 : i32
    %40 = tpu.assume_multiple %39, 16 : i32
    %41 = arith.index_cast %40 : i32 to index
    %c0_20 = arith.constant 0 : index
    %42 = vector.load %arg10[%41, %c0_20] : memref<128x512xf32, #tpu.memory_space<vmem>>, vector<16x512xf32>
    %43 = arith.truncf %35 : vector<16x128xf32> to vector<16x128xbf16>
    %c0_21 = arith.constant 0 : index
    %c0_22 = arith.constant 0 : index
    %44 = vector.load %arg3[%c0_21, %c0_22] : memref<128x512xbf16, #tpu.memory_space<vmem>>, vector<128x512xbf16>
    %cst_23 = arith.constant dense<0.000000e+00> : vector<16x512xf32>
    %45 = tpu.matmul %43, %44, %cst_23 {dimension_numbers = #tpu.dot_dimension_numbers<[1], [0], [0], [1], [0, 0, 1, 1], [], []>} : vector<16x128xbf16>, vector<128x512xbf16>, vector<16x512xf32> -> vector<16x512xf32>
    %46 = arith.addf %42, %45 : vector<16x512xf32>
    %47 = vector.extract_strided_slice %46 {offsets = [0, 0], sizes = [16, 384], strides = [1, 1]} : vector<16x512xf32> to vector<16x384xf32>
    %48 = arith.negf %47 : vector<16x384xf32>
    %49 = math.exp %48 : vector<16x384xf32>
    %cst_24 = arith.constant 1.000000e+00 : f32
    %50 = vector.broadcast %cst_24 : f32 to vector<16x384xf32>
    %51 = arith.addf %50, %49 : vector<16x384xf32>
    %52 = arith.divf %50, %51 : vector<16x384xf32>
    %53 = vector.extract_strided_slice %46 {offsets = [0, 384], sizes = [16, 128], strides = [1, 1]} : vector<16x512xf32> to vector<16x128xf32>
    %54 = math.tanh %53 : vector<16x128xf32>
    %55 = vector.extract_strided_slice %52 {offsets = [0, 128], sizes = [16, 128], strides = [1, 1]} : vector<16x384xf32> to vector<16x128xf32>
    %56 = arith.mulf %55, %32 : vector<16x128xf32>
    %57 = vector.extract_strided_slice %52 {offsets = [0, 0], sizes = [16, 128], strides = [1, 1]} : vector<16x384xf32> to vector<16x128xf32>
    %58 = arith.mulf %57, %54 : vector<16x128xf32>
    %59 = arith.addf %56, %58 : vector<16x128xf32>
    %60 = vector.extract_strided_slice %52 {offsets = [0, 256], sizes = [16, 128], strides = [1, 1]} : vector<16x384xf32> to vector<16x128xf32>
    %61 = math.tanh %59 : vector<16x128xf32>
    %62 = arith.mulf %60, %61 : vector<16x128xf32>
    %63 = arith.truncf %62 : vector<16x128xf32> to vector<16x128xbf16>
    %64 = arith.index_cast %40 : i32 to index
    %c0_25 = arith.constant 0 : index
    %65 = vector.load %arg7[%64, %c0_25] : memref<128x128xbf16, #tpu.memory_space<vmem>>, vector<16x128xbf16>
    tpu.vector_store %arg7[%64, %c0_25], %63 {strides = array<i32>} : memref<128x128xbf16, #tpu.memory_space<vmem>>, vector<16x128xbf16>,
    %c2_i32 = arith.constant 2 : i32
    %c16_i32_26 = arith.constant 16 : i32
    %66 = arith.muli %c2_i32, %c16_i32_26 : i32
    %67 = tpu.assume_multiple %66, 16 : i32
    %68 = arith.index_cast %67 : i32 to index
    %c0_27 = arith.constant 0 : index
    %69 = vector.load %arg10[%68, %c0_27] : memref<128x512xf32, #tpu.memory_space<vmem>>, vector<16x512xf32>
    %70 = arith.truncf %62 : vector<16x128xf32> to vector<16x128xbf16>
    %c0_28 = arith.constant 0 : index
    %c0_29 = arith.constant 0 : index
    %71 = vector.load %arg3[%c0_28, %c0_29] : memref<128x512xbf16, #tpu.memory_space<vmem>>, vector<128x512xbf16>
    %cst_30 = arith.constant dense<0.000000e+00> : vector<16x512xf32>
    %72 = tpu.matmul %70, %71, %cst_30 {dimension_numbers = #tpu.dot_dimension_numbers<[1], [0], [0], [1], [0, 0, 1, 1], [], []>} : vector<16x128xbf16>, vector<128x512xbf16>, vector<16x512xf32> -> vector<16x512xf32>
    %73 = arith.addf %69, %72 : vector<16x512xf32>
    %74 = vector.extract_strided_slice %73 {offsets = [0, 0], sizes = [16, 384], strides = [1, 1]} : vector<16x512xf32> to vector<16x384xf32>
    %75 = arith.negf %74 : vector<16x384xf32>
    %76 = math.exp %75 : vector<16x384xf32>
    %cst_31 = arith.constant 1.000000e+00 : f32
    %77 = vector.broadcast %cst_31 : f32 to vector<16x384xf32>
    %78 = arith.addf %77, %76 : vector<16x384xf32>
    %79 = arith.divf %77, %78 : vector<16x384xf32>
    %80 = vector.extract_strided_slice %73 {offsets = [0, 384], sizes = [16, 128], strides = [1, 1]} : vector<16x512xf32> to vector<16x128xf32>
    %81 = math.tanh %80 : vector<16x128xf32>
    %82 = vector.extract_strided_slice %79 {offsets = [0, 128], sizes = [16, 128], strides = [1, 1]} : vector<16x384xf32> to vector<16x128xf32>
    %83 = arith.mulf %82, %59 : vector<16x128xf32>
    %84 = vector.extract_strided_slice %79 {offsets = [0, 0], sizes = [16, 128], strides = [1, 1]} : vector<16x384xf32> to vector<16x128xf32>
    %85 = arith.mulf %84, %81 : vector<16x128xf32>
    %86 = arith.addf %83, %85 : vector<16x128xf32>
    %87 = vector.extract_strided_slice %79 {offsets = [0, 256], sizes = [16, 128], strides = [1, 1]} : vector<16x384xf32> to vector<16x128xf32>
    %88 = math.tanh %86 : vector<16x128xf32>
    %89 = arith.mulf %87, %88 : vector<16x128xf32>
    %90 = arith.truncf %89 : vector<16x128xf32> to vector<16x128xbf16>
    %91 = arith.index_cast %67 : i32 to index
    %c0_32 = arith.constant 0 : index
    %92 = vector.load %arg7[%91, %c0_32] : memref<128x128xbf16, #tpu.memory_space<vmem>>, vector<16x128xbf16>
    tpu.vector_store %arg7[%91, %c0_32], %90 {strides = array<i32>} : memref<128x128xbf16, #tpu.memory_space<vmem>>, vector<16x128xbf16>,
    %c3_i32 = arith.constant 3 : i32
    %c16_i32_33 = arith.constant 16 : i32
    %93 = arith.muli %c3_i32, %c16_i32_33 : i32
    %94 = tpu.assume_multiple %93, 16 : i32
    %95 = arith.index_cast %94 : i32 to index
    %c0_34 = arith.constant 0 : index
    %96 = vector.load %arg10[%95, %c0_34] : memref<128x512xf32, #tpu.memory_space<vmem>>, vector<16x512xf32>
    %97 = arith.truncf %89 : vector<16x128xf32> to vector<16x128xbf16>
    %c0_35 = arith.constant 0 : index
    %c0_36 = arith.constant 0 : index
    %98 = vector.load %arg3[%c0_35, %c0_36] : memref<128x512xbf16, #tpu.memory_space<vmem>>, vector<128x512xbf16>
    %cst_37 = arith.constant dense<0.000000e+00> : vector<16x512xf32>
    %99 = tpu.matmul %97, %98, %cst_37 {dimension_numbers = #tpu.dot_dimension_numbers<[1], [0], [0], [1], [0, 0, 1, 1], [], []>} : vector<16x128xbf16>, vector<128x512xbf16>, vector<16x512xf32> -> vector<16x512xf32>
    %100 = arith.addf %96, %99 : vector<16x512xf32>
    %101 = vector.extract_strided_slice %100 {offsets = [0, 0], sizes = [16, 384], strides = [1, 1]} : vector<16x512xf32> to vector<16x384xf32>
    %102 = arith.negf %101 : vector<16x384xf32>
    %103 = math.exp %102 : vector<16x384xf32>
    %cst_38 = arith.constant 1.000000e+00 : f32
    %104 = vector.broadcast %cst_38 : f32 to vector<16x384xf32>
    %105 = arith.addf %104, %103 : vector<16x384xf32>
    %106 = arith.divf %104, %105 : vector<16x384xf32>
    %107 = vector.extract_strided_slice %100 {offsets = [0, 384], sizes = [16, 128], strides = [1, 1]} : vector<16x512xf32> to vector<16x128xf32>
    %108 = math.tanh %107 : vector<16x128xf32>
    %109 = vector.extract_strided_slice %106 {offsets = [0, 128], sizes = [16, 128], strides = [1, 1]} : vector<16x384xf32> to vector<16x128xf32>
    %110 = arith.mulf %109, %86 : vector<16x128xf32>
    %111 = vector.extract_strided_slice %106 {offsets = [0, 0], sizes = [16, 128], strides = [1, 1]} : vector<16x384xf32> to vector<16x128xf32>
    %112 = arith.mulf %111, %108 : vector<16x128xf32>
    %113 = arith.addf %110, %112 : vector<16x128xf32>
    %114 = vector.extract_strided_slice %106 {offsets = [0, 256], sizes = [16, 128], strides = [1, 1]} : vector<16x384xf32> to vector<16x128xf32>
    %115 = math.tanh %113 : vector<16x128xf32>
    %116 = arith.mulf %114, %115 : vector<16x128xf32>
    %117 = arith.truncf %116 : vector<16x128xf32> to vector<16x128xbf16>
    %118 = arith.index_cast %94 : i32 to index
    %c0_39 = arith.constant 0 : index
    %119 = vector.load %arg7[%118, %c0_39] : memref<128x128xbf16, #tpu.memory_space<vmem>>, vector<16x128xbf16>
    tpu.vector_store %arg7[%118, %c0_39], %117 {strides = array<i32>} : memref<128x128xbf16, #tpu.memory_space<vmem>>, vector<16x128xbf16>,
    %c4_i32 = arith.constant 4 : i32
    %c16_i32_40 = arith.constant 16 : i32
    %120 = arith.muli %c4_i32, %c16_i32_40 : i32
    %121 = tpu.assume_multiple %120, 16 : i32
    %122 = arith.index_cast %121 : i32 to index
    %c0_41 = arith.constant 0 : index
    %123 = vector.load %arg10[%122, %c0_41] : memref<128x512xf32, #tpu.memory_space<vmem>>, vector<16x512xf32>
    %124 = arith.truncf %116 : vector<16x128xf32> to vector<16x128xbf16>
    %c0_42 = arith.constant 0 : index
    %c0_43 = arith.constant 0 : index
    %125 = vector.load %arg3[%c0_42, %c0_43] : memref<128x512xbf16, #tpu.memory_space<vmem>>, vector<128x512xbf16>
    %cst_44 = arith.constant dense<0.000000e+00> : vector<16x512xf32>
    %126 = tpu.matmul %124, %125, %cst_44 {dimension_numbers = #tpu.dot_dimension_numbers<[1], [0], [0], [1], [0, 0, 1, 1], [], []>} : vector<16x128xbf16>, vector<128x512xbf16>, vector<16x512xf32> -> vector<16x512xf32>
    %127 = arith.addf %123, %126 : vector<16x512xf32>
    %128 = vector.extract_strided_slice %127 {offsets = [0, 0], sizes = [16, 384], strides = [1, 1]} : vector<16x512xf32> to vector<16x384xf32>
    %129 = arith.negf %128 : vector<16x384xf32>
    %130 = math.exp %129 : vector<16x384xf32>
    %cst_45 = arith.constant 1.000000e+00 : f32
    %131 = vector.broadcast %cst_45 : f32 to vector<16x384xf32>
    %132 = arith.addf %131, %130 : vector<16x384xf32>
    %133 = arith.divf %131, %132 : vector<16x384xf32>
    %134 = vector.extract_strided_slice %127 {offsets = [0, 384], sizes = [16, 128], strides = [1, 1]} : vector<16x512xf32> to vector<16x128xf32>
    %135 = math.tanh %134 : vector<16x128xf32>
    %136 = vector.extract_strided_slice %133 {offsets = [0, 128], sizes = [16, 128], strides = [1, 1]} : vector<16x384xf32> to vector<16x128xf32>
    %137 = arith.mulf %136, %113 : vector<16x128xf32>
    %138 = vector.extract_strided_slice %133 {offsets = [0, 0], sizes = [16, 128], strides = [1, 1]} : vector<16x384xf32> to vector<16x128xf32>
    %139 = arith.mulf %138, %135 : vector<16x128xf32>
    %140 = arith.addf %137, %139 : vector<16x128xf32>
    %141 = vector.extract_strided_slice %133 {offsets = [0, 256], sizes = [16, 128], strides = [1, 1]} : vector<16x384xf32> to vector<16x128xf32>
    %142 = math.tanh %140 : vector<16x128xf32>
    %143 = arith.mulf %141, %142 : vector<16x128xf32>
    %144 = arith.truncf %143 : vector<16x128xf32> to vector<16x128xbf16>
    %145 = arith.index_cast %121 : i32 to index
    %c0_46 = arith.constant 0 : index
    %146 = vector.load %arg7[%145, %c0_46] : memref<128x128xbf16, #tpu.memory_space<vmem>>, vector<16x128xbf16>
    tpu.vector_store %arg7[%145, %c0_46], %144 {strides = array<i32>} : memref<128x128xbf16, #tpu.memory_space<vmem>>, vector<16x128xbf16>,
    %c5_i32 = arith.constant 5 : i32
    %c16_i32_47 = arith.constant 16 : i32
    %147 = arith.muli %c5_i32, %c16_i32_47 : i32
    %148 = tpu.assume_multiple %147, 16 : i32
    %149 = arith.index_cast %148 : i32 to index
    %c0_48 = arith.constant 0 : index
    %150 = vector.load %arg10[%149, %c0_48] : memref<128x512xf32, #tpu.memory_space<vmem>>, vector<16x512xf32>
    %151 = arith.truncf %143 : vector<16x128xf32> to vector<16x128xbf16>
    %c0_49 = arith.constant 0 : index
    %c0_50 = arith.constant 0 : index
    %152 = vector.load %arg3[%c0_49, %c0_50] : memref<128x512xbf16, #tpu.memory_space<vmem>>, vector<128x512xbf16>
    %cst_51 = arith.constant dense<0.000000e+00> : vector<16x512xf32>
    %153 = tpu.matmul %151, %152, %cst_51 {dimension_numbers = #tpu.dot_dimension_numbers<[1], [0], [0], [1], [0, 0, 1, 1], [], []>} : vector<16x128xbf16>, vector<128x512xbf16>, vector<16x512xf32> -> vector<16x512xf32>
    %154 = arith.addf %150, %153 : vector<16x512xf32>
    %155 = vector.extract_strided_slice %154 {offsets = [0, 0], sizes = [16, 384], strides = [1, 1]} : vector<16x512xf32> to vector<16x384xf32>
    %156 = arith.negf %155 : vector<16x384xf32>
    %157 = math.exp %156 : vector<16x384xf32>
    %cst_52 = arith.constant 1.000000e+00 : f32
    %158 = vector.broadcast %cst_52 : f32 to vector<16x384xf32>
    %159 = arith.addf %158, %157 : vector<16x384xf32>
    %160 = arith.divf %158, %159 : vector<16x384xf32>
    %161 = vector.extract_strided_slice %154 {offsets = [0, 384], sizes = [16, 128], strides = [1, 1]} : vector<16x512xf32> to vector<16x128xf32>
    %162 = math.tanh %161 : vector<16x128xf32>
    %163 = vector.extract_strided_slice %160 {offsets = [0, 128], sizes = [16, 128], strides = [1, 1]} : vector<16x384xf32> to vector<16x128xf32>
    %164 = arith.mulf %163, %140 : vector<16x128xf32>
    %165 = vector.extract_strided_slice %160 {offsets = [0, 0], sizes = [16, 128], strides = [1, 1]} : vector<16x384xf32> to vector<16x128xf32>
    %166 = arith.mulf %165, %162 : vector<16x128xf32>
    %167 = arith.addf %164, %166 : vector<16x128xf32>
    %168 = vector.extract_strided_slice %160 {offsets = [0, 256], sizes = [16, 128], strides = [1, 1]} : vector<16x384xf32> to vector<16x128xf32>
    %169 = math.tanh %167 : vector<16x128xf32>
    %170 = arith.mulf %168, %169 : vector<16x128xf32>
    %171 = arith.truncf %170 : vector<16x128xf32> to vector<16x128xbf16>
    %172 = arith.index_cast %148 : i32 to index
    %c0_53 = arith.constant 0 : index
    %173 = vector.load %arg7[%172, %c0_53] : memref<128x128xbf16, #tpu.memory_space<vmem>>, vector<16x128xbf16>
    tpu.vector_store %arg7[%172, %c0_53], %171 {strides = array<i32>} : memref<128x128xbf16, #tpu.memory_space<vmem>>, vector<16x128xbf16>,
    %c6_i32 = arith.constant 6 : i32
    %c16_i32_54 = arith.constant 16 : i32
    %174 = arith.muli %c6_i32, %c16_i32_54 : i32
    %175 = tpu.assume_multiple %174, 16 : i32
    %176 = arith.index_cast %175 : i32 to index
    %c0_55 = arith.constant 0 : index
    %177 = vector.load %arg10[%176, %c0_55] : memref<128x512xf32, #tpu.memory_space<vmem>>, vector<16x512xf32>
    %178 = arith.truncf %170 : vector<16x128xf32> to vector<16x128xbf16>
    %c0_56 = arith.constant 0 : index
    %c0_57 = arith.constant 0 : index
    %179 = vector.load %arg3[%c0_56, %c0_57] : memref<128x512xbf16, #tpu.memory_space<vmem>>, vector<128x512xbf16>
    %cst_58 = arith.constant dense<0.000000e+00> : vector<16x512xf32>
    %180 = tpu.matmul %178, %179, %cst_58 {dimension_numbers = #tpu.dot_dimension_numbers<[1], [0], [0], [1], [0, 0, 1, 1], [], []>} : vector<16x128xbf16>, vector<128x512xbf16>, vector<16x512xf32> -> vector<16x512xf32>
    %181 = arith.addf %177, %180 : vector<16x512xf32>
    %182 = vector.extract_strided_slice %181 {offsets = [0, 0], sizes = [16, 384], strides = [1, 1]} : vector<16x512xf32> to vector<16x384xf32>
    %183 = arith.negf %182 : vector<16x384xf32>
    %184 = math.exp %183 : vector<16x384xf32>
    %cst_59 = arith.constant 1.000000e+00 : f32
    %185 = vector.broadcast %cst_59 : f32 to vector<16x384xf32>
    %186 = arith.addf %185, %184 : vector<16x384xf32>
    %187 = arith.divf %185, %186 : vector<16x384xf32>
    %188 = vector.extract_strided_slice %181 {offsets = [0, 384], sizes = [16, 128], strides = [1, 1]} : vector<16x512xf32> to vector<16x128xf32>
    %189 = math.tanh %188 : vector<16x128xf32>
    %190 = vector.extract_strided_slice %187 {offsets = [0, 128], sizes = [16, 128], strides = [1, 1]} : vector<16x384xf32> to vector<16x128xf32>
    %191 = arith.mulf %190, %167 : vector<16x128xf32>
    %192 = vector.extract_strided_slice %187 {offsets = [0, 0], sizes = [16, 128], strides = [1, 1]} : vector<16x384xf32> to vector<16x128xf32>
    %193 = arith.mulf %192, %189 : vector<16x128xf32>
    %194 = arith.addf %191, %193 : vector<16x128xf32>
    %195 = vector.extract_strided_slice %187 {offsets = [0, 256], sizes = [16, 128], strides = [1, 1]} : vector<16x384xf32> to vector<16x128xf32>
    %196 = math.tanh %194 : vector<16x128xf32>
    %197 = arith.mulf %195, %196 : vector<16x128xf32>
    %198 = arith.truncf %197 : vector<16x128xf32> to vector<16x128xbf16>
    %199 = arith.index_cast %175 : i32 to index
    %c0_60 = arith.constant 0 : index
    %200 = vector.load %arg7[%199, %c0_60] : memref<128x128xbf16, #tpu.memory_space<vmem>>, vector<16x128xbf16>
    tpu.vector_store %arg7[%199, %c0_60], %198 {strides = array<i32>} : memref<128x128xbf16, #tpu.memory_space<vmem>>, vector<16x128xbf16>,
    %c7_i32 = arith.constant 7 : i32
    %c16_i32_61 = arith.constant 16 : i32
    %201 = arith.muli %c7_i32, %c16_i32_61 : i32
    %202 = tpu.assume_multiple %201, 16 : i32
    %203 = arith.index_cast %202 : i32 to index
    %c0_62 = arith.constant 0 : index
    %204 = vector.load %arg10[%203, %c0_62] : memref<128x512xf32, #tpu.memory_space<vmem>>, vector<16x512xf32>
    %205 = arith.truncf %197 : vector<16x128xf32> to vector<16x128xbf16>
    %c0_63 = arith.constant 0 : index
    %c0_64 = arith.constant 0 : index
    %206 = vector.load %arg3[%c0_63, %c0_64] : memref<128x512xbf16, #tpu.memory_space<vmem>>, vector<128x512xbf16>
    %cst_65 = arith.constant dense<0.000000e+00> : vector<16x512xf32>
    %207 = tpu.matmul %205, %206, %cst_65 {dimension_numbers = #tpu.dot_dimension_numbers<[1], [0], [0], [1], [0, 0, 1, 1], [], []>} : vector<16x128xbf16>, vector<128x512xbf16>, vector<16x512xf32> -> vector<16x512xf32>
    %208 = arith.addf %204, %207 : vector<16x512xf32>
    %209 = vector.extract_strided_slice %208 {offsets = [0, 0], sizes = [16, 384], strides = [1, 1]} : vector<16x512xf32> to vector<16x384xf32>
    %210 = arith.negf %209 : vector<16x384xf32>
    %211 = math.exp %210 : vector<16x384xf32>
    %cst_66 = arith.constant 1.000000e+00 : f32
    %212 = vector.broadcast %cst_66 : f32 to vector<16x384xf32>
    %213 = arith.addf %212, %211 : vector<16x384xf32>
    %214 = arith.divf %212, %213 : vector<16x384xf32>
    %215 = vector.extract_strided_slice %208 {offsets = [0, 384], sizes = [16, 128], strides = [1, 1]} : vector<16x512xf32> to vector<16x128xf32>
    %216 = math.tanh %215 : vector<16x128xf32>
    %217 = vector.extract_strided_slice %214 {offsets = [0, 128], sizes = [16, 128], strides = [1, 1]} : vector<16x384xf32> to vector<16x128xf32>
    %218 = arith.mulf %217, %194 : vector<16x128xf32>
    %219 = vector.extract_strided_slice %214 {offsets = [0, 0], sizes = [16, 128], strides = [1, 1]} : vector<16x384xf32> to vector<16x128xf32>
    %220 = arith.mulf %219, %216 : vector<16x128xf32>
    %221 = arith.addf %218, %220 : vector<16x128xf32>
    %222 = vector.extract_strided_slice %214 {offsets = [0, 256], sizes = [16, 128], strides = [1, 1]} : vector<16x384xf32> to vector<16x128xf32>
    %223 = math.tanh %221 : vector<16x128xf32>
    %224 = arith.mulf %222, %223 : vector<16x128xf32>
    %225 = arith.truncf %224 : vector<16x128xf32> to vector<16x128xbf16>
    %226 = arith.index_cast %202 : i32 to index
    %c0_67 = arith.constant 0 : index
    %227 = vector.load %arg7[%226, %c0_67] : memref<128x128xbf16, #tpu.memory_space<vmem>>, vector<16x128xbf16>
    tpu.vector_store %arg7[%226, %c0_67], %225 {strides = array<i32>} : memref<128x128xbf16, #tpu.memory_space<vmem>>, vector<16x128xbf16>,
    %c8_i32 = arith.constant 8 : i32
    %c0_68 = arith.constant 0 : index
    %c0_69 = arith.constant 0 : index
    %228 = vector.load %arg8[%c0_68, %c0_69] : memref<16x128xf32, #tpu.memory_space<vmem>>, vector<16x128xf32>
    tpu.vector_store %arg8[%c0_68, %c0_69], %224 {strides = array<i32>} : memref<16x128xf32, #tpu.memory_space<vmem>>, vector<16x128xf32>,
    %c0_70 = arith.constant 0 : index
    %c0_71 = arith.constant 0 : index
    %229 = vector.load %arg9[%c0_70, %c0_71] : memref<16x128xf32, #tpu.memory_space<vmem>>, vector<16x128xf32>
    tpu.vector_store %arg9[%c0_70, %c0_71], %221 {strides = array<i32>} : memref<16x128xf32, #tpu.memory_space<vmem>>, vector<16x128xf32>,
    return
  }
  func.func @transform_0(%arg0: i32) -> (i32, i32) {
    %c0_i32 = arith.constant 0 : i32
    %c0_i32_0 = arith.constant 0 : i32
    return %arg0, %c0_i32 : i32, i32
  }
  func.func @transform_1(%arg0: i32) -> (i32, i32) {
    %c0_i32 = arith.constant 0 : i32
    %c0_i32_0 = arith.constant 0 : i32
    %c0_i32_1 = arith.constant 0 : i32
    return %c0_i32, %c0_i32_0 : i32, i32
  }
  func.func @transform_2(%arg0: i32) -> (i32, i32) {
    %c0_i32 = arith.constant 0 : i32
    %c0_i32_0 = arith.constant 0 : i32
    %c0_i32_1 = arith.constant 0 : i32
    return %c0_i32, %c0_i32_0 : i32, i32
  }
  func.func @transform_3(%arg0: i32) -> (i32, i32) {
    %c0_i32 = arith.constant 0 : i32
    %c0_i32_0 = arith.constant 0 : i32
    %c0_i32_1 = arith.constant 0 : i32
    return %c0_i32, %c0_i32_0 : i32, i32
  }
  func.func @transform_4(%arg0: i32) -> (i32, i32) {
    %c0_i32 = arith.constant 0 : i32
    %c0_i32_0 = arith.constant 0 : i32
    %c0_i32_1 = arith.constant 0 : i32
    return %c0_i32, %c0_i32_0 : i32, i32
  }
  func.func @transform_5(%arg0: i32) -> (i32, i32) {
    %c0_i32 = arith.constant 0 : i32
    %c0_i32_0 = arith.constant 0 : i32
    %c0_i32_1 = arith.constant 0 : i32
    return %c0_i32, %c0_i32_0 : i32, i32
  }
  func.func @transform_6(%arg0: i32) -> (i32, i32) {
    %c0_i32 = arith.constant 0 : i32
    %c0_i32_0 = arith.constant 0 : i32
    return %arg0, %c0_i32 : i32, i32
  }
  func.func @transform_7(%arg0: i32) -> (i32, i32) {
    %c0_i32 = arith.constant 0 : i32
    %c0_i32_0 = arith.constant 0 : i32
    %c0_i32_1 = arith.constant 0 : i32
    return %c0_i32, %c0_i32_0 : i32, i32
  }
  func.func @transform_8(%arg0: i32) -> (i32, i32) {
    %c0_i32 = arith.constant 0 : i32
    %c0_i32_0 = arith.constant 0 : i32
    %c0_i32_1 = arith.constant 0 : i32
    return %c0_i32, %c0_i32_0 : i32, i32
  }
}

module attributes {stable_mosaic.version = 11 : i64} {
  func.func @_lstm_chunk_kernel(%arg0: i32, %arg1: memref<128x16xbf16, #tpu.memory_space<vmem>>, %arg2: memref<16x512xbf16, #tpu.memory_space<vmem>>, %arg3: memref<128x512xbf16, #tpu.memory_space<vmem>>, %arg4: memref<1x512xf32, #tpu.memory_space<vmem>>, %arg5: memref<16x128xf32, #tpu.memory_space<vmem>>, %arg6: memref<16x128xf32, #tpu.memory_space<vmem>>, %arg7: memref<128x128xbf16, #tpu.memory_space<vmem>>, %arg8: memref<16x128xf32, #tpu.memory_space<vmem>>, %arg9: memref<16x128xf32, #tpu.memory_space<vmem>>, %arg10: memref<128x512xf32, #tpu.memory_space<vmem>>) attributes {dimension_semantics = [#tpu.dimension_semantics<arbitrary>], iteration_bounds = array<i64: 1>, scalar_prefetch = 0 : i64, scratch_operands = 1 : i64, tpu.core_type = #tpu.core_type<tc>, window_params = [{transform_indices = @transform_0, window_bounds = array<i64: 128, 16>}, {pipeline_mode = #tpu.pipeline_mode<synchronous>, transform_indices = @transform_1, window_bounds = array<i64: 16, 512>}, {pipeline_mode = #tpu.pipeline_mode<synchronous>, transform_indices = @transform_2, window_bounds = array<i64: 128, 512>}, {pipeline_mode = #tpu.pipeline_mode<synchronous>, transform_indices = @transform_3, window_bounds = array<i64: 1, 512>}, {pipeline_mode = #tpu.pipeline_mode<synchronous>, transform_indices = @transform_4, window_bounds = array<i64: 16, 128>}, {pipeline_mode = #tpu.pipeline_mode<synchronous>, transform_indices = @transform_5, window_bounds = array<i64: 16, 128>}, {transform_indices = @transform_6, window_bounds = array<i64: 128, 128>}, {pipeline_mode = #tpu.pipeline_mode<synchronous>, transform_indices = @transform_7, window_bounds = array<i64: 16, 128>}, {pipeline_mode = #tpu.pipeline_mode<synchronous>, transform_indices = @transform_8, window_bounds = array<i64: 16, 128>}]} {
    %c0_i32 = arith.constant 0 : i32
    %0 = arith.cmpi eq, %arg0, %c0_i32 : i32
    %1 = arith.extui %0 : i1 to i32
    %c0_i32_0 = arith.constant 0 : i32
    %2 = arith.cmpi ne, %1, %c0_i32_0 : i32
    scf.if %2 {
      %c0_72 = arith.constant 0 : index
      %c0_73 = arith.constant 0 : index
      %230 = vector.load %arg5[%c0_72, %c0_73] : memref<16x128xf32, #tpu.memory_space<vmem>>, vector<16x128xf32>
      %c0_74 = arith.constant 0 : index
      %c0_75 = arith.constant 0 : index
      %231 = vector.load %arg8[%c0_74, %c0_75] : memref<16x128xf32, #tpu.memory_space<vmem>>, vector<16x128xf32>
      tpu.vector_store %arg8[%c0_74, %c0_75], %230 {strides = array<i32>} : memref<16x128xf32, #tpu.memory_space<vmem>>, vector<16x128xf32>,
      %c0_76 = arith.constant 0 : index
      %c0_77 = arith.constant 0 : index
      %232 = vector.load %arg6[%c0_76, %c0_77] : memref<16x128xf32, #tpu.memory_space<vmem>>, vector<16x128xf32>
      %c0_78 = arith.constant 0 : index
      %c0_79 = arith.constant 0 : index
      %233 = vector.load %arg9[%c0_78, %c0_79] : memref<16x128xf32, #tpu.memory_space<vmem>>, vector<16x128xf32>
      tpu.vector_store %arg9[%c0_78, %c0_79], %232 {strides = array<i32>} : memref<16x128xf32, #tpu.memory_space<vmem>>, vector<16x128xf32>,
    } else {
    }
    %c0 = arith.constant 0 : index
    %c0_1 = arith.constant 0 : index
    %3 = vector.load %arg1[%c0, %c0_1] : memref<128x16xbf16, #tpu.memory_space<vmem>>, vector<128x16xbf16>
    %c0_2 = arith.constant 0 : index
    %c0_3 = arith.constant 0 : index
    %4 = vector.load %arg2[%c0_2, %c0_3] : memref<16x512xbf16, #tpu.memory_space<vmem>>, vector<16x512xbf16>
    %cst = arith.constant dense<0.000000e+00> : vector<128x512xf32>
    %5 = tpu.matmul %3, %4, %cst {dimension_numbers = #tpu.dot_dimension_numbers<[1], [0], [0], [1], [0, 0, 1, 1], [], []>} : vector<128x16xbf16>, vector<16x512xbf16>, vector<128x512xf32> -> vector<128x512xf32>
    %c0_4 = arith.constant 0 : index
    %c0_5 = arith.constant 0 : index
    %6 = vector.load %arg4[%c0_4, %c0_5] : memref<1x512xf32, #tpu.memory_space<vmem>>, vector<1x512xf32>
    %7 = vector.broadcast %6 : vector<1x512xf32> to vector<128x512xf32>
    %8 = arith.addf %5, %7 : vector<128x512xf32>
    %c0_6 = arith.constant 0 : index
    %c0_7 = arith.constant 0 : index
    %9 = vector.load %arg10[%c0_6, %c0_7] : memref<128x512xf32, #tpu.memory_space<vmem>>, vector<128x512xf32>
    tpu.vector_store %arg10[%c0_6, %c0_7], %8 {strides = array<i32>} : memref<128x512xf32, #tpu.memory_space<vmem>>, vector<128x512xf32>,
    %c0_8 = arith.constant 0 : index
    %c0_9 = arith.constant 0 : index
    %10 = vector.load %arg8[%c0_8, %c0_9] : memref<16x128xf32, #tpu.memory_space<vmem>>, vector<16x128xf32>
    %c0_10 = arith.constant 0 : index
    %c0_11 = arith.constant 0 : index
    %11 = vector.load %arg9[%c0_10, %c0_11] : memref<16x128xf32, #tpu.memory_space<vmem>>, vector<16x128xf32>
    %c0_i32_12 = arith.constant 0 : i32
    %c16_i32 = arith.constant 16 : i32
    %12 = arith.muli %c0_i32_12, %c16_i32 : i32
    %13 = tpu.assume_multiple %12, 16 : i32
    %14 = arith.index_cast %13 : i32 to index
    %c0_13 = arith.constant 0 : index
    %15 = vector.load %arg10[%14, %c0_13] : memref<128x512xf32, #tpu.memory_space<vmem>>, vector<16x512xf32>
    %16 = arith.truncf %10 : vector<16x128xf32> to vector<16x128xbf16>
    %c0_14 = arith.constant 0 : index
    %c0_15 = arith.constant 0 : index
    %17 = vector.load %arg3[%c0_14, %c0_15] : memref<128x512xbf16, #tpu.memory_space<vmem>>, vector<128x512xbf16>
    %cst_16 = arith.constant dense<0.000000e+00> : vector<16x512xf32>
    %18 = tpu.matmul %16, %17, %cst_16 {dimension_numbers = #tpu.dot_dimension_numbers<[1], [0], [0], [1], [0, 0, 1, 1], [], []>} : vector<16x128xbf16>, vector<128x512xbf16>, vector<16x512xf32> -> vector<16x512xf32>
    %19 = arith.addf %15, %18 : vector<16x512xf32>
    %20 = vector.extract_strided_slice %19 {offsets = [0, 0], sizes = [16, 384], strides = [1, 1]} : vector<16x512xf32> to vector<16x384xf32>
    %21 = arith.negf %20 : vector<16x384xf32>
    %22 = math.exp %21 : vector<16x384xf32>
    %cst_17 = arith.constant 1.000000e+00 : f32
    %23 = vector.broadcast %cst_17 : f32 to vector<16x384xf32>
    %24 = arith.addf %23, %22 : vector<16x384xf32>
    %25 = arith.divf %23, %24 : vector<16x384xf32>
    %26 = vector.extract_strided_slice %19 {offsets = [0, 384], sizes = [16, 128], strides = [1, 1]} : vector<16x512xf32> to vector<16x128xf32>
    %27 = math.tanh %26 : vector<16x128xf32>
    %28 = vector.extract_strided_slice %25 {offsets = [0, 128], sizes = [16, 128], strides = [1, 1]} : vector<16x384xf32> to vector<16x128xf32>
    %29 = arith.mulf %28, %11 : vector<16x128xf32>
    %30 = vector.extract_strided_slice %25 {offsets = [0, 0], sizes = [16, 128], strides = [1, 1]} : vector<16x384xf32> to vector<16x128xf32>
    %31 = arith.mulf %30, %27 : vector<16x128xf32>
    %32 = arith.addf %29, %31 : vector<16x128xf32>
    %33 = vector.extract_strided_slice %25 {offsets = [0, 256], sizes = [16, 128], strides = [1, 1]} : vector<16x384xf32> to vector<16x128xf32>
    %34 = math.tanh %32 : vector<16x128xf32>
    %35 = arith.mulf %33, %34 : vector<16x128xf32>
    %36 = arith.truncf %35 : vector<16x128xf32> to vector<16x128xbf16>
    %37 = arith.index_cast %13 : i32 to index
    %c0_18 = arith.constant 0 : index
    %38 = vector.load %arg7[%37, %c0_18] : memref<128x128xbf16, #tpu.memory_space<vmem>>, vector<16x128xbf16>
    tpu.vector_store %arg7[%37, %c0_18], %36 {strides = array<i32>} : memref<128x128xbf16, #tpu.memory_space<vmem>>, vector<16x128xbf16>,
    %c1_i32 = arith.constant 1 : i32
    %c16_i32_19 = arith.constant 16 : i32
    %39 = arith.muli %c1_i32, %c16_i32_19 : i32
    %40 = tpu.assume_multiple %39, 16 : i32
    %41 = arith.index_cast %40 : i32 to index
    %c0_20 = arith.constant 0 : index
    %42 = vector.load %arg10[%41, %c0_20] : memref<128x512xf32, #tpu.memory_space<vmem>>, vector<16x512xf32>
    %43 = arith.truncf %35 : vector<16x128xf32> to vector<16x128xbf16>
    %c0_21 = arith.constant 0 : index
    %c0_22 = arith.constant 0 : index
    %44 = vector.load %arg3[%c0_21, %c0_22] : memref<128x512xbf16, #tpu.memory_space<vmem>>, vector<128x512xbf16>
    %cst_23 = arith.constant dense<0.000000e+00> : vector<16x512xf32>
    %45 = tpu.matmul %43, %44, %cst_23 {dimension_numbers = #tpu.dot_dimension_numbers<[1], [0], [0], [1], [0, 0, 1, 1], [], []>} : vector<16x128xbf16>, vector<128x512xbf16>, vector<16x512xf32> -> vector<16x512xf32>
    %46 = arith.addf %42, %45 : vector<16x512xf32>
    %47 = vector.extract_strided_slice %46 {offsets = [0, 0], sizes = [16, 384], strides = [1, 1]} : vector<16x512xf32> to vector<16x384xf32>
    %48 = arith.negf %47 : vector<16x384xf32>
    %49 = math.exp %48 : vector<16x384xf32>
    %cst_24 = arith.constant 1.000000e+00 : f32
    %50 = vector.broadcast %cst_24 : f32 to vector<16x384xf32>
    %51 = arith.addf %50, %49 : vector<16x384xf32>
    %52 = arith.divf %50, %51 : vector<16x384xf32>
    %53 = vector.extract_strided_slice %46 {offsets = [0, 384], sizes = [16, 128], strides = [1, 1]} : vector<16x512xf32> to vector<16x128xf32>
    %54 = math.tanh %53 : vector<16x128xf32>
    %55 = vector.extract_strided_slice %52 {offsets = [0, 128], sizes = [16, 128], strides = [1, 1]} : vector<16x384xf32> to vector<16x128xf32>
    %56 = arith.mulf %55, %32 : vector<16x128xf32>
    %57 = vector.extract_strided_slice %52 {offsets = [0, 0], sizes = [16, 128], strides = [1, 1]} : vector<16x384xf32> to vector<16x128xf32>
    %58 = arith.mulf %57, %54 : vector<16x128xf32>
    %59 = arith.addf %56, %58 : vector<16x128xf32>
    %60 = vector.extract_strided_slice %52 {offsets = [0, 256], sizes = [16, 128], strides = [1, 1]} : vector<16x384xf32> to vector<16x128xf32>
    %61 = math.tanh %59 : vector<16x128xf32>
    %62 = arith.mulf %60, %61 : vector<16x128xf32>
    %63 = arith.truncf %62 : vector<16x128xf32> to vector<16x128xbf16>
    %64 = arith.index_cast %40 : i32 to index
    %c0_25 = arith.constant 0 : index
    %65 = vector.load %arg7[%64, %c0_25] : memref<128x128xbf16, #tpu.memory_space<vmem>>, vector<16x128xbf16>
    tpu.vector_store %arg7[%64, %c0_25], %63 {strides = array<i32>} : memref<128x128xbf16, #tpu.memory_space<vmem>>, vector<16x128xbf16>,
    %c2_i32 = arith.constant 2 : i32
    %c16_i32_26 = arith.constant 16 : i32
    %66 = arith.muli %c2_i32, %c16_i32_26 : i32
    %67 = tpu.assume_multiple %66, 16 : i32
    %68 = arith.index_cast %67 : i32 to index
    %c0_27 = arith.constant 0 : index
    %69 = vector.load %arg10[%68, %c0_27] : memref<128x512xf32, #tpu.memory_space<vmem>>, vector<16x512xf32>
    %70 = arith.truncf %62 : vector<16x128xf32> to vector<16x128xbf16>
    %c0_28 = arith.constant 0 : index
    %c0_29 = arith.constant 0 : index
    %71 = vector.load %arg3[%c0_28, %c0_29] : memref<128x512xbf16, #tpu.memory_space<vmem>>, vector<128x512xbf16>
    %cst_30 = arith.constant dense<0.000000e+00> : vector<16x512xf32>
    %72 = tpu.matmul %70, %71, %cst_30 {dimension_numbers = #tpu.dot_dimension_numbers<[1], [0], [0], [1], [0, 0, 1, 1], [], []>} : vector<16x128xbf16>, vector<128x512xbf16>, vector<16x512xf32> -> vector<16x512xf32>
    %73 = arith.addf %69, %72 : vector<16x512xf32>
    %74 = vector.extract_strided_slice %73 {offsets = [0, 0], sizes = [16, 384], strides = [1, 1]} : vector<16x512xf32> to vector<16x384xf32>
    %75 = arith.negf %74 : vector<16x384xf32>
    %76 = math.exp %75 : vector<16x384xf32>
    %cst_31 = arith.constant 1.000000e+00 : f32
    %77 = vector.broadcast %cst_31 : f32 to vector<16x384xf32>
    %78 = arith.addf %77, %76 : vector<16x384xf32>
    %79 = arith.divf %77, %78 : vector<16x384xf32>
    %80 = vector.extract_strided_slice %73 {offsets = [0, 384], sizes = [16, 128], strides = [1, 1]} : vector<16x512xf32> to vector<16x128xf32>
    %81 = math.tanh %80 : vector<16x128xf32>
    %82 = vector.extract_strided_slice %79 {offsets = [0, 128], sizes = [16, 128], strides = [1, 1]} : vector<16x384xf32> to vector<16x128xf32>
    %83 = arith.mulf %82, %59 : vector<16x128xf32>
    %84 = vector.extract_strided_slice %79 {offsets = [0, 0], sizes = [16, 128], strides = [1, 1]} : vector<16x384xf32> to vector<16x128xf32>
    %85 = arith.mulf %84, %81 : vector<16x128xf32>
    %86 = arith.addf %83, %85 : vector<16x128xf32>
    %87 = vector.extract_strided_slice %79 {offsets = [0, 256], sizes = [16, 128], strides = [1, 1]} : vector<16x384xf32> to vector<16x128xf32>
    %88 = math.tanh %86 : vector<16x128xf32>
    %89 = arith.mulf %87, %88 : vector<16x128xf32>
    %90 = arith.truncf %89 : vector<16x128xf32> to vector<16x128xbf16>
    %91 = arith.index_cast %67 : i32 to index
    %c0_32 = arith.constant 0 : index
    %92 = vector.load %arg7[%91, %c0_32] : memref<128x128xbf16, #tpu.memory_space<vmem>>, vector<16x128xbf16>
    tpu.vector_store %arg7[%91, %c0_32], %90 {strides = array<i32>} : memref<128x128xbf16, #tpu.memory_space<vmem>>, vector<16x128xbf16>,
    %c3_i32 = arith.constant 3 : i32
    %c16_i32_33 = arith.constant 16 : i32
    %93 = arith.muli %c3_i32, %c16_i32_33 : i32
    %94 = tpu.assume_multiple %93, 16 : i32
    %95 = arith.index_cast %94 : i32 to index
    %c0_34 = arith.constant 0 : index
    %96 = vector.load %arg10[%95, %c0_34] : memref<128x512xf32, #tpu.memory_space<vmem>>, vector<16x512xf32>
    %97 = arith.truncf %89 : vector<16x128xf32> to vector<16x128xbf16>
    %c0_35 = arith.constant 0 : index
    %c0_36 = arith.constant 0 : index
    %98 = vector.load %arg3[%c0_35, %c0_36] : memref<128x512xbf16, #tpu.memory_space<vmem>>, vector<128x512xbf16>
    %cst_37 = arith.constant dense<0.000000e+00> : vector<16x512xf32>
    %99 = tpu.matmul %97, %98, %cst_37 {dimension_numbers = #tpu.dot_dimension_numbers<[1], [0], [0], [1], [0, 0, 1, 1], [], []>} : vector<16x128xbf16>, vector<128x512xbf16>, vector<16x512xf32> -> vector<16x512xf32>
    %100 = arith.addf %96, %99 : vector<16x512xf32>
    %101 = vector.extract_strided_slice %100 {offsets = [0, 0], sizes = [16, 384], strides = [1, 1]} : vector<16x512xf32> to vector<16x384xf32>
    %102 = arith.negf %101 : vector<16x384xf32>
    %103 = math.exp %102 : vector<16x384xf32>
    %cst_38 = arith.constant 1.000000e+00 : f32
    %104 = vector.broadcast %cst_38 : f32 to vector<16x384xf32>
    %105 = arith.addf %104, %103 : vector<16x384xf32>
    %106 = arith.divf %104, %105 : vector<16x384xf32>
    %107 = vector.extract_strided_slice %100 {offsets = [0, 384], sizes = [16, 128], strides = [1, 1]} : vector<16x512xf32> to vector<16x128xf32>
    %108 = math.tanh %107 : vector<16x128xf32>
    %109 = vector.extract_strided_slice %106 {offsets = [0, 128], sizes = [16, 128], strides = [1, 1]} : vector<16x384xf32> to vector<16x128xf32>
    %110 = arith.mulf %109, %86 : vector<16x128xf32>
    %111 = vector.extract_strided_slice %106 {offsets = [0, 0], sizes = [16, 128], strides = [1, 1]} : vector<16x384xf32> to vector<16x128xf32>
    %112 = arith.mulf %111, %108 : vector<16x128xf32>
    %113 = arith.addf %110, %112 : vector<16x128xf32>
    %114 = vector.extract_strided_slice %106 {offsets = [0, 256], sizes = [16, 128], strides = [1, 1]} : vector<16x384xf32> to vector<16x128xf32>
    %115 = math.tanh %113 : vector<16x128xf32>
    %116 = arith.mulf %114, %115 : vector<16x128xf32>
    %117 = arith.truncf %116 : vector<16x128xf32> to vector<16x128xbf16>
    %118 = arith.index_cast %94 : i32 to index
    %c0_39 = arith.constant 0 : index
    %119 = vector.load %arg7[%118, %c0_39] : memref<128x128xbf16, #tpu.memory_space<vmem>>, vector<16x128xbf16>
    tpu.vector_store %arg7[%118, %c0_39], %117 {strides = array<i32>} : memref<128x128xbf16, #tpu.memory_space<vmem>>, vector<16x128xbf16>,
    %c4_i32 = arith.constant 4 : i32
    %c16_i32_40 = arith.constant 16 : i32
    %120 = arith.muli %c4_i32, %c16_i32_40 : i32
    %121 = tpu.assume_multiple %120, 16 : i32
    %122 = arith.index_cast %121 : i32 to index
    %c0_41 = arith.constant 0 : index
    %123 = vector.load %arg10[%122, %c0_41] : memref<128x512xf32, #tpu.memory_space<vmem>>, vector<16x512xf32>
    %124 = arith.truncf %116 : vector<16x128xf32> to vector<16x128xbf16>
    %c0_42 = arith.constant 0 : index
    %c0_43 = arith.constant 0 : index
    %125 = vector.load %arg3[%c0_42, %c0_43] : memref<128x512xbf16, #tpu.memory_space<vmem>>, vector<128x512xbf16>
    %cst_44 = arith.constant dense<0.000000e+00> : vector<16x512xf32>
    %126 = tpu.matmul %124, %125, %cst_44 {dimension_numbers = #tpu.dot_dimension_numbers<[1], [0], [0], [1], [0, 0, 1, 1], [], []>} : vector<16x128xbf16>, vector<128x512xbf16>, vector<16x512xf32> -> vector<16x512xf32>
    %127 = arith.addf %123, %126 : vector<16x512xf32>
    %128 = vector.extract_strided_slice %127 {offsets = [0, 0], sizes = [16, 384], strides = [1, 1]} : vector<16x512xf32> to vector<16x384xf32>
    %129 = arith.negf %128 : vector<16x384xf32>
    %130 = math.exp %129 : vector<16x384xf32>
    %cst_45 = arith.constant 1.000000e+00 : f32
    %131 = vector.broadcast %cst_45 : f32 to vector<16x384xf32>
    %132 = arith.addf %131, %130 : vector<16x384xf32>
    %133 = arith.divf %131, %132 : vector<16x384xf32>
    %134 = vector.extract_strided_slice %127 {offsets = [0, 384], sizes = [16, 128], strides = [1, 1]} : vector<16x512xf32> to vector<16x128xf32>
    %135 = math.tanh %134 : vector<16x128xf32>
    %136 = vector.extract_strided_slice %133 {offsets = [0, 128], sizes = [16, 128], strides = [1, 1]} : vector<16x384xf32> to vector<16x128xf32>
    %137 = arith.mulf %136, %113 : vector<16x128xf32>
    %138 = vector.extract_strided_slice %133 {offsets = [0, 0], sizes = [16, 128], strides = [1, 1]} : vector<16x384xf32> to vector<16x128xf32>
    %139 = arith.mulf %138, %135 : vector<16x128xf32>
    %140 = arith.addf %137, %139 : vector<16x128xf32>
    %141 = vector.extract_strided_slice %133 {offsets = [0, 256], sizes = [16, 128], strides = [1, 1]} : vector<16x384xf32> to vector<16x128xf32>
    %142 = math.tanh %140 : vector<16x128xf32>
    %143 = arith.mulf %141, %142 : vector<16x128xf32>
    %144 = arith.truncf %143 : vector<16x128xf32> to vector<16x128xbf16>
    %145 = arith.index_cast %121 : i32 to index
    %c0_46 = arith.constant 0 : index
    %146 = vector.load %arg7[%145, %c0_46] : memref<128x128xbf16, #tpu.memory_space<vmem>>, vector<16x128xbf16>
    tpu.vector_store %arg7[%145, %c0_46], %144 {strides = array<i32>} : memref<128x128xbf16, #tpu.memory_space<vmem>>, vector<16x128xbf16>,
    %c5_i32 = arith.constant 5 : i32
    %c16_i32_47 = arith.constant 16 : i32
    %147 = arith.muli %c5_i32, %c16_i32_47 : i32
    %148 = tpu.assume_multiple %147, 16 : i32
    %149 = arith.index_cast %148 : i32 to index
    %c0_48 = arith.constant 0 : index
    %150 = vector.load %arg10[%149, %c0_48] : memref<128x512xf32, #tpu.memory_space<vmem>>, vector<16x512xf32>
    %151 = arith.truncf %143 : vector<16x128xf32> to vector<16x128xbf16>
    %c0_49 = arith.constant 0 : index
    %c0_50 = arith.constant 0 : index
    %152 = vector.load %arg3[%c0_49, %c0_50] : memref<128x512xbf16, #tpu.memory_space<vmem>>, vector<128x512xbf16>
    %cst_51 = arith.constant dense<0.000000e+00> : vector<16x512xf32>
    %153 = tpu.matmul %151, %152, %cst_51 {dimension_numbers = #tpu.dot_dimension_numbers<[1], [0], [0], [1], [0, 0, 1, 1], [], []>} : vector<16x128xbf16>, vector<128x512xbf16>, vector<16x512xf32> -> vector<16x512xf32>
    %154 = arith.addf %150, %153 : vector<16x512xf32>
    %155 = vector.extract_strided_slice %154 {offsets = [0, 0], sizes = [16, 384], strides = [1, 1]} : vector<16x512xf32> to vector<16x384xf32>
    %156 = arith.negf %155 : vector<16x384xf32>
    %157 = math.exp %156 : vector<16x384xf32>
    %cst_52 = arith.constant 1.000000e+00 : f32
    %158 = vector.broadcast %cst_52 : f32 to vector<16x384xf32>
    %159 = arith.addf %158, %157 : vector<16x384xf32>
    %160 = arith.divf %158, %159 : vector<16x384xf32>
    %161 = vector.extract_strided_slice %154 {offsets = [0, 384], sizes = [16, 128], strides = [1, 1]} : vector<16x512xf32> to vector<16x128xf32>
    %162 = math.tanh %161 : vector<16x128xf32>
    %163 = vector.extract_strided_slice %160 {offsets = [0, 128], sizes = [16, 128], strides = [1, 1]} : vector<16x384xf32> to vector<16x128xf32>
    %164 = arith.mulf %163, %140 : vector<16x128xf32>
    %165 = vector.extract_strided_slice %160 {offsets = [0, 0], sizes = [16, 128], strides = [1, 1]} : vector<16x384xf32> to vector<16x128xf32>
    %166 = arith.mulf %165, %162 : vector<16x128xf32>
    %167 = arith.addf %164, %166 : vector<16x128xf32>
    %168 = vector.extract_strided_slice %160 {offsets = [0, 256], sizes = [16, 128], strides = [1, 1]} : vector<16x384xf32> to vector<16x128xf32>
    %169 = math.tanh %167 : vector<16x128xf32>
    %170 = arith.mulf %168, %169 : vector<16x128xf32>
    %171 = arith.truncf %170 : vector<16x128xf32> to vector<16x128xbf16>
    %172 = arith.index_cast %148 : i32 to index
    %c0_53 = arith.constant 0 : index
    %173 = vector.load %arg7[%172, %c0_53] : memref<128x128xbf16, #tpu.memory_space<vmem>>, vector<16x128xbf16>
    tpu.vector_store %arg7[%172, %c0_53], %171 {strides = array<i32>} : memref<128x128xbf16, #tpu.memory_space<vmem>>, vector<16x128xbf16>,
    %c6_i32 = arith.constant 6 : i32
    %c16_i32_54 = arith.constant 16 : i32
    %174 = arith.muli %c6_i32, %c16_i32_54 : i32
    %175 = tpu.assume_multiple %174, 16 : i32
    %176 = arith.index_cast %175 : i32 to index
    %c0_55 = arith.constant 0 : index
    %177 = vector.load %arg10[%176, %c0_55] : memref<128x512xf32, #tpu.memory_space<vmem>>, vector<16x512xf32>
    %178 = arith.truncf %170 : vector<16x128xf32> to vector<16x128xbf16>
    %c0_56 = arith.constant 0 : index
    %c0_57 = arith.constant 0 : index
    %179 = vector.load %arg3[%c0_56, %c0_57] : memref<128x512xbf16, #tpu.memory_space<vmem>>, vector<128x512xbf16>
    %cst_58 = arith.constant dense<0.000000e+00> : vector<16x512xf32>
    %180 = tpu.matmul %178, %179, %cst_58 {dimension_numbers = #tpu.dot_dimension_numbers<[1], [0], [0], [1], [0, 0, 1, 1], [], []>} : vector<16x128xbf16>, vector<128x512xbf16>, vector<16x512xf32> -> vector<16x512xf32>
    %181 = arith.addf %177, %180 : vector<16x512xf32>
    %182 = vector.extract_strided_slice %181 {offsets = [0, 0], sizes = [16, 384], strides = [1, 1]} : vector<16x512xf32> to vector<16x384xf32>
    %183 = arith.negf %182 : vector<16x384xf32>
    %184 = math.exp %183 : vector<16x384xf32>
    %cst_59 = arith.constant 1.000000e+00 : f32
    %185 = vector.broadcast %cst_59 : f32 to vector<16x384xf32>
    %186 = arith.addf %185, %184 : vector<16x384xf32>
    %187 = arith.divf %185, %186 : vector<16x384xf32>
    %188 = vector.extract_strided_slice %181 {offsets = [0, 384], sizes = [16, 128], strides = [1, 1]} : vector<16x512xf32> to vector<16x128xf32>
    %189 = math.tanh %188 : vector<16x128xf32>
    %190 = vector.extract_strided_slice %187 {offsets = [0, 128], sizes = [16, 128], strides = [1, 1]} : vector<16x384xf32> to vector<16x128xf32>
    %191 = arith.mulf %190, %167 : vector<16x128xf32>
    %192 = vector.extract_strided_slice %187 {offsets = [0, 0], sizes = [16, 128], strides = [1, 1]} : vector<16x384xf32> to vector<16x128xf32>
    %193 = arith.mulf %192, %189 : vector<16x128xf32>
    %194 = arith.addf %191, %193 : vector<16x128xf32>
    %195 = vector.extract_strided_slice %187 {offsets = [0, 256], sizes = [16, 128], strides = [1, 1]} : vector<16x384xf32> to vector<16x128xf32>
    %196 = math.tanh %194 : vector<16x128xf32>
    %197 = arith.mulf %195, %196 : vector<16x128xf32>
    %198 = arith.truncf %197 : vector<16x128xf32> to vector<16x128xbf16>
    %199 = arith.index_cast %175 : i32 to index
    %c0_60 = arith.constant 0 : index
    %200 = vector.load %arg7[%199, %c0_60] : memref<128x128xbf16, #tpu.memory_space<vmem>>, vector<16x128xbf16>
    tpu.vector_store %arg7[%199, %c0_60], %198 {strides = array<i32>} : memref<128x128xbf16, #tpu.memory_space<vmem>>, vector<16x128xbf16>,
    %c7_i32 = arith.constant 7 : i32
    %c16_i32_61 = arith.constant 16 : i32
    %201 = arith.muli %c7_i32, %c16_i32_61 : i32
    %202 = tpu.assume_multiple %201, 16 : i32
    %203 = arith.index_cast %202 : i32 to index
    %c0_62 = arith.constant 0 : index
    %204 = vector.load %arg10[%203, %c0_62] : memref<128x512xf32, #tpu.memory_space<vmem>>, vector<16x512xf32>
    %205 = arith.truncf %197 : vector<16x128xf32> to vector<16x128xbf16>
    %c0_63 = arith.constant 0 : index
    %c0_64 = arith.constant 0 : index
    %206 = vector.load %arg3[%c0_63, %c0_64] : memref<128x512xbf16, #tpu.memory_space<vmem>>, vector<128x512xbf16>
    %cst_65 = arith.constant dense<0.000000e+00> : vector<16x512xf32>
    %207 = tpu.matmul %205, %206, %cst_65 {dimension_numbers = #tpu.dot_dimension_numbers<[1], [0], [0], [1], [0, 0, 1, 1], [], []>} : vector<16x128xbf16>, vector<128x512xbf16>, vector<16x512xf32> -> vector<16x512xf32>
    %208 = arith.addf %204, %207 : vector<16x512xf32>
    %209 = vector.extract_strided_slice %208 {offsets = [0, 0], sizes = [16, 384], strides = [1, 1]} : vector<16x512xf32> to vector<16x384xf32>
    %210 = arith.negf %209 : vector<16x384xf32>
    %211 = math.exp %210 : vector<16x384xf32>
    %cst_66 = arith.constant 1.000000e+00 : f32
    %212 = vector.broadcast %cst_66 : f32 to vector<16x384xf32>
    %213 = arith.addf %212, %211 : vector<16x384xf32>
    %214 = arith.divf %212, %213 : vector<16x384xf32>
    %215 = vector.extract_strided_slice %208 {offsets = [0, 384], sizes = [16, 128], strides = [1, 1]} : vector<16x512xf32> to vector<16x128xf32>
    %216 = math.tanh %215 : vector<16x128xf32>
    %217 = vector.extract_strided_slice %214 {offsets = [0, 128], sizes = [16, 128], strides = [1, 1]} : vector<16x384xf32> to vector<16x128xf32>
    %218 = arith.mulf %217, %194 : vector<16x128xf32>
    %219 = vector.extract_strided_slice %214 {offsets = [0, 0], sizes = [16, 128], strides = [1, 1]} : vector<16x384xf32> to vector<16x128xf32>
    %220 = arith.mulf %219, %216 : vector<16x128xf32>
    %221 = arith.addf %218, %220 : vector<16x128xf32>
    %222 = vector.extract_strided_slice %214 {offsets = [0, 256], sizes = [16, 128], strides = [1, 1]} : vector<16x384xf32> to vector<16x128xf32>
    %223 = math.tanh %221 : vector<16x128xf32>
    %224 = arith.mulf %222, %223 : vector<16x128xf32>
    %225 = arith.truncf %224 : vector<16x128xf32> to vector<16x128xbf16>
    %226 = arith.index_cast %202 : i32 to index
    %c0_67 = arith.constant 0 : index
    %227 = vector.load %arg7[%226, %c0_67] : memref<128x128xbf16, #tpu.memory_space<vmem>>, vector<16x128xbf16>
    tpu.vector_store %arg7[%226, %c0_67], %225 {strides = array<i32>} : memref<128x128xbf16, #tpu.memory_space<vmem>>, vector<16x128xbf16>,
    %c8_i32 = arith.constant 8 : i32
    %c0_68 = arith.constant 0 : index
    %c0_69 = arith.constant 0 : index
    %228 = vector.load %arg8[%c0_68, %c0_69] : memref<16x128xf32, #tpu.memory_space<vmem>>, vector<16x128xf32>
    tpu.vector_store %arg8[%c0_68, %c0_69], %224 {strides = array<i32>} : memref<16x128xf32, #tpu.memory_space<vmem>>, vector<16x128xf32>,
    %c0_70 = arith.constant 0 : index
    %c0_71 = arith.constant 0 : index
    %229 = vector.load %arg9[%c0_70, %c0_71] : memref<16x128xf32, #tpu.memory_space<vmem>>, vector<16x128xf32>
    tpu.vector_store %arg9[%c0_70, %c0_71], %221 {strides = array<i32>} : memref<16x128xf32, #tpu.memory_space<vmem>>, vector<16x128xf32>,
    return
  }
  func.func @transform_0(%arg0: i32) -> (i32, i32) {
    %c0_i32 = arith.constant 0 : i32
    %c0_i32_0 = arith.constant 0 : i32
    return %arg0, %c0_i32 : i32, i32
  }
  func.func @transform_1(%arg0: i32) -> (i32, i32) {
    %c0_i32 = arith.constant 0 : i32
    %c0_i32_0 = arith.constant 0 : i32
    %c0_i32_1 = arith.constant 0 : i32
    return %c0_i32, %c0_i32_0 : i32, i32
  }
  func.func @transform_2(%arg0: i32) -> (i32, i32) {
    %c0_i32 = arith.constant 0 : i32
    %c0_i32_0 = arith.constant 0 : i32
    %c0_i32_1 = arith.constant 0 : i32
    return %c0_i32, %c0_i32_0 : i32, i32
  }
  func.func @transform_3(%arg0: i32) -> (i32, i32) {
    %c0_i32 = arith.constant 0 : i32
    %c0_i32_0 = arith.constant 0 : i32
    %c0_i32_1 = arith.constant 0 : i32
    return %c0_i32, %c0_i32_0 : i32, i32
  }
  func.func @transform_4(%arg0: i32) -> (i32, i32) {
    %c0_i32 = arith.constant 0 : i32
    %c0_i32_0 = arith.constant 0 : i32
    %c0_i32_1 = arith.constant 0 : i32
    return %c0_i32, %c0_i32_0 : i32, i32
  }
  func.func @transform_5(%arg0: i32) -> (i32, i32) {
    %c0_i32 = arith.constant 0 : i32
    %c0_i32_0 = arith.constant 0 : i32
    %c0_i32_1 = arith.constant 0 : i32
    return %c0_i32, %c0_i32_0 : i32, i32
  }
  func.func @transform_6(%arg0: i32) -> (i32, i32) {
    %c0_i32 = arith.constant 0 : i32
    %c0_i32_0 = arith.constant 0 : i32
    return %arg0, %c0_i32 : i32, i32
  }
  func.func @transform_7(%arg0: i32) -> (i32, i32) {
    %c0_i32 = arith.constant 0 : i32
    %c0_i32_0 = arith.constant 0 : i32
    %c0_i32_1 = arith.constant 0 : i32
    return %c0_i32, %c0_i32_0 : i32, i32
  }
  func.func @transform_8(%arg0: i32) -> (i32, i32) {
    %c0_i32 = arith.constant 0 : i32
    %c0_i32_0 = arith.constant 0 : i32
    %c0_i32_1 = arith.constant 0 : i32
    return %c0_i32, %c0_i32_0 : i32, i32
  }
}

</mosaic_0001>

<bundles_post_ra>
// kernel: tpu_custom_call.1
= control target key start
LH: loop header
LB: loop body
LE: loop exit
PB: predicated region body
PF: predicated region fallthrough
CT: control target
= control target key end

     0   :  { %14 = vsyncpa [#allocation4], 0  ;;  %s5120_s0 = inlined_call_operand.vmem [shape: bf16[128,16], index: 0, kind: input, shape index: {}]   ;;  %s5121_s1 = inlined_call_operand.vmem [shape: bf16[16,512], index: 1, kind: input, shape index: {}]   ;;  %s5122_s2 = inlined_call_operand.hbm [shape: bf16[128,512], index: 2, kind: input, shape index: {}]   ;;  %s5123_s3 = inlined_call_operand.vmem [shape: f32[1,512], index: 3, kind: input, shape index: {}]   ;;  %s5124_s4 = inlined_call_operand.vmem [shape: f32[16,128], index: 4, kind: input, shape index: {}]   ;;  %s5125_s5 = inlined_call_operand.vmem [shape: f32[16,128], index: 5, kind: input, shape index: {}]   ;;  %s5126_s6 = inlined_call_operand.hbm [shape: bf16[128,128], index: 6, kind: output, shape index: {0}]   ;;  %s5127_s7 = inlined_call_operand.hbm [shape: f32[16,128], index: 7, kind: output, shape index: {1}]   ;;  %s5128_s8 = inlined_call_operand.hbm [shape: f32[16,128], index: 8, kind: output, shape index: {2}]  }
   0x1   :  { %15 = vsyncpa [#allocation5], 0 }
   0x2   :  { %16 = vsyncpa [#allocation8], 0  ;;  %s4401_s27 = smov [#allocation3]   ;;  %s4307_s9 = scalar_lea.hbm %s5122_s2, 4096 }
   0x3   :  { %s26_s28 = sshll.u32 %s4401_s27, 4  ;;  %p4308_p0 = scmp.ne.s32.totalorder %s5122_s2, %s4307_s9  ;;  %s27_s28 = int_to_ptr.vmem [resolvable:$true] %s26_s28 }
   0x4   :  { %p4311_p1 = scmp.lt.u32.totalorder %s4307_s9, %s5122_s2 }
   0x6   :  { %p4313_p2 = pnand %p4311_p1, %p4308_p0 }
   0x8   :  { %4316 = shalt.err (!%p4313_p2)
}
   0x9   :  { %s4317_s14 = scalar_lea.vmem %s27_s28, 4096  ;;  %p4322_p4 = scmp.lt.s32.totalorder %s27_s28, %s27_s28 }
   0xa   :  { %p4318_p3 = scmp.ne.s32.totalorder %s27_s28, %s4317_s14  ;;  %p4323_p5 = scmp.lt.s32.totalorder %s4317_s14, %s4317_s14 }
   0xc   :  { %p4324_p6 = por %p4323_p5, %p4322_p4 }
   0xe   :  { %p4325_p7 = pnand %p4324_p6, %p4318_p3 }
  0x10   :  { %4328 = shalt.err (!%p4325_p7)
}
  0x11   :  { %s4402_s15 = smov 256   ;;  %s4403_s16 = smov 16  }
  0x12   :  { %32 = dma.hbm_to_vmem [thread:$0]  %s5122_s2, 4096, %s27_s28, [#allocation4], %s4402_s15, %s4402_s15, %s4403_s16  }
  0x13   :  { %4395 = dma.done.wait [#allocation4], 4096  }
  0x14   :  { %4396 = vsyncadd [#allocation4], 4294963200  ;;  %v4404_v0 = vmov 0   ;;  %v3926_v1 = vld [vmem:[%s5121_s1 + $0x4] ss:$16 sps:$4 sm:$0xff]   ;;  %vm157_vm0 = vcmask 130048   ;;  %v77_v48 = vlaneseq }
  0x15   :  { %214 = vmatprep.mubr.bf16.mxu0 %v4404_v0  ;;  %327 = vmatprep.mubr.bf16.mxu1 %v4404_v0  ;;  %v3928_v2 = vld [vmem:[%s5121_s1 + $0xc] ss:$16 sps:$4 sm:$0xff]   ;;  %v3930_v3 = vld [vmem:[%s5121_s1] ss:$16 sps:$4 sm:$0xff]   ;;  %v3931_v4 = vld [vmem:[%s5121_s1 + $0x8] ss:$16 sps:$4 sm:$0xff]  }
  0x16   :  { %182 = vmatprep.subr.bf16.mxu0 %v3926_v1  ;;  %295 = vmatprep.subr.bf16.mxu1 %v3928_v2  ;;  %v3932_v5 = vld [vmem:[%s5120_s0] sm:$0xff]   ;;  %v4499_v10 = vld [vmem:[#allocation3 + $0x8] ss:$16 sps:$4 sm:$0xff]   ;;  %v4501_v11 = vld [vmem:[#allocation3 + $0xc] ss:$16 sps:$4 sm:$0xff]   ;;  %v78_v49 = vshrl.u32 %v77_v48, 7 }
  0x17   :  { %183 = vmatpush1.bf16.msra.mxu0 %v3930_v3  ;;  %296 = vmatpush1.bf16.msra.mxu1 %v3931_v4  ;;  %v4486_v6 = vld [vmem:[#allocation3] ss:$16 sps:$4 sm:$0xff]   ;;  %v4488_v7 = vld [vmem:[#allocation3 + $0x4] ss:$16 sps:$4 sm:$0xff]   ;;  %v3936_v12 = vld [vmem:[%s5120_s0 + $0x8] sm:$0xff]   ;;  %s4406_s26 = smov [#allocation9]  }
  0x18   :  { %680 = vmatprep.subr.bf16.mxu0 %v4488_v7  ;;  %v4491_v8 = vld [vmem:[#allocation3 + $0x20] ss:$16 sps:$4 sm:$0xff]   ;;  %v4495_v9 = vld [vmem:[#allocation3 + $0x24] ss:$16 sps:$4 sm:$0xff]   ;;  %723 = vmatprep.subr.bf16.mxu1 %v4501_v11  ;;  %v4515_v15 = vld [vmem:[#allocation3 + $0x2c] ss:$16 sps:$4 sm:$0xff]  }
  0x19   :  { %v4509_v13 = vld [vmem:[#allocation3 + $0x44] ss:$16 sps:$4 sm:$0xff]   ;;  %v4511_v14 = vld [vmem:[#allocation3 + $0x40] ss:$16 sps:$4 sm:$0xff]   ;;  %v4518_v16 = vld [vmem:[#allocation3 + $0x28] ss:$16 sps:$4 sm:$0xff]  }
  0x1a   :  { %3395 = vmatmul.mubr.msk.bf16.vlgmr.msra.gmra.mrb[0].mxu0 %vm157_vm0, %v3932_v5  ;;  %3403 = vmatmul.mubr.msk.bf16.vlgmr.msra.gmra.mrb[0].mxu1 %vm157_vm0, %v3932_v5  ;;  %v4521_v17 = vld [vmem:[#allocation3 + $0x64] ss:$16 sps:$4 sm:$0xff]   ;;  %v4525_v18 = vld [vmem:[#allocation3 + $0x4c] ss:$16 sps:$4 sm:$0xff]   ;;  %v4529_v19 = vld [vmem:[#allocation3 + $0x60] ss:$16 sps:$4 sm:$0xff]  }
  0x1b   :  { %681 = vmatpush1.bf16.msra.mxu0 %v4486_v6  ;;  %224 = vmatprep.mubr.bf16.mxu0 %v4404_v0  ;;  %v4533_v20 = vld [vmem:[#allocation3 + $0x48] ss:$16 sps:$4 sm:$0xff]   ;;  %v4537_v21 = vld [vmem:[#allocation3 + $0x84] ss:$16 sps:$4 sm:$0xff]   ;;  %v4542_v23 = vld [vmem:[#allocation3 + $0x6c] ss:$16 sps:$4 sm:$0xff]  }
  0x1c   :  { %337 = vmatprep.mubr.bf16.mxu1 %v4404_v0  ;;  %682 = vmatprep.subr.bf16.mxu0 %v4495_v9  ;;  %v3943_v22 = vld [vmem:[%s5120_s0 + $0x10] sm:$0xff]   ;;  %v4548_v25 = vld [vmem:[#allocation3 + $0x68] ss:$16 sps:$4 sm:$0xff]   ;;  %v4556_v27 = vld [vmem:[#allocation3 + $0x8c] ss:$16 sps:$4 sm:$0xff]   ;;  %v79_v50 = vsub.s32 0, %v78_v49 }
  0x1d   :  { %724 = vmatpush1.bf16.msra.mxu1 %v4499_v10  ;;  %v4545_v24 = vld [vmem:[#allocation3 + $0x80] ss:$16 sps:$4 sm:$0xff]   ;;  %v4552_v26 = vld [vmem:[#allocation3 + $0xa4] ss:$16 sps:$4 sm:$0xff]   ;;  %v4564_v29 = vld [vmem:[#allocation3 + $0x88] ss:$16 sps:$4 sm:$0xff]  }
  0x1e   :  { %725 = vmatprep.subr.bf16.mxu1 %v4515_v15  ;;  %v4561_v28 = vld [vmem:[#allocation3 + $0xa0] ss:$16 sps:$4 sm:$0xff]   ;;  %v4568_v30 = vld [vmem:[#allocation3 + $0xc4] ss:$16 sps:$4 sm:$0xff]   ;;  %v4570_v31 = vld [vmem:[#allocation3 + $0xac] ss:$16 sps:$4 sm:$0xff]  }
  0x1f   :  { %683 = vmatpush1.bf16.msra.mxu0 %v4491_v8  ;;  %v3950_v32 = vld [vmem:[%s5120_s0 + $0x18] sm:$0xff]   ;;  %v4575_v33 = vld [vmem:[#allocation3 + $0xc0] ss:$16 sps:$4 sm:$0xff]   ;;  %v4583_v35 = vld [vmem:[#allocation3 + $0xe4] ss:$16 sps:$4 sm:$0xff]   ;;  %v83_v52 = vsub.s32 1, %v78_v49 }
  0x20   :  { %684 = vmatprep.subr.bf16.mxu0 %v4509_v13  ;;  %v4579_v34 = vld [vmem:[#allocation3 + $0xa8] ss:$16 sps:$4 sm:$0xff]   ;;  %v4585_v36 = vld [vmem:[#allocation3 + $0xcc] ss:$16 sps:$4 sm:$0xff]   ;;  %v4591_v37 = vld [vmem:[#allocation3 + $0xe0] ss:$16 sps:$4 sm:$0xff]  }
  0x21   :  { %726 = vmatpush1.bf16.msra.mxu1 %v4518_v16  ;;  %v4593_v38 = vld [vmem:[#allocation3 + $0xc8] ss:$16 sps:$4 sm:$0xff]   ;;  %v4595_v39 = vld [vmem:[#allocation3 + $0xec] ss:$16 sps:$4 sm:$0xff]   ;;  %v3957_v40 = vld [vmem:[%s5120_s0 + $0x20] sm:$0xff]   ;;  %v87_v56 = vsub.s32 2, %v78_v49 }
  0x22   :  { %3396 = vmatmul.mubr.msk.bf16.gmra.mrb[4].mxu0 %vm157_vm0, %v3936_v12  ;;  %3404 = vmatmul.mubr.msk.bf16.gmra.mrb[4].mxu1 %vm157_vm0, %v3936_v12  ;;  %v4604_v41 = vld [vmem:[#allocation3 + $0xe8] ss:$16 sps:$4 sm:$0xff]   ;;  %v3971_v43 = vld [vmem:[%s5120_s0 + $0x30] sm:$0xff]   ;;  %v47_v45 = vld [vmem:[%s5124_s4] sm:$0xff]  ;;  %v91_v2 = vsub.s32 3, %v78_v49  ;;  %s3357_s27 = sshll.u32 %s4406_s26, 4  ;;  %s5070_s27 = int_to_ptr.vmem [resolvable:$true] %s3357_s27 }
  0x23   :  { %234 = vmatprep.mubr.bf16.mxu0 %v4404_v0  ;;  %347 = vmatprep.mubr.bf16.mxu1 %v4404_v0  ;;  %v3964_v42 = vld [vmem:[%s5120_s0 + $0x28] sm:$0xff]   ;;  %v3978_v44 = vld [vmem:[%s5120_s0 + $0x38] sm:$0xff]   ;;  %v75_v51 = vld [vmem:[%s5123_s3] sm:$0xf]  ;;  %s4407_s1 = smov [#allocation6]  }
  0x24   :  { %685 = vmatpush1.bf16.msra.mxu0 %v4511_v14  ;;  %727 = vmatprep.subr.bf16.mxu1 %v4525_v18  ;;  %v48_v46 = vld [vmem:[%s5124_s4 + $0x8] sm:$0xff]  ;;  %v4680_v53 = vrot.slane %v75_v51, %v79_v50  ;;  %v4682_v54 = vrot.slane %v75_v51, %v83_v52  ;;  %s3333_s28 = sshll.u32 %s4407_s1, 4  ;;  %s5072_s28 = int_to_ptr.vmem [resolvable:$true] %s3333_s28 }
  0x25   :  { %686 = vmatprep.subr.bf16.mxu0 %v4521_v17  ;;  %728 = vmatpush1.bf16.msra.mxu1 %v4533_v20  ;;  %v487_v47 = vpack.c.bf16 %v48_v46, %v47_v45 }
  0x26   :  { %729 = vmatprep.subr.bf16.mxu1 %v4542_v23 }
  0x28   :  { %687 = vmatpush1.bf16.msra.mxu0 %v4529_v19 }
  0x29   :  { %688 = vmatprep.subr.bf16.mxu0 %v4537_v21  ;;  %730 = vmatpush1.bf16.msra.mxu1 %v4548_v25 }
  0x2a   :  { %3397 = vmatmul.mubr.msk.bf16.gmra.mrb[8].mxu0 %vm157_vm0, %v3943_v22  ;;  %3405 = vmatmul.mubr.msk.bf16.gmra.mrb[8].mxu1 %vm157_vm0, %v3943_v22 }
  0x2b   :  { %244 = vmatprep.mubr.bf16.mxu0 %v4404_v0  ;;  %357 = vmatprep.mubr.bf16.mxu1 %v4404_v0 }
  0x2c   :  { %689 = vmatpush1.bf16.msra.mxu0 %v4545_v24  ;;  %731 = vmatprep.subr.bf16.mxu1 %v4556_v27 }
  0x2d   :  { %690 = vmatprep.subr.bf16.mxu0 %v4552_v26  ;;  %732 = vmatpush1.bf16.msra.mxu1 %v4564_v29 }
  0x2e   :  { %733 = vmatprep.subr.bf16.mxu1 %v4570_v31 }
  0x30   :  { %691 = vmatpush1.bf16.msra.mxu0 %v4561_v28 }
  0x31   :  { %692 = vmatprep.subr.bf16.mxu0 %v4568_v30  ;;  %734 = vmatpush1.bf16.msra.mxu1 %v4579_v34 }
  0x32   :  { %3398 = vmatmul.mubr.msk.bf16.gmra.mrb[12].mxu0 %vm157_vm0, %v3950_v32  ;;  %3406 = vmatmul.mubr.msk.bf16.gmra.mrb[12].mxu1 %vm157_vm0, %v3950_v32 }
  0x33   :  { %254 = vmatprep.mubr.bf16.mxu0 %v4404_v0  ;;  %367 = vmatprep.mubr.bf16.mxu1 %v4404_v0 }
  0x34   :  { %693 = vmatpush1.bf16.msra.mxu0 %v4575_v33  ;;  %735 = vmatprep.subr.bf16.mxu1 %v4585_v36 }
  0x35   :  { %694 = vmatprep.subr.bf16.mxu0 %v4583_v35  ;;  %736 = vmatpush1.bf16.msra.mxu1 %v4593_v38 }
  0x36   :  { %737 = vmatprep.subr.bf16.mxu1 %v4595_v39 }
  0x38   :  { %695 = vmatpush1.bf16.msra.mxu0 %v4591_v37 }
  0x39   :  { %1035 = vmatprep.subr.bf16.mxu0 %v4488_v7  ;;  %738 = vmatpush1.bf16.msra.mxu1 %v4604_v41 }
  0x3a   :  { %3399 = vmatmul.mubr.msk.bf16.gmra.mrb[16].mxu0 %vm157_vm0, %v3957_v40  ;;  %3407 = vmatmul.mubr.msk.bf16.gmra.mrb[16].mxu1 %vm157_vm0, %v3957_v40  ;;  %v4690_v40 = vrot.slane %v75_v51, %v91_v2 }
  0x3b   :  { %264 = vmatprep.mubr.bf16.mxu0 %v4404_v0  ;;  %377 = vmatprep.mubr.bf16.mxu1 %v4404_v0 }
  0x3c   :  { %1078 = vmatprep.subr.bf16.mxu1 %v4501_v11 }
  0x42   :  { %3400 = vmatmul.mubr.msk.bf16.gmra.mrb[20].mxu0 %vm157_vm0, %v3964_v42  ;;  %3408 = vmatmul.mubr.msk.bf16.gmra.mrb[20].mxu1 %vm157_vm0, %v3964_v42 }
  0x43   :  { %274 = vmatprep.mubr.bf16.mxu0 %v4404_v0  ;;  %387 = vmatprep.mubr.bf16.mxu1 %v4404_v0 }
  0x4a   :  { %3401 = vmatmul.mubr.msk.bf16.gmra.mrb[24].mxu0 %vm157_vm0, %v3971_v43  ;;  %3409 = vmatmul.mubr.msk.bf16.gmra.mrb[24].mxu1 %vm157_vm0, %v3971_v43 }
  0x4b   :  { %284 = vmatprep.mubr.bf16.mxu0 %v4404_v0  ;;  %397 = vmatprep.mubr.bf16.mxu1 %v4404_v0 }
  0x52   :  { %3402 = vmatmul.mubr.msk.bf16.gmra.mrb[28].mxu0 %vm157_vm0, %v3978_v44  ;;  %3410 = vmatmul.mubr.msk.bf16.gmra.mrb[28].mxu1 %vm157_vm0, %v3978_v44 }
  0x53   :  { %712 = vmatprep.mubr.bf16.mxu0 %v4404_v0  ;;  %755 = vmatprep.mubr.bf16.mxu1 %v4404_v0 }
  0x5a   :  { %713 = vmatmul.mubr.bf16.vlgmr.msra.gmra.mrb[0].mxu0 %v487_v47  ;;  %756 = vmatmul.mubr.bf16.vlgmr.msra.gmra.mrb[0].mxu1 %v487_v47 }
  0x5b   :  { %1036 = vmatpush1.bf16.msra.mxu0 %v4486_v6  ;;  %1079 = vmatpush1.bf16.msra.mxu1 %v4499_v10 }
  0x5c   :  { %1037 = vmatprep.subr.bf16.mxu0 %v4495_v9  ;;  %1080 = vmatprep.subr.bf16.mxu1 %v4515_v15 }
  0x5d   :  { %1067 = vmatprep.mubr.bf16.mxu0 %v4404_v0  ;;  %1110 = vmatprep.mubr.bf16.mxu1 %v4404_v0 }
  0x5f   :  { %1038 = vmatpush1.bf16.msra.mxu0 %v4491_v8  ;;  %1081 = vmatpush1.bf16.msra.mxu1 %v4518_v16 }
  0x60   :  { %1039 = vmatprep.subr.bf16.mxu0 %v4509_v13  ;;  %1082 = vmatprep.subr.bf16.mxu1 %v4525_v18 }
  0x63   :  { %1040 = vmatpush1.bf16.msra.mxu0 %v4511_v14  ;;  %1083 = vmatpush1.bf16.msra.mxu1 %v4533_v20 }
  0x64   :  { %1041 = vmatprep.subr.bf16.mxu0 %v4521_v17  ;;  %1084 = vmatprep.subr.bf16.mxu1 %v4542_v23 }
  0x67   :  { %1042 = vmatpush1.bf16.msra.mxu0 %v4529_v19  ;;  %1085 = vmatpush1.bf16.msra.mxu1 %v4548_v25 }
  0x68   :  { %1043 = vmatprep.subr.bf16.mxu0 %v4537_v21  ;;  %1086 = vmatprep.subr.bf16.mxu1 %v4556_v27 }
  0x6b   :  { %1044 = vmatpush1.bf16.msra.mxu0 %v4545_v24  ;;  %1087 = vmatpush1.bf16.msra.mxu1 %v4564_v29 }
  0x6c   :  { %1045 = vmatprep.subr.bf16.mxu0 %v4552_v26  ;;  %1088 = vmatprep.subr.bf16.mxu1 %v4570_v31 }
  0x6f   :  { %1046 = vmatpush1.bf16.msra.mxu0 %v4561_v28  ;;  %1089 = vmatpush1.bf16.msra.mxu1 %v4579_v34 }
  0x70   :  { %1047 = vmatprep.subr.bf16.mxu0 %v4568_v30  ;;  %1090 = vmatprep.subr.bf16.mxu1 %v4585_v36 }
  0x73   :  { %1048 = vmatpush1.bf16.msra.mxu0 %v4575_v33  ;;  %1091 = vmatpush1.bf16.msra.mxu1 %v4593_v38 }
  0x74   :  { %1049 = vmatprep.subr.bf16.mxu0 %v4583_v35  ;;  %1092 = vmatprep.subr.bf16.mxu1 %v4595_v39 }
  0x77   :  { %1050 = vmatpush1.bf16.msra.mxu0 %v4591_v37  ;;  %1093 = vmatpush1.bf16.msra.mxu1 %v4604_v41 }
  0x78   :  { %1391 = vmatprep.subr.bf16.mxu0 %v4488_v7  ;;  %1434 = vmatprep.subr.bf16.mxu1 %v4501_v11  ;;  %v4687_v7 = vrot.slane %v75_v51, %v87_v56 }
 0x12d   :  { %v714_v55 = vpop.f32.mrb[0].mxu0  ;;  %v757_v57 = vpop.f32.mrb[0].mxu1 }
 0x12e   :  { %v3787_v58 = vadd.f32 %v714_v55, %v4680_v53  ;;  %v716_v59 = vpop.f32.mrb[1].mxu0  ;;  %v759_v60 = vpop.f32.mrb[1].mxu1  ;;  %v3819_v42 = vadd.f32 %v757_v57, %v4687_v7 }
 0x12f   :  { %v3788_v61 = vadd.f32 %v716_v59, %v4682_v54  ;;  %v718_v62 = vpop.f32.mrb[2].mxu0  ;;  %v761_v63 = vpop.f32.mrb[2].mxu1  ;;  %v3820_v44 = vadd.f32 %v759_v60, %v4690_v40 }
 0x130   :  { %v3443_v1 = vmul.f32 -1.442695, %v3787_v58  ;;  %v3789_v3 = vadd.f32 %v718_v62, %v4680_v53  ;;  %v720_v4 = vpop.f32.mrb[3].mxu0  ;;  %v763_v5 = vpop.f32.mrb[3].mxu1  ;;  %v3821_v43 = vadd.f32 %v761_v63, %v4687_v7  ;;  %v3445_v45 = vmul.f32 -1.442695, %v3819_v42 }
 0x131   :  { %v3444_v11 = vmul.f32 -1.442695, %v3788_v61  ;;  %v3790_v12 = vadd.f32 %v720_v4, %v4682_v54  ;;  %v3822_v48 = vadd.f32 %v763_v5, %v4690_v40  ;;  %v51_v62 = vld [vmem:[%s5125_s5] sm:$0xff] }
 0x132   :  { %4051 = vpow2.f32 %v3443_v1  ;;  %v3446_v22 = vmul.f32 -1.442695, %v3789_v3  ;;  %v3448_v46 = vmul.f32 -1.442695, %v3821_v43 }
 0x133   :  { %v3447_v32 = vmul.f32 -1.442695, %v3790_v12  ;;  %4053 = vpow2.f32 %v3444_v11  ;;  %v52_v11 = vld [vmem:[%s5125_s5 + $0x8] sm:$0xff]  ;;  %s4405_s5 = smov [#allocation7]  }
 0x134   :  { %4055 = vpow2.f32 %v3446_v22  ;;  %s3345_s25 = sshll.u32 %s4405_s5, 4  ;;  %s3346_s25 = int_to_ptr.vmem [resolvable:$true] %s3345_s25 }
 0x135   :  { %4057 = vpow2.f32 %v3447_v32  ;;  %s4329_s29 = scalar_lea.vmem %s3346_s25, 256  ;;  %p4334_p9 = scmp.lt.s32.totalorder %s3346_s25, %s3346_s25 }
 0x136   :  { %4059 = vtanh.f32 %v3820_v44  ;;  %p4330_p8 = scmp.ne.s32.totalorder %s3346_s25, %s4329_s29  ;;  %p4335_p10 = scmp.lt.s32.totalorder %s4329_s29, %s4329_s29 }
 0x137   :  { %4061 = vpow2.f32 %v3445_v45 }
 0x138   :  { %4063 = vpow2.f32 %v3448_v46  ;;  %p4336_p11 = por %p4335_p10, %p4334_p9 }
 0x13a   :  { %p4337_p12 = pnand %p4336_p11, %p4330_p8 }
 0x13c   :  { %v4052_v47 = vpop.eup %4051 }
 0x13d   :  { %v792_v49 = vadd.f32 1.0, %v4052_v47  ;;  %v4054_v50 = vpop.eup %4053 }
 0x13e   :  { %v4056_v51 = vpop.eup %4055  ;;  %v793_v52 = vadd.f32 1.0, %v4054_v50 }
 0x13f   :  { %4065 = vrcp.f32 %v792_v49  ;;  %v795_v55 = vadd.f32 1.0, %v4056_v51  ;;  %v4058_v56 = vpop.eup %4057 }
 0x140   :  { %4067 = vtanh.f32 %v3822_v48  ;;  %v796_v57 = vadd.f32 1.0, %v4058_v56  ;;  %v4060_v58 = vpop.eup %4059 }
 0x141   :  { %4069 = vrcp.f32 %v793_v52  ;;  %v4062_v59 = vpop.eup %4061 }
 0x142   :  { %4071 = vrcp.f32 %v795_v55  ;;  %v4064_v60 = vpop.eup %4063  ;;  %v794_v4 = vadd.f32 1.0, %v4062_v59 }
 0x143   :  { %4073 = vrcp.f32 %v796_v57  ;;  %v797_v42 = vadd.f32 1.0, %v4064_v60 }
 0x144   :  { %4075 = vrcp.f32 %v794_v4 }
 0x149   :  { %v4066_v61 = vpop.eup %4065 }
 0x14a   :  { %v4068_v63 = vpop.eup %4067  ;;  %v814_v1 = vmul.f32 %v4066_v61, %v4060_v58 }
 0x14b   :  { %v4070_v2 = vpop.eup %4069 }
 0x14c   :  { %v4072_v3 = vpop.eup %4071  ;;  %v812_v5 = vmul.f32 %v4070_v2, %v51_v62 }
 0x14d   :  { %v815_v12 = vmul.f32 %v4072_v3, %v4068_v63  ;;  %v4074_v22 = vpop.eup %4073 }
 0x14e   :  { %v4702_v32 = vadd.f32 %v814_v1, %v812_v5  ;;  %v813_v43 = vmul.f32 %v4074_v22, %v52_v11  ;;  %v4076_v45 = vpop.eup %4075 }
 0x150   :  { %4077 = vtanh.f32 %v4702_v32  ;;  %v4705_v44 = vadd.f32 %v815_v12, %v813_v43 }
 0x151   :  { %4079 = vrcp.f32 %v797_v42 }
 0x152   :  { %4081 = vtanh.f32 %v4705_v44 }
 0x15a   :  { %v4078_v46 = vpop.eup %4077 }
 0x15b   :  { %v4080_v47 = vpop.eup %4079  ;;  %v820_v49 = vmul.f32 %v4078_v46, %v4076_v45 }
 0x15c   :  { %v4082_v48 = vpop.eup %4081 }
 0x15d   :  { %v821_v50 = vmul.f32 %v4082_v48, %v4080_v47 }
 0x15f   :  { %v822_v51 = vpack.c.bf16 %v821_v50, %v820_v49 }
 0x161   :  { %3751 = vst [vmem:[#allocation6] sm:$0xff] %v822_v51   ;;  %1068 = vmatmul.mubr.bf16.vlgmr.msra.gmra.mrb[4].mxu0 %v822_v51  ;;  %1111 = vmatmul.mubr.bf16.vlgmr.msra.gmra.mrb[4].mxu1 %v822_v51 }
 0x162   :  { %1392 = vmatpush1.bf16.msra.mxu0 %v4486_v6  ;;  %1435 = vmatpush1.bf16.msra.mxu1 %v4499_v10 }
 0x163   :  { %1393 = vmatprep.subr.bf16.mxu0 %v4495_v9  ;;  %1436 = vmatprep.subr.bf16.mxu1 %v4515_v15 }
 0x164   :  { %1423 = vmatprep.mubr.bf16.mxu0 %v4404_v0  ;;  %1466 = vmatprep.mubr.bf16.mxu1 %v4404_v0 }
 0x166   :  { %1394 = vmatpush1.bf16.msra.mxu0 %v4491_v8  ;;  %1437 = vmatpush1.bf16.msra.mxu1 %v4518_v16 }
 0x167   :  { %1395 = vmatprep.subr.bf16.mxu0 %v4509_v13  ;;  %1438 = vmatprep.subr.bf16.mxu1 %v4525_v18 }
 0x16a   :  { %1396 = vmatpush1.bf16.msra.mxu0 %v4511_v14  ;;  %1439 = vmatpush1.bf16.msra.mxu1 %v4533_v20 }
 0x16b   :  { %1397 = vmatprep.subr.bf16.mxu0 %v4521_v17  ;;  %1440 = vmatprep.subr.bf16.mxu1 %v4542_v23 }
 0x16e   :  { %1398 = vmatpush1.bf16.msra.mxu0 %v4529_v19  ;;  %1441 = vmatpush1.bf16.msra.mxu1 %v4548_v25 }
 0x16f   :  { %1399 = vmatprep.subr.bf16.mxu0 %v4537_v21  ;;  %1442 = vmatprep.subr.bf16.mxu1 %v4556_v27 }
 0x172   :  { %1400 = vmatpush1.bf16.msra.mxu0 %v4545_v24  ;;  %1443 = vmatpush1.bf16.msra.mxu1 %v4564_v29 }
 0x173   :  { %1401 = vmatprep.subr.bf16.mxu0 %v4552_v26  ;;  %1444 = vmatprep.subr.bf16.mxu1 %v4570_v31 }
 0x176   :  { %1402 = vmatpush1.bf16.msra.mxu0 %v4561_v28  ;;  %1445 = vmatpush1.bf16.msra.mxu1 %v4579_v34 }
 0x177   :  { %1403 = vmatprep.subr.bf16.mxu0 %v4568_v30  ;;  %1446 = vmatprep.subr.bf16.mxu1 %v4585_v36 }
 0x17a   :  { %1404 = vmatpush1.bf16.msra.mxu0 %v4575_v33  ;;  %1447 = vmatpush1.bf16.msra.mxu1 %v4593_v38 }
 0x17b   :  { %1405 = vmatprep.subr.bf16.mxu0 %v4583_v35  ;;  %1448 = vmatprep.subr.bf16.mxu1 %v4595_v39 }
 0x17e   :  { %1406 = vmatpush1.bf16.msra.mxu0 %v4591_v37  ;;  %1449 = vmatpush1.bf16.msra.mxu1 %v4604_v41 }
 0x234   :  { %v1069_v6 = vpop.f32.mrb[4].mxu0  ;;  %v1112_v8 = vpop.f32.mrb[4].mxu1 }
 0x235   :  { %v3791_v9 = vadd.f32 %v1069_v6, %v4680_v53  ;;  %v1071_v10 = vpop.f32.mrb[5].mxu0  ;;  %v1114_v13 = vpop.f32.mrb[5].mxu1  ;;  %v3823_v62 = vadd.f32 %v1112_v8, %v4687_v7 }
 0x236   :  { %v3792_v14 = vadd.f32 %v1071_v10, %v4682_v54  ;;  %v1073_v17 = vpop.f32.mrb[6].mxu0  ;;  %v1116_v19 = vpop.f32.mrb[6].mxu1  ;;  %v3824_v1 = vadd.f32 %v1114_v13, %v4690_v40 }
 0x237   :  { %v3483_v52 = vmul.f32 -1.442695, %v3791_v9  ;;  %v3793_v55 = vadd.f32 %v1073_v17, %v4680_v53  ;;  %v1075_v56 = vpop.f32.mrb[7].mxu0  ;;  %v1118_v57 = vpop.f32.mrb[7].mxu1  ;;  %v3825_v63 = vadd.f32 %v1116_v19, %v4687_v7  ;;  %v3485_v2 = vmul.f32 -1.442695, %v3823_v62 }
 0x238   :  { %v3484_v58 = vmul.f32 -1.442695, %v3792_v14  ;;  %v3794_v59 = vadd.f32 %v1075_v56, %v4682_v54  ;;  %v3826_v5 = vadd.f32 %v1118_v57, %v4690_v40 }
 0x239   :  { %4083 = vpow2.f32 %v3483_v52  ;;  %v3486_v60 = vmul.f32 -1.442695, %v3793_v55  ;;  %v3488_v3 = vmul.f32 -1.442695, %v3825_v63  ;;  %v4760_v63 = vld [vmem:[#allocation3 + $0xc] ss:$16 sps:$4 sm:$0xff]  }
 0x23a   :  { %v3487_v61 = vmul.f32 -1.442695, %v3794_v59  ;;  %4085 = vpow2.f32 %v3484_v58  ;;  %1790 = vmatprep.subr.bf16.mxu1 %v4760_v63 }
 0x23b   :  { %4087 = vpow2.f32 %v3486_v60 }
 0x23c   :  { %4089 = vpow2.f32 %v3487_v61 }
 0x23d   :  { %4091 = vtanh.f32 %v3824_v1  ;;  %v4762_v1 = vld [vmem:[#allocation3] ss:$16 sps:$4 sm:$0xff]  }
 0x23e   :  { %4093 = vpow2.f32 %v3485_v2  ;;  %v4764_v2 = vld [vmem:[#allocation3 + $0x8] ss:$16 sps:$4 sm:$0xff]  }
 0x23f   :  { %4095 = vpow2.f32 %v3488_v3  ;;  %v4770_v3 = vld [vmem:[#allocation3 + $0x24] ss:$16 sps:$4 sm:$0xff]  }
 0x243   :  { %v4084_v4 = vpop.eup %4083 }
 0x244   :  { %v1147_v11 = vadd.f32 1.0, %v4084_v4  ;;  %v4086_v12 = vpop.eup %4085  ;;  %v4773_v4 = vld [vmem:[#allocation3 + $0x20] ss:$16 sps:$4 sm:$0xff]  }
 0x245   :  { %v4088_v22 = vpop.eup %4087  ;;  %v1148_v42 = vadd.f32 1.0, %v4086_v12  ;;  %v4789_v12 = vld [vmem:[#allocation3 + $0x60] ss:$16 sps:$4 sm:$0xff]  }
 0x246   :  { %4097 = vrcp.f32 %v1147_v11  ;;  %v1150_v43 = vadd.f32 1.0, %v4088_v22  ;;  %v4090_v45 = vpop.eup %4089  ;;  %v4781_v11 = vld [vmem:[#allocation3 + $0x40] ss:$16 sps:$4 sm:$0xff]  }
 0x247   :  { %4099 = vtanh.f32 %v3826_v5  ;;  %v1151_v46 = vadd.f32 1.0, %v4090_v45  ;;  %v4092_v47 = vpop.eup %4091  ;;  %v4778_v5 = vld [vmem:[#allocation3 + $0x44] ss:$16 sps:$4 sm:$0xff]  }
 0x248   :  { %4101 = vrcp.f32 %v1148_v42  ;;  %v4094_v48 = vpop.eup %4093 }
 0x249   :  { %4103 = vrcp.f32 %v1150_v43  ;;  %v4096_v49 = vpop.eup %4095  ;;  %v1149_v10 = vadd.f32 1.0, %v4094_v48 }
 0x24a   :  { %4105 = vrcp.f32 %v1151_v46  ;;  %v1152_v52 = vadd.f32 1.0, %v4096_v49 }
 0x24b   :  { %4107 = vrcp.f32 %v1149_v10 }
 0x250   :  { %v4098_v50 = vpop.eup %4097 }
 0x251   :  { %v4100_v51 = vpop.eup %4099  ;;  %v1169_v6 = vmul.f32 %v4098_v50, %v4092_v47 }
 0x252   :  { %v4102_v8 = vpop.eup %4101 }
 0x253   :  { %v4104_v9 = vpop.eup %4103  ;;  %v1167_v13 = vmul.f32 %v4102_v8, %v4702_v32 }
 0x254   :  { %v1170_v14 = vmul.f32 %v4104_v9, %v4100_v51  ;;  %v4106_v17 = vpop.eup %4105 }
 0x255   :  { %v4749_v19 = vadd.f32 %v1169_v6, %v1167_v13  ;;  %v1168_v55 = vmul.f32 %v4106_v17, %v4705_v44  ;;  %v4108_v57 = vpop.eup %4107  ;;  %v4758_v44 = vld [vmem:[#allocation3 + $0x4] ss:$16 sps:$4 sm:$0xff]  }
 0x256   :  { %1747 = vmatprep.subr.bf16.mxu0 %v4758_v44 }
 0x257   :  { %4109 = vtanh.f32 %v4749_v19  ;;  %v4753_v56 = vadd.f32 %v1170_v14, %v1168_v55 }
 0x258   :  { %4111 = vrcp.f32 %v1152_v52 }
 0x259   :  { %4113 = vtanh.f32 %v4753_v56 }
 0x261   :  { %v4110_v58 = vpop.eup %4109 }
 0x262   :  { %v4112_v59 = vpop.eup %4111  ;;  %v1175_v32 = vmul.f32 %v4110_v58, %v4108_v57 }
 0x263   :  { %v4114_v60 = vpop.eup %4113 }
 0x264   :  { %v1176_v61 = vmul.f32 %v4114_v60, %v4112_v59 }
 0x266   :  { %v1177_v62 = vpack.c.bf16 %v1176_v61, %v1175_v32 }
 0x268   :  { %3756 = vst [vmem:[#allocation6 + $0x8] sm:$0xff] %v1177_v62   ;;  %1424 = vmatmul.mubr.bf16.vlgmr.msra.gmra.mrb[8].mxu0 %v1177_v62  ;;  %1467 = vmatmul.mubr.bf16.vlgmr.msra.gmra.mrb[8].mxu1 %v1177_v62 }
 0x269   :  { %1779 = vmatprep.mubr.bf16.mxu0 %v4404_v0  ;;  %1822 = vmatprep.mubr.bf16.mxu1 %v4404_v0 }
 0x26a   :  { %1748 = vmatpush1.bf16.msra.mxu0 %v4762_v1  ;;  %1791 = vmatpush1.bf16.msra.mxu1 %v4764_v2 }
 0x26b   :  { %1792 = vmatprep.subr.bf16.mxu1 %v4515_v15  ;;  %1749 = vmatprep.subr.bf16.mxu0 %v4770_v3  ;;  %v4786_v15 = vld [vmem:[#allocation3 + $0x64] ss:$16 sps:$4 sm:$0xff]  }
 0x26e   :  { %1750 = vmatpush1.bf16.msra.mxu0 %v4773_v4  ;;  %1793 = vmatpush1.bf16.msra.mxu1 %v4518_v16 }
 0x26f   :  { %1794 = vmatprep.subr.bf16.mxu1 %v4525_v18  ;;  %1751 = vmatprep.subr.bf16.mxu0 %v4778_v5 }
 0x272   :  { %1752 = vmatpush1.bf16.msra.mxu0 %v4781_v11  ;;  %1795 = vmatpush1.bf16.msra.mxu1 %v4533_v20 }
 0x273   :  { %1796 = vmatprep.subr.bf16.mxu1 %v4542_v23  ;;  %1753 = vmatprep.subr.bf16.mxu0 %v4786_v15 }
 0x276   :  { %1754 = vmatpush1.bf16.msra.mxu0 %v4789_v12  ;;  %1797 = vmatpush1.bf16.msra.mxu1 %v4548_v25 }
 0x277   :  { %1755 = vmatprep.subr.bf16.mxu0 %v4537_v21  ;;  %1798 = vmatprep.subr.bf16.mxu1 %v4556_v27 }
 0x27a   :  { %1756 = vmatpush1.bf16.msra.mxu0 %v4545_v24  ;;  %1799 = vmatpush1.bf16.msra.mxu1 %v4564_v29 }
 0x27b   :  { %1757 = vmatprep.subr.bf16.mxu0 %v4552_v26  ;;  %1800 = vmatprep.subr.bf16.mxu1 %v4570_v31 }
 0x27e   :  { %1758 = vmatpush1.bf16.msra.mxu0 %v4561_v28  ;;  %1801 = vmatpush1.bf16.msra.mxu1 %v4579_v34 }
 0x27f   :  { %1759 = vmatprep.subr.bf16.mxu0 %v4568_v30  ;;  %1802 = vmatprep.subr.bf16.mxu1 %v4585_v36 }
 0x282   :  { %1760 = vmatpush1.bf16.msra.mxu0 %v4575_v33  ;;  %1803 = vmatpush1.bf16.msra.mxu1 %v4593_v38 }
 0x283   :  { %1761 = vmatprep.subr.bf16.mxu0 %v4583_v35  ;;  %1804 = vmatprep.subr.bf16.mxu1 %v4595_v39 }
 0x286   :  { %1762 = vmatpush1.bf16.msra.mxu0 %v4591_v37  ;;  %1805 = vmatpush1.bf16.msra.mxu1 %v4604_v41 }
 0x287   :  { %2103 = vmatprep.subr.bf16.mxu0 %v4758_v44  ;;  %2146 = vmatprep.subr.bf16.mxu1 %v4760_v63 }
 0x33b   :  { %v1425_v16 = vpop.f32.mrb[8].mxu0  ;;  %v1468_v18 = vpop.f32.mrb[8].mxu1 }
 0x33c   :  { %v3795_v20 = vadd.f32 %v1425_v16, %v4680_v53  ;;  %v1427_v21 = vpop.f32.mrb[9].mxu0  ;;  %v1470_v23 = vpop.f32.mrb[9].mxu1  ;;  %v3827_v36 = vadd.f32 %v1468_v18, %v4687_v7 }
 0x33d   :  { %v3796_v24 = vadd.f32 %v1427_v21, %v4682_v54  ;;  %v1429_v25 = vpop.f32.mrb[10].mxu0  ;;  %v1472_v26 = vpop.f32.mrb[10].mxu1  ;;  %v3828_v38 = vadd.f32 %v1470_v23, %v4690_v40 }
 0x33e   :  { %v3523_v27 = vmul.f32 -1.442695, %v3795_v20  ;;  %v3797_v28 = vadd.f32 %v1429_v25, %v4680_v53  ;;  %v1431_v29 = vpop.f32.mrb[11].mxu0  ;;  %v1474_v30 = vpop.f32.mrb[11].mxu1  ;;  %v3829_v37 = vadd.f32 %v1472_v26, %v4687_v7  ;;  %v3525_v39 = vmul.f32 -1.442695, %v3827_v36 }
 0x33f   :  { %v3524_v31 = vmul.f32 -1.442695, %v3796_v24  ;;  %v3798_v33 = vadd.f32 %v1431_v29, %v4682_v54  ;;  %v3830_v42 = vadd.f32 %v1474_v30, %v4690_v40  ;;  %v4840_v24 = vld [vmem:[#allocation3 + $0x28] ss:$16 sps:$4 sm:$0xff]   ;;  %v4844_v25 = vld [vmem:[#allocation3 + $0x4c] ss:$16 sps:$4 sm:$0xff]  }
 0x340   :  { %4115 = vpow2.f32 %v3523_v27  ;;  %v3526_v34 = vmul.f32 -1.442695, %v3797_v28  ;;  %v3528_v41 = vmul.f32 -1.442695, %v3829_v37  ;;  %v4846_v26 = vld [vmem:[#allocation3 + $0x48] ss:$16 sps:$4 sm:$0xff]  }
 0x341   :  { %v3527_v35 = vmul.f32 -1.442695, %v3798_v33  ;;  %4117 = vpow2.f32 %v3524_v31  ;;  %v4850_v27 = vld [vmem:[#allocation3 + $0x6c] ss:$16 sps:$4 sm:$0xff]   ;;  %v4852_v28 = vld [vmem:[#allocation3 + $0x68] ss:$16 sps:$4 sm:$0xff]  }
 0x342   :  { %4119 = vpow2.f32 %v3526_v34  ;;  %v4856_v29 = vld [vmem:[#allocation3 + $0x80] ss:$16 sps:$4 sm:$0xff]   ;;  %v4858_v30 = vld [vmem:[#allocation3 + $0x84] ss:$16 sps:$4 sm:$0xff]   ;;  %v4860_v31 = vld [vmem:[#allocation3 + $0x88] ss:$16 sps:$4 sm:$0xff]  }
 0x343   :  { %4121 = vpow2.f32 %v3527_v35  ;;  %v4862_v33 = vld [vmem:[#allocation3 + $0x8c] ss:$16 sps:$4 sm:$0xff]   ;;  %v4864_v34 = vld [vmem:[#allocation3 + $0xa4] ss:$16 sps:$4 sm:$0xff]   ;;  %v4871_v36 = vld [vmem:[#allocation3 + $0xa0] ss:$16 sps:$4 sm:$0xff]  }
 0x344   :  { %4123 = vtanh.f32 %v3828_v38  ;;  %v4867_v35 = vld [vmem:[#allocation3 + $0xac] ss:$16 sps:$4 sm:$0xff]   ;;  %v4875_v37 = vld [vmem:[#allocation3 + $0xa8] ss:$16 sps:$4 sm:$0xff]   ;;  %v4877_v38 = vld [vmem:[#allocation3 + $0xc4] ss:$16 sps:$4 sm:$0xff]  }
 0x345   :  { %4125 = vpow2.f32 %v3525_v39  ;;  %v4880_v39 = vld [vmem:[#allocation3 + $0xcc] ss:$16 sps:$4 sm:$0xff]  }
 0x346   :  { %4127 = vpow2.f32 %v3528_v41  ;;  %v4883_v41 = vld [vmem:[#allocation3 + $0xc0] ss:$16 sps:$4 sm:$0xff]  }
 0x34a   :  { %v4116_v22 = vpop.eup %4115 }
 0x34b   :  { %v1503_v43 = vadd.f32 1.0, %v4116_v22  ;;  %v4118_v45 = vpop.eup %4117  ;;  %v4887_v22 = vld [vmem:[#allocation3 + $0xc8] ss:$16 sps:$4 sm:$0xff]  }
 0x34c   :  { %v4120_v46 = vpop.eup %4119  ;;  %v1504_v47 = vadd.f32 1.0, %v4118_v45  ;;  %v4895_v45 = vld [vmem:[#allocation3 + $0xe0] ss:$16 sps:$4 sm:$0xff]  }
 0x34d   :  { %4129 = vrcp.f32 %v1503_v43  ;;  %v1506_v48 = vadd.f32 1.0, %v4120_v46  ;;  %v4122_v49 = vpop.eup %4121  ;;  %v4892_v43 = vld [vmem:[#allocation3 + $0xec] ss:$16 sps:$4 sm:$0xff]   ;;  %v4899_v46 = vld [vmem:[#allocation3 + $0xe8] ss:$16 sps:$4 sm:$0xff]  }
 0x34e   :  { %4131 = vtanh.f32 %v3830_v42  ;;  %v1507_v50 = vadd.f32 1.0, %v4122_v49  ;;  %v4124_v51 = vpop.eup %4123  ;;  %v4889_v42 = vld [vmem:[#allocation3 + $0xe4] ss:$16 sps:$4 sm:$0xff]  }
 0x34f   :  { %4133 = vrcp.f32 %v1504_v47  ;;  %v4126_v6 = vpop.eup %4125 }
 0x350   :  { %4135 = vrcp.f32 %v1506_v48  ;;  %v4128_v8 = vpop.eup %4127  ;;  %v1505_v52 = vadd.f32 1.0, %v4126_v6 }
 0x351   :  { %4137 = vrcp.f32 %v1507_v50  ;;  %v1508_v60 = vadd.f32 1.0, %v4128_v8 }
 0x352   :  { %4139 = vrcp.f32 %v1505_v52 }
 0x357   :  { %v4130_v9 = vpop.eup %4129 }
 0x358   :  { %v4132_v10 = vpop.eup %4131  ;;  %v1525_v13 = vmul.f32 %v4130_v9, %v4124_v51 }
 0x359   :  { %v4134_v14 = vpop.eup %4133 }
 0x35a   :  { %v4136_v17 = vpop.eup %4135  ;;  %v1523_v55 = vmul.f32 %v4134_v14, %v4749_v19 }
 0x35b   :  { %v1526_v57 = vmul.f32 %v4136_v17, %v4132_v10  ;;  %v4138_v58 = vpop.eup %4137 }
 0x35c   :  { %v4821_v59 = vadd.f32 %v1525_v13, %v1523_v55  ;;  %v1524_v32 = vmul.f32 %v4138_v58, %v4753_v56  ;;  %v4140_v62 = vpop.eup %4139  ;;  %v4838_v56 = vld [vmem:[#allocation3 + $0x2c] ss:$16 sps:$4 sm:$0xff]  }
 0x35e   :  { %4141 = vtanh.f32 %v4821_v59  ;;  %v4825_v61 = vadd.f32 %v1526_v57, %v1524_v32 }
 0x35f   :  { %4143 = vrcp.f32 %v1508_v60 }
 0x360   :  { %4145 = vtanh.f32 %v4825_v61 }
 0x368   :  { %v4142_v16 = vpop.eup %4141 }
 0x369   :  { %v4144_v18 = vpop.eup %4143  ;;  %v1531_v19 = vmul.f32 %v4142_v16, %v4140_v62 }
 0x36a   :  { %v4146_v20 = vpop.eup %4145 }
 0x36b   :  { %v1532_v21 = vmul.f32 %v4146_v20, %v4144_v18 }
 0x36d   :  { %v1533_v23 = vpack.c.bf16 %v1532_v21, %v1531_v19 }
 0x36f   :  { %3761 = vst [vmem:[#allocation6 + $0x10] sm:$0xff] %v1533_v23   ;;  %1780 = vmatmul.mubr.bf16.vlgmr.msra.gmra.mrb[12].mxu0 %v1533_v23  ;;  %1823 = vmatmul.mubr.bf16.vlgmr.msra.gmra.mrb[12].mxu1 %v1533_v23 }
 0x370   :  { %2104 = vmatpush1.bf16.msra.mxu0 %v4762_v1  ;;  %2147 = vmatpush1.bf16.msra.mxu1 %v4764_v2 }
 0x371   :  { %2105 = vmatprep.subr.bf16.mxu0 %v4770_v3  ;;  %2135 = vmatprep.mubr.bf16.mxu0 %v4404_v0 }
 0x372   :  { %2178 = vmatprep.mubr.bf16.mxu1 %v4404_v0  ;;  %2148 = vmatprep.subr.bf16.mxu1 %v4838_v56 }
 0x374   :  { %2106 = vmatpush1.bf16.msra.mxu0 %v4773_v4  ;;  %2149 = vmatpush1.bf16.msra.mxu1 %v4840_v24 }
 0x375   :  { %2107 = vmatprep.subr.bf16.mxu0 %v4778_v5  ;;  %2150 = vmatprep.subr.bf16.mxu1 %v4844_v25 }
 0x378   :  { %2108 = vmatpush1.bf16.msra.mxu0 %v4781_v11  ;;  %2151 = vmatpush1.bf16.msra.mxu1 %v4846_v26 }
 0x379   :  { %2109 = vmatprep.subr.bf16.mxu0 %v4786_v15  ;;  %2152 = vmatprep.subr.bf16.mxu1 %v4850_v27 }
 0x37c   :  { %2110 = vmatpush1.bf16.msra.mxu0 %v4789_v12  ;;  %2153 = vmatpush1.bf16.msra.mxu1 %v4852_v28 }
 0x37d   :  { %2111 = vmatprep.subr.bf16.mxu0 %v4858_v30  ;;  %2154 = vmatprep.subr.bf16.mxu1 %v4862_v33 }
 0x380   :  { %2112 = vmatpush1.bf16.msra.mxu0 %v4856_v29  ;;  %2155 = vmatpush1.bf16.msra.mxu1 %v4860_v31 }
 0x381   :  { %2113 = vmatprep.subr.bf16.mxu0 %v4864_v34  ;;  %2156 = vmatprep.subr.bf16.mxu1 %v4867_v35 }
 0x384   :  { %2114 = vmatpush1.bf16.msra.mxu0 %v4871_v36  ;;  %2157 = vmatpush1.bf16.msra.mxu1 %v4875_v37 }
 0x385   :  { %2115 = vmatprep.subr.bf16.mxu0 %v4877_v38  ;;  %2158 = vmatprep.subr.bf16.mxu1 %v4880_v39 }
 0x388   :  { %2116 = vmatpush1.bf16.msra.mxu0 %v4883_v41  ;;  %2159 = vmatpush1.bf16.msra.mxu1 %v4887_v22 }
 0x389   :  { %2117 = vmatprep.subr.bf16.mxu0 %v4889_v42  ;;  %2160 = vmatprep.subr.bf16.mxu1 %v4892_v43 }
 0x38c   :  { %2118 = vmatpush1.bf16.msra.mxu0 %v4895_v45  ;;  %2161 = vmatpush1.bf16.msra.mxu1 %v4899_v46 }
 0x38d   :  { %2459 = vmatprep.subr.bf16.mxu0 %v4758_v44  ;;  %2502 = vmatprep.subr.bf16.mxu1 %v4760_v63 }
 0x442   :  { %v1781_v47 = vpop.f32.mrb[12].mxu0  ;;  %v1824_v48 = vpop.f32.mrb[12].mxu1 }
 0x443   :  { %v3799_v49 = vadd.f32 %v1781_v47, %v4680_v53  ;;  %v1783_v50 = vpop.f32.mrb[13].mxu0  ;;  %v1826_v51 = vpop.f32.mrb[13].mxu1  ;;  %v3831_v60 = vadd.f32 %v1824_v48, %v4687_v7 }
 0x444   :  { %v3800_v6 = vadd.f32 %v1783_v50, %v4682_v54  ;;  %v1785_v8 = vpop.f32.mrb[14].mxu0  ;;  %v1828_v9 = vpop.f32.mrb[14].mxu1  ;;  %v3832_v62 = vadd.f32 %v1826_v51, %v4690_v40 }
 0x445   :  { %v3563_v10 = vmul.f32 -1.442695, %v3799_v49  ;;  %v3801_v13 = vadd.f32 %v1785_v8, %v4680_v53  ;;  %v1787_v14 = vpop.f32.mrb[15].mxu0  ;;  %v1830_v17 = vpop.f32.mrb[15].mxu1  ;;  %v3833_v32 = vadd.f32 %v1828_v9, %v4687_v7  ;;  %v3565_v16 = vmul.f32 -1.442695, %v3831_v60 }
 0x446   :  { %v3564_v52 = vmul.f32 -1.442695, %v3800_v6  ;;  %v3802_v55 = vadd.f32 %v1787_v14, %v4682_v54  ;;  %v3834_v19 = vadd.f32 %v1830_v17, %v4690_v40 }
 0x447   :  { %4147 = vpow2.f32 %v3563_v10  ;;  %v3566_v57 = vmul.f32 -1.442695, %v3801_v13  ;;  %v3568_v18 = vmul.f32 -1.442695, %v3833_v32 }
 0x448   :  { %v3567_v58 = vmul.f32 -1.442695, %v3802_v55  ;;  %4149 = vpow2.f32 %v3564_v52 }
 0x449   :  { %4151 = vpow2.f32 %v3566_v57 }
 0x44a   :  { %4153 = vpow2.f32 %v3567_v58 }
 0x44b   :  { %4155 = vtanh.f32 %v3832_v62 }
 0x44c   :  { %4157 = vpow2.f32 %v3565_v16 }
 0x44d   :  { %4159 = vpow2.f32 %v3568_v18 }
 0x451   :  { %v4148_v20 = vpop.eup %4147 }
 0x452   :  { %v1859_v21 = vadd.f32 1.0, %v4148_v20  ;;  %v4150_v23 = vpop.eup %4149 }
 0x453   :  { %v4152_v47 = vpop.eup %4151  ;;  %v1860_v49 = vadd.f32 1.0, %v4150_v23 }
 0x454   :  { %4161 = vrcp.f32 %v1859_v21  ;;  %v1862_v48 = vadd.f32 1.0, %v4152_v47  ;;  %v4154_v50 = vpop.eup %4153 }
 0x455   :  { %4163 = vtanh.f32 %v3834_v19  ;;  %v1863_v6 = vadd.f32 1.0, %v4154_v50  ;;  %v4156_v51 = vpop.eup %4155 }
 0x456   :  { %4165 = vrcp.f32 %v1860_v49  ;;  %v4158_v8 = vpop.eup %4157 }
 0x457   :  { %4167 = vrcp.f32 %v1862_v48  ;;  %v4160_v9 = vpop.eup %4159  ;;  %v1861_v55 = vadd.f32 1.0, %v4158_v8 }
 0x458   :  { %4169 = vrcp.f32 %v1863_v6  ;;  %v1864_v62 = vadd.f32 1.0, %v4160_v9 }
 0x459   :  { %4171 = vrcp.f32 %v1861_v55 }
 0x45e   :  { %v4162_v10 = vpop.eup %4161 }
 0x45f   :  { %v4164_v13 = vpop.eup %4163  ;;  %v1881_v14 = vmul.f32 %v4162_v10, %v4156_v51 }
 0x460   :  { %v4166_v17 = vpop.eup %4165 }
 0x461   :  { %v4168_v52 = vpop.eup %4167  ;;  %v1879_v57 = vmul.f32 %v4166_v17, %v4821_v59 }
 0x462   :  { %v1882_v58 = vmul.f32 %v4168_v52, %v4164_v13  ;;  %v4170_v60 = vpop.eup %4169 }
 0x463   :  { %v4915_v32 = vadd.f32 %v1881_v14, %v1879_v57  ;;  %v1880_v16 = vmul.f32 %v4170_v60, %v4825_v61  ;;  %v4172_v20 = vpop.eup %4171 }
 0x465   :  { %4173 = vtanh.f32 %v4915_v32  ;;  %v4919_v18 = vadd.f32 %v1882_v58, %v1880_v16 }
 0x466   :  { %4175 = vrcp.f32 %v1864_v62 }
 0x467   :  { %4177 = vtanh.f32 %v4919_v18 }
 0x46f   :  { %v4174_v19 = vpop.eup %4173 }
 0x470   :  { %v4176_v21 = vpop.eup %4175  ;;  %v1887_v59 = vmul.f32 %v4174_v19, %v4172_v20 }
 0x471   :  { %v4178_v23 = vpop.eup %4177 }
 0x472   :  { %v1888_v47 = vmul.f32 %v4178_v23, %v4176_v21 }
 0x474   :  { %v1889_v49 = vpack.c.bf16 %v1888_v47, %v1887_v59 }
 0x476   :  { %3766 = vst [vmem:[#allocation6 + $0x18] sm:$0xff] %v1889_v49   ;;  %2136 = vmatmul.mubr.bf16.vlgmr.msra.gmra.mrb[16].mxu0 %v1889_v49  ;;  %2179 = vmatmul.mubr.bf16.vlgmr.msra.gmra.mrb[16].mxu1 %v1889_v49 }
 0x477   :  { %2460 = vmatpush1.bf16.msra.mxu0 %v4762_v1  ;;  %2503 = vmatpush1.bf16.msra.mxu1 %v4764_v2 }
 0x478   :  { %2461 = vmatprep.subr.bf16.mxu0 %v4770_v3  ;;  %2504 = vmatprep.subr.bf16.mxu1 %v4838_v56 }
 0x479   :  { %2491 = vmatprep.mubr.bf16.mxu0 %v4404_v0  ;;  %2534 = vmatprep.mubr.bf16.mxu1 %v4404_v0 }
 0x47b   :  { %2462 = vmatpush1.bf16.msra.mxu0 %v4773_v4  ;;  %2505 = vmatpush1.bf16.msra.mxu1 %v4840_v24 }
 0x47c   :  { %2463 = vmatprep.subr.bf16.mxu0 %v4778_v5  ;;  %2506 = vmatprep.subr.bf16.mxu1 %v4844_v25 }
 0x47f   :  { %2464 = vmatpush1.bf16.msra.mxu0 %v4781_v11  ;;  %2507 = vmatpush1.bf16.msra.mxu1 %v4846_v26 }
 0x480   :  { %2465 = vmatprep.subr.bf16.mxu0 %v4786_v15  ;;  %2508 = vmatprep.subr.bf16.mxu1 %v4850_v27 }
 0x483   :  { %2466 = vmatpush1.bf16.msra.mxu0 %v4789_v12  ;;  %2509 = vmatpush1.bf16.msra.mxu1 %v4852_v28 }
 0x484   :  { %2467 = vmatprep.subr.bf16.mxu0 %v4858_v30  ;;  %2510 = vmatprep.subr.bf16.mxu1 %v4862_v33 }
 0x487   :  { %2468 = vmatpush1.bf16.msra.mxu0 %v4856_v29  ;;  %2511 = vmatpush1.bf16.msra.mxu1 %v4860_v31 }
 0x488   :  { %2469 = vmatprep.subr.bf16.mxu0 %v4864_v34  ;;  %2512 = vmatprep.subr.bf16.mxu1 %v4867_v35 }
 0x48b   :  { %2470 = vmatpush1.bf16.msra.mxu0 %v4871_v36  ;;  %2513 = vmatpush1.bf16.msra.mxu1 %v4875_v37 }
 0x48c   :  { %2471 = vmatprep.subr.bf16.mxu0 %v4877_v38  ;;  %2514 = vmatprep.subr.bf16.mxu1 %v4880_v39 }
 0x48f   :  { %2472 = vmatpush1.bf16.msra.mxu0 %v4883_v41  ;;  %2515 = vmatpush1.bf16.msra.mxu1 %v4887_v22 }
 0x490   :  { %2473 = vmatprep.subr.bf16.mxu0 %v4889_v42  ;;  %2516 = vmatprep.subr.bf16.mxu1 %v4892_v43 }
 0x493   :  { %2474 = vmatpush1.bf16.msra.mxu0 %v4895_v45  ;;  %2517 = vmatpush1.bf16.msra.mxu1 %v4899_v46 }
 0x494   :  { %2815 = vmatprep.subr.bf16.mxu0 %v4758_v44  ;;  %2858 = vmatprep.subr.bf16.mxu1 %v4760_v63 }
 0x549   :  { %v2137_v61 = vpop.f32.mrb[16].mxu0  ;;  %v2180_v48 = vpop.f32.mrb[16].mxu1 }
 0x54a   :  { %v3803_v50 = vadd.f32 %v2137_v61, %v4680_v53  ;;  %v2139_v6 = vpop.f32.mrb[17].mxu0  ;;  %v2182_v51 = vpop.f32.mrb[17].mxu1  ;;  %v3835_v58 = vadd.f32 %v2180_v48, %v4687_v7 }
 0x54b   :  { %v3804_v8 = vadd.f32 %v2139_v6, %v4682_v54  ;;  %v2141_v9 = vpop.f32.mrb[18].mxu0  ;;  %v2184_v10 = vpop.f32.mrb[18].mxu1  ;;  %v3836_v62 = vadd.f32 %v2182_v51, %v4690_v40 }
 0x54c   :  { %v3603_v13 = vmul.f32 -1.442695, %v3803_v50  ;;  %v3805_v14 = vadd.f32 %v2141_v9, %v4680_v53  ;;  %v2143_v17 = vpop.f32.mrb[19].mxu0  ;;  %v2186_v52 = vpop.f32.mrb[19].mxu1  ;;  %v3837_v60 = vadd.f32 %v2184_v10, %v4687_v7  ;;  %v3605_v16 = vmul.f32 -1.442695, %v3835_v58 }
 0x54d   :  { %v3604_v55 = vmul.f32 -1.442695, %v3804_v8  ;;  %v3806_v44 = vadd.f32 %v2143_v17, %v4682_v54  ;;  %v3838_v21 = vadd.f32 %v2186_v52, %v4690_v40 }
 0x54e   :  { %4179 = vpow2.f32 %v3603_v13  ;;  %v3606_v63 = vmul.f32 -1.442695, %v3805_v14  ;;  %v3608_v20 = vmul.f32 -1.442695, %v3837_v60 }
 0x54f   :  { %v3607_v57 = vmul.f32 -1.442695, %v3806_v44  ;;  %4181 = vpow2.f32 %v3604_v55 }
 0x550   :  { %4183 = vpow2.f32 %v3606_v63 }
 0x551   :  { %4185 = vpow2.f32 %v3607_v57 }
 0x552   :  { %4187 = vtanh.f32 %v3836_v62 }
 0x553   :  { %4189 = vpow2.f32 %v3605_v16 }
 0x554   :  { %4191 = vpow2.f32 %v3608_v20 }
 0x558   :  { %v4180_v19 = vpop.eup %4179 }
 0x559   :  { %v2215_v23 = vadd.f32 1.0, %v4180_v19  ;;  %v4182_v59 = vpop.eup %4181 }
 0x55a   :  { %v4184_v47 = vpop.eup %4183  ;;  %v2216_v49 = vadd.f32 1.0, %v4182_v59 }
 0x55b   :  { %4193 = vrcp.f32 %v2215_v23  ;;  %v2218_v61 = vadd.f32 1.0, %v4184_v47  ;;  %v4186_v48 = vpop.eup %4185 }
 0x55c   :  { %4195 = vtanh.f32 %v3838_v21  ;;  %v2219_v50 = vadd.f32 1.0, %v4186_v48  ;;  %v4188_v6 = vpop.eup %4187 }
 0x55d   :  { %4197 = vrcp.f32 %v2216_v49  ;;  %v4190_v51 = vpop.eup %4189 }
 0x55e   :  { %4199 = vrcp.f32 %v2218_v61  ;;  %v4192_v8 = vpop.eup %4191  ;;  %v2217_v52 = vadd.f32 1.0, %v4190_v51 }
 0x55f   :  { %4201 = vrcp.f32 %v2219_v50  ;;  %v2220_v58 = vadd.f32 1.0, %v4192_v8 }
 0x560   :  { %4203 = vrcp.f32 %v2217_v52 }
 0x565   :  { %v4194_v9 = vpop.eup %4193 }
 0x566   :  { %v4196_v10 = vpop.eup %4195  ;;  %v2237_v13 = vmul.f32 %v4194_v9, %v4188_v6 }
 0x567   :  { %v4198_v14 = vpop.eup %4197 }
 0x568   :  { %v4200_v17 = vpop.eup %4199  ;;  %v2235_v55 = vmul.f32 %v4198_v14, %v4915_v32 }
 0x569   :  { %v2238_v44 = vmul.f32 %v4200_v17, %v4196_v10  ;;  %v4202_v63 = vpop.eup %4201 }
 0x56a   :  { %v4965_v57 = vadd.f32 %v2237_v13, %v2235_v55  ;;  %v2236_v60 = vmul.f32 %v4202_v63, %v4919_v18  ;;  %v4204_v16 = vpop.eup %4203 }
 0x56c   :  { %4205 = vtanh.f32 %v4965_v57  ;;  %v4969_v62 = vadd.f32 %v2238_v44, %v2236_v60 }
 0x56d   :  { %4207 = vrcp.f32 %v2220_v58 }
 0x56e   :  { %4209 = vtanh.f32 %v4969_v62 }
 0x576   :  { %v4206_v20 = vpop.eup %4205 }
 0x577   :  { %v4208_v19 = vpop.eup %4207  ;;  %v2243_v32 = vmul.f32 %v4206_v20, %v4204_v16 }
 0x578   :  { %v4210_v21 = vpop.eup %4209 }
 0x579   :  { %v2244_v23 = vmul.f32 %v4210_v21, %v4208_v19 }
 0x57b   :  { %v2245_v59 = vpack.c.bf16 %v2244_v23, %v2243_v32 }
 0x57d   :  { %3771 = vst [vmem:[#allocation6 + $0x20] sm:$0xff] %v2245_v59   ;;  %2492 = vmatmul.mubr.bf16.vlgmr.msra.gmra.mrb[20].mxu0 %v2245_v59  ;;  %2535 = vmatmul.mubr.bf16.vlgmr.msra.gmra.mrb[20].mxu1 %v2245_v59 }
 0x57e   :  { %2816 = vmatpush1.bf16.msra.mxu0 %v4762_v1  ;;  %2859 = vmatpush1.bf16.msra.mxu1 %v4764_v2 }
 0x57f   :  { %2817 = vmatprep.subr.bf16.mxu0 %v4770_v3  ;;  %2860 = vmatprep.subr.bf16.mxu1 %v4838_v56 }
 0x580   :  { %2847 = vmatprep.mubr.bf16.mxu0 %v4404_v0  ;;  %2890 = vmatprep.mubr.bf16.mxu1 %v4404_v0 }
 0x582   :  { %2818 = vmatpush1.bf16.msra.mxu0 %v4773_v4  ;;  %2861 = vmatpush1.bf16.msra.mxu1 %v4840_v24 }
 0x583   :  { %2819 = vmatprep.subr.bf16.mxu0 %v4778_v5  ;;  %2862 = vmatprep.subr.bf16.mxu1 %v4844_v25 }
 0x586   :  { %2820 = vmatpush1.bf16.msra.mxu0 %v4781_v11  ;;  %2863 = vmatpush1.bf16.msra.mxu1 %v4846_v26 }
 0x587   :  { %2821 = vmatprep.subr.bf16.mxu0 %v4786_v15  ;;  %2864 = vmatprep.subr.bf16.mxu1 %v4850_v27 }
 0x58a   :  { %2822 = vmatpush1.bf16.msra.mxu0 %v4789_v12  ;;  %2865 = vmatpush1.bf16.msra.mxu1 %v4852_v28 }
 0x58b   :  { %2823 = vmatprep.subr.bf16.mxu0 %v4858_v30  ;;  %2866 = vmatprep.subr.bf16.mxu1 %v4862_v33 }
 0x58e   :  { %2824 = vmatpush1.bf16.msra.mxu0 %v4856_v29  ;;  %2867 = vmatpush1.bf16.msra.mxu1 %v4860_v31 }
 0x58f   :  { %2825 = vmatprep.subr.bf16.mxu0 %v4864_v34  ;;  %2868 = vmatprep.subr.bf16.mxu1 %v4867_v35 }
 0x592   :  { %2826 = vmatpush1.bf16.msra.mxu0 %v4871_v36  ;;  %2869 = vmatpush1.bf16.msra.mxu1 %v4875_v37 }
 0x593   :  { %2827 = vmatprep.subr.bf16.mxu0 %v4877_v38  ;;  %2870 = vmatprep.subr.bf16.mxu1 %v4880_v39 }
 0x596   :  { %2828 = vmatpush1.bf16.msra.mxu0 %v4883_v41  ;;  %2871 = vmatpush1.bf16.msra.mxu1 %v4887_v22 }
 0x597   :  { %2829 = vmatprep.subr.bf16.mxu0 %v4889_v42  ;;  %2872 = vmatprep.subr.bf16.mxu1 %v4892_v43 }
 0x59a   :  { %2830 = vmatpush1.bf16.msra.mxu0 %v4895_v45  ;;  %2873 = vmatpush1.bf16.msra.mxu1 %v4899_v46 }
 0x650   :  { %v2493_v1 = vpop.f32.mrb[20].mxu0  ;;  %v2536_v2 = vpop.f32.mrb[20].mxu1 }
 0x651   :  { %v3807_v3 = vadd.f32 %v2493_v1, %v4680_v53  ;;  %v2495_v4 = vpop.f32.mrb[21].mxu0  ;;  %v2538_v5 = vpop.f32.mrb[21].mxu1  ;;  %v3839_v8 = vadd.f32 %v2536_v2, %v4687_v7 }
 0x652   :  { %v3808_v11 = vadd.f32 %v2495_v4, %v4682_v54  ;;  %v2497_v15 = vpop.f32.mrb[22].mxu0  ;;  %v2540_v12 = vpop.f32.mrb[22].mxu1  ;;  %v3840_v10 = vadd.f32 %v2538_v5, %v4690_v40 }
 0x653   :  { %v3643_v18 = vmul.f32 -1.442695, %v3807_v3  ;;  %v3809_v47 = vadd.f32 %v2497_v15, %v4680_v53  ;;  %v2499_v49 = vpop.f32.mrb[23].mxu0  ;;  %v2542_v61 = vpop.f32.mrb[23].mxu1  ;;  %v3841_v9 = vadd.f32 %v2540_v12, %v4687_v7  ;;  %v3645_v13 = vmul.f32 -1.442695, %v3839_v8 }
 0x654   :  { %v3644_v48 = vmul.f32 -1.442695, %v3808_v11  ;;  %v3810_v50 = vadd.f32 %v2499_v49, %v4682_v54  ;;  %v3842_v52 = vadd.f32 %v2542_v61, %v4690_v40 }
 0x655   :  { %4211 = vpow2.f32 %v3643_v18  ;;  %v3646_v6 = vmul.f32 -1.442695, %v3809_v47  ;;  %v3648_v14 = vmul.f32 -1.442695, %v3841_v9  ;;  %v4041_v9 = vld [vmem:[#allocation3 + $0xc] ss:$16 sps:$4 sm:$0xff]  }
 0x656   :  { %v3647_v51 = vmul.f32 -1.442695, %v3810_v50  ;;  %4213 = vpow2.f32 %v3644_v48  ;;  %3214 = vmatprep.subr.bf16.mxu1 %v4041_v9 }
 0x657   :  { %4215 = vpow2.f32 %v3646_v6 }
 0x658   :  { %4217 = vpow2.f32 %v3647_v51 }
 0x659   :  { %4219 = vtanh.f32 %v3840_v10  ;;  %v4036_v10 = vld [vmem:[#allocation3] ss:$16 sps:$4 sm:$0xff]  }
 0x65a   :  { %4221 = vpow2.f32 %v3645_v13  ;;  %v4039_v13 = vld [vmem:[#allocation3 + $0x8] ss:$16 sps:$4 sm:$0xff]  }
 0x65b   :  { %4223 = vpow2.f32 %v3648_v14  ;;  %v4044_v14 = vld [vmem:[#allocation3 + $0x24] ss:$16 sps:$4 sm:$0xff]  }
 0x65f   :  { %v4212_v17 = vpop.eup %4211 }
 0x660   :  { %v2571_v55 = vadd.f32 1.0, %v4212_v17  ;;  %v4214_v44 = vpop.eup %4213  ;;  %v4042_v17 = vld [vmem:[#allocation3 + $0x20] ss:$16 sps:$4 sm:$0xff]  }
 0x661   :  { %v4216_v63 = vpop.eup %4215  ;;  %v2572_v58 = vadd.f32 1.0, %v4214_v44  ;;  %v4048_v44 = vld [vmem:[#allocation3 + $0x60] ss:$16 sps:$4 sm:$0xff]  }
 0x662   :  { %4225 = vrcp.f32 %v2571_v55  ;;  %v2574_v60 = vadd.f32 1.0, %v4216_v63  ;;  %v4218_v16 = vpop.eup %4217  ;;  %v4050_v55 = vld [vmem:[#allocation3 + $0x64] ss:$16 sps:$4 sm:$0xff]  }
 0x663   :  { %4227 = vtanh.f32 %v3842_v52  ;;  %v2575_v20 = vadd.f32 1.0, %v4218_v16  ;;  %v4220_v19 = vpop.eup %4219  ;;  %v4047_v52 = vld [vmem:[#allocation3 + $0x44] ss:$16 sps:$4 sm:$0xff]  }
 0x664   :  { %4229 = vrcp.f32 %v2572_v58  ;;  %v4222_v21 = vpop.eup %4221 }
 0x665   :  { %4231 = vrcp.f32 %v2574_v60  ;;  %v4224_v32 = vpop.eup %4223  ;;  %v2573_v4 = vadd.f32 1.0, %v4222_v21 }
 0x666   :  { %4233 = vrcp.f32 %v2575_v20  ;;  %v2576_v18 = vadd.f32 1.0, %v4224_v32 }
 0x667   :  { %4235 = vrcp.f32 %v2573_v4 }
 0x66c   :  { %v4226_v23 = vpop.eup %4225 }
 0x66d   :  { %v4228_v59 = vpop.eup %4227  ;;  %v2593_v1 = vmul.f32 %v4226_v23, %v4220_v19 }
 0x66e   :  { %v4230_v2 = vpop.eup %4229 }
 0x66f   :  { %v4232_v3 = vpop.eup %4231  ;;  %v2591_v5 = vmul.f32 %v4230_v2, %v4965_v57 }
 0x670   :  { %v2594_v11 = vmul.f32 %v4232_v3, %v4228_v59  ;;  %v4234_v15 = vpop.eup %4233 }
 0x671   :  { %v5013_v12 = vadd.f32 %v2593_v1, %v2591_v5  ;;  %v2592_v47 = vmul.f32 %v4234_v15, %v4969_v62  ;;  %v4236_v61 = vpop.eup %4235  ;;  %v4038_v62 = vld [vmem:[#allocation3 + $0x4] ss:$16 sps:$4 sm:$0xff]  }
 0x672   :  { %3171 = vmatprep.subr.bf16.mxu0 %v4038_v62 }
 0x673   :  { %4237 = vtanh.f32 %v5013_v12  ;;  %v5017_v49 = vadd.f32 %v2594_v11, %v2592_v47 }
 0x674   :  { %4239 = vrcp.f32 %v2576_v18 }
 0x675   :  { %4241 = vtanh.f32 %v5017_v49 }
 0x67d   :  { %v4238_v48 = vpop.eup %4237 }
 0x67e   :  { %v4240_v50 = vpop.eup %4239  ;;  %v2599_v57 = vmul.f32 %v4238_v48, %v4236_v61 }
 0x67f   :  { %v4242_v6 = vpop.eup %4241 }
 0x680   :  { %v2600_v51 = vmul.f32 %v4242_v6, %v4240_v50 }
 0x682   :  { %v2601_v8 = vpack.c.bf16 %v2600_v51, %v2599_v57 }
 0x684   :  { %3776 = vst [vmem:[#allocation6 + $0x28] sm:$0xff] %v2601_v8   ;;  %2848 = vmatmul.mubr.bf16.vlgmr.msra.gmra.mrb[24].mxu0 %v2601_v8  ;;  %2891 = vmatmul.mubr.bf16.vlgmr.msra.gmra.mrb[24].mxu1 %v2601_v8 }
 0x685   :  { %3203 = vmatprep.mubr.bf16.mxu0 %v4404_v0  ;;  %3246 = vmatprep.mubr.bf16.mxu1 %v4404_v0  ;;  %v4045_v0 = vld [vmem:[#allocation3 + $0x40] ss:$16 sps:$4 sm:$0xff]  }
 0x686   :  { %3172 = vmatpush1.bf16.msra.mxu0 %v4036_v10  ;;  %3215 = vmatpush1.bf16.msra.mxu1 %v4039_v13 }
 0x687   :  { %3216 = vmatprep.subr.bf16.mxu1 %v4838_v56  ;;  %3173 = vmatprep.subr.bf16.mxu0 %v4044_v14 }
 0x68a   :  { %3174 = vmatpush1.bf16.msra.mxu0 %v4042_v17  ;;  %3217 = vmatpush1.bf16.msra.mxu1 %v4840_v24 }
 0x68b   :  { %3218 = vmatprep.subr.bf16.mxu1 %v4844_v25  ;;  %3175 = vmatprep.subr.bf16.mxu0 %v4047_v52 }
 0x68e   :  { %3176 = vmatpush1.bf16.msra.mxu0 %v4045_v0  ;;  %3219 = vmatpush1.bf16.msra.mxu1 %v4846_v26 }
 0x68f   :  { %3220 = vmatprep.subr.bf16.mxu1 %v4850_v27  ;;  %3177 = vmatprep.subr.bf16.mxu0 %v4050_v55 }
 0x692   :  { %3178 = vmatpush1.bf16.msra.mxu0 %v4048_v44  ;;  %3221 = vmatpush1.bf16.msra.mxu1 %v4852_v28 }
 0x693   :  { %3179 = vmatprep.subr.bf16.mxu0 %v4858_v30  ;;  %3222 = vmatprep.subr.bf16.mxu1 %v4862_v33 }
 0x696   :  { %3180 = vmatpush1.bf16.msra.mxu0 %v4856_v29  ;;  %3223 = vmatpush1.bf16.msra.mxu1 %v4860_v31 }
 0x697   :  { %3181 = vmatprep.subr.bf16.mxu0 %v4864_v34  ;;  %3224 = vmatprep.subr.bf16.mxu1 %v4867_v35 }
 0x69a   :  { %3182 = vmatpush1.bf16.msra.mxu0 %v4871_v36  ;;  %3225 = vmatpush1.bf16.msra.mxu1 %v4875_v37 }
 0x69b   :  { %3183 = vmatprep.subr.bf16.mxu0 %v4877_v38  ;;  %3226 = vmatprep.subr.bf16.mxu1 %v4880_v39 }
 0x69e   :  { %3184 = vmatpush1.bf16.msra.mxu0 %v4883_v41  ;;  %3227 = vmatpush1.bf16.msra.mxu1 %v4887_v22 }
 0x69f   :  { %3185 = vmatprep.subr.bf16.mxu0 %v4889_v42  ;;  %3228 = vmatprep.subr.bf16.mxu1 %v4892_v43 }
 0x6a2   :  { %3186 = vmatpush1.bf16.msra.mxu0 %v4895_v45  ;;  %3229 = vmatpush1.bf16.msra.mxu1 %v4899_v46 }
 0x757   :  { %v2849_v56 = vpop.f32.mrb[24].mxu0  ;;  %v2892_v24 = vpop.f32.mrb[24].mxu1 }
 0x758   :  { %v3811_v25 = vadd.f32 %v2849_v56, %v4680_v53  ;;  %v2851_v26 = vpop.f32.mrb[25].mxu0  ;;  %v2894_v27 = vpop.f32.mrb[25].mxu1  ;;  %v3843_v41 = vadd.f32 %v2892_v24, %v4687_v7 }
 0x759   :  { %v3812_v28 = vadd.f32 %v2851_v26, %v4682_v54  ;;  %v2853_v29 = vpop.f32.mrb[26].mxu0  ;;  %v2896_v30 = vpop.f32.mrb[26].mxu1  ;;  %v3844_v42 = vadd.f32 %v2894_v27, %v4690_v40 }
 0x75a   :  { %v3683_v31 = vmul.f32 -1.442695, %v3811_v25  ;;  %v3813_v33 = vadd.f32 %v2853_v29, %v4680_v53  ;;  %v2855_v34 = vpop.f32.mrb[27].mxu0  ;;  %v2898_v35 = vpop.f32.mrb[27].mxu1  ;;  %v3845_v22 = vadd.f32 %v2896_v30, %v4687_v7  ;;  %v3685_v43 = vmul.f32 -1.442695, %v3843_v41 }
 0x75b   :  { %v3684_v36 = vmul.f32 -1.442695, %v3812_v28  ;;  %v3814_v37 = vadd.f32 %v2855_v34, %v4682_v54  ;;  %v3846_v63 = vadd.f32 %v2898_v35, %v4690_v40 }
 0x75c   :  { %4243 = vpow2.f32 %v3683_v31  ;;  %v3686_v38 = vmul.f32 -1.442695, %v3813_v33  ;;  %v3688_v45 = vmul.f32 -1.442695, %v3845_v22 }
 0x75d   :  { %v3687_v39 = vmul.f32 -1.442695, %v3814_v37  ;;  %4245 = vpow2.f32 %v3684_v36 }
 0x75e   :  { %4247 = vpow2.f32 %v3686_v38 }
 0x75f   :  { %4249 = vpow2.f32 %v3687_v39 }
 0x760   :  { %4251 = vtanh.f32 %v3844_v42 }
 0x761   :  { %4253 = vpow2.f32 %v3685_v43 }
 0x762   :  { %4255 = vpow2.f32 %v3688_v45 }
 0x766   :  { %v4244_v46 = vpop.eup %4243 }
 0x767   :  { %v2927_v58 = vadd.f32 1.0, %v4244_v46  ;;  %v4246_v60 = vpop.eup %4245 }
 0x768   :  { %v4248_v16 = vpop.eup %4247  ;;  %v2928_v20 = vadd.f32 1.0, %v4246_v60 }
 0x769   :  { %4257 = vrcp.f32 %v2927_v58  ;;  %v2930_v19 = vadd.f32 1.0, %v4248_v16  ;;  %v4250_v21 = vpop.eup %4249 }
 0x76a   :  { %4259 = vtanh.f32 %v3846_v63  ;;  %v2931_v32 = vadd.f32 1.0, %v4250_v21  ;;  %v4252_v23 = vpop.eup %4251 }
 0x76b   :  { %4261 = vrcp.f32 %v2928_v20  ;;  %v4254_v59 = vpop.eup %4253 }
 0x76c   :  { %4263 = vrcp.f32 %v2930_v19  ;;  %v4256_v1 = vpop.eup %4255  ;;  %v2929_v15 = vadd.f32 1.0, %v4254_v59 }
 0x76d   :  { %4265 = vrcp.f32 %v2931_v32  ;;  %v2932_v50 = vadd.f32 1.0, %v4256_v1 }
 0x76e   :  { %4267 = vrcp.f32 %v2929_v15 }
 0x773   :  { %v4258_v2 = vpop.eup %4257 }
 0x774   :  { %v4260_v3 = vpop.eup %4259  ;;  %v2949_v4 = vmul.f32 %v4258_v2, %v4252_v23 }
 0x775   :  { %v4262_v5 = vpop.eup %4261 }
 0x776   :  { %v4264_v11 = vpop.eup %4263  ;;  %v2947_v18 = vmul.f32 %v4262_v5, %v5013_v12 }
 0x777   :  { %v2950_v47 = vmul.f32 %v4264_v11, %v4260_v3  ;;  %v4266_v61 = vpop.eup %4265 }
 0x778   :  { %v5053_v48 = vadd.f32 %v2949_v4, %v2947_v18  ;;  %v2948_v6 = vmul.f32 %v4266_v61, %v5017_v49  ;;  %v4268_v51 = vpop.eup %4267 }
 0x77a   :  { %4269 = vtanh.f32 %v5053_v48  ;;  %v5057_v57 = vadd.f32 %v2950_v47, %v2948_v6 }
 0x77b   :  { %4271 = vrcp.f32 %v2932_v50 }
 0x77c   :  { %4273 = vtanh.f32 %v5057_v57 }
 0x784   :  { %v4270_v8 = vpop.eup %4269 }
 0x785   :  { %v4272_v62 = vpop.eup %4271  ;;  %v2955_v12 = vmul.f32 %v4270_v8, %v4268_v51 }
 0x786   :  { %v4274_v9 = vpop.eup %4273 }
 0x787   :  { %v2956_v10 = vmul.f32 %v4274_v9, %v4272_v62 }
 0x789   :  { %v2957_v13 = vpack.c.bf16 %v2956_v10, %v2955_v12 }
 0x78b   :  { %3781 = vst [vmem:[#allocation6 + $0x30] sm:$0xff] %v2957_v13   ;;  %3204 = vmatmul.mubr.bf16.vlgmr.msra.gmra.mrb[28].mxu0 %v2957_v13  ;;  %3247 = vmatmul.mubr.bf16.vlgmr.msra.gmra.mrb[28].mxu1 %v2957_v13 }
 0x85e   :  { %v3205_v14 = vpop.f32.mrb[28].mxu0  ;;  %v3248_v49 = vpop.f32.mrb[28].mxu1 }
 0x85f   :  { %v3815_v17 = vadd.f32 %v3205_v14, %v4680_v53  ;;  %v3207_v52 = vpop.f32.mrb[29].mxu0  ;;  %v3250_v0 = vpop.f32.mrb[29].mxu1  ;;  %v3847_v33 = vadd.f32 %v3248_v49, %v4687_v7 }
 0x860   :  { %v3816_v55 = vadd.f32 %v3207_v52, %v4682_v54  ;;  %v3209_v44 = vpop.f32.mrb[30].mxu0  ;;  %v3252_v56 = vpop.f32.mrb[30].mxu1  ;;  %v3848_v35 = vadd.f32 %v3250_v0, %v4690_v40 }
 0x861   :  { %v3723_v24 = vmul.f32 -1.442695, %v3815_v17  ;;  %v3817_v25 = vadd.f32 %v3209_v44, %v4680_v53  ;;  %v3211_v26 = vpop.f32.mrb[31].mxu0  ;;  %v3254_v27 = vpop.f32.mrb[31].mxu1  ;;  %v3849_v34 = vadd.f32 %v3252_v56, %v4687_v7  ;;  %v3725_v36 = vmul.f32 -1.442695, %v3847_v33 }
 0x862   :  { %v3724_v28 = vmul.f32 -1.442695, %v3816_v55  ;;  %v3818_v29 = vadd.f32 %v3211_v26, %v4682_v54  ;;  %v3850_v38 = vadd.f32 %v3254_v27, %v4690_v40 }
 0x863   :  { %4275 = vpow2.f32 %v3723_v24  ;;  %v3726_v30 = vmul.f32 -1.442695, %v3817_v25  ;;  %v3728_v37 = vmul.f32 -1.442695, %v3849_v34 }
 0x864   :  { %v3727_v31 = vmul.f32 -1.442695, %v3818_v29  ;;  %4277 = vpow2.f32 %v3724_v28 }
 0x865   :  { %4279 = vpow2.f32 %v3726_v30 }
 0x866   :  { %4281 = vpow2.f32 %v3727_v31 }
 0x867   :  { %4283 = vtanh.f32 %v3848_v35 }
 0x868   :  { %4285 = vpow2.f32 %v3725_v36 }
 0x869   :  { %4287 = vpow2.f32 %v3728_v37 }
 0x86d   :  { %v4276_v53 = vpop.eup %4275 }
 0x86e   :  { %v3283_v39 = vadd.f32 1.0, %v4276_v53  ;;  %v4278_v54 = vpop.eup %4277 }
 0x86f   :  { %v4280_v41 = vpop.eup %4279  ;;  %v3284_v22 = vadd.f32 1.0, %v4278_v54 }
 0x870   :  { %4289 = vrcp.f32 %v3283_v39  ;;  %v3286_v42 = vadd.f32 1.0, %v4280_v41  ;;  %v4282_v43 = vpop.eup %4281 }
 0x871   :  { %4291 = vtanh.f32 %v3850_v38  ;;  %v3287_v7 = vadd.f32 1.0, %v4282_v43  ;;  %v4284_v45 = vpop.eup %4283 }
 0x872   :  { %4293 = vrcp.f32 %v3284_v22  ;;  %v4286_v46 = vpop.eup %4285 }
 0x873   :  { %4295 = vrcp.f32 %v3286_v42  ;;  %v4288_v63 = vpop.eup %4287  ;;  %v3285_v20 = vadd.f32 1.0, %v4286_v46 }
 0x874   :  { %4297 = vrcp.f32 %v3287_v7  ;;  %v3288_v1 = vadd.f32 1.0, %v4288_v63 }
 0x875   :  { %4299 = vrcp.f32 %v3285_v20 }
 0x87a   :  { %v4290_v58 = vpop.eup %4289 }
 0x87b   :  { %v4292_v60 = vpop.eup %4291  ;;  %v3305_v40 = vmul.f32 %v4290_v58, %v4284_v45 }
 0x87c   :  { %v4294_v16 = vpop.eup %4293 }
 0x87d   :  { %v4296_v19 = vpop.eup %4295  ;;  %v3303_v21 = vmul.f32 %v4294_v16, %v5053_v48 }
 0x87e   :  { %v3306_v32 = vmul.f32 %v4296_v19, %v4292_v60  ;;  %v4298_v23 = vpop.eup %4297 }
 0x87f   :  { %v3307_v59 = vadd.f32 %v3305_v40, %v3303_v21  ;;  %v3304_v2 = vmul.f32 %v4298_v23, %v5057_v57  ;;  %v4300_v4 = vpop.eup %4299 }
 0x881   :  { %4301 = vtanh.f32 %v3307_v59  ;;  %3326 = vst [vmem:[#allocation9] sm:$0xff] %v3307_v59  ;;  %v3308_v3 = vadd.f32 %v3306_v32, %v3304_v2 }
 0x882   :  { %4303 = vrcp.f32 %v3288_v1 }
 0x883   :  { %4305 = vtanh.f32 %v3308_v3  ;;  %3327 = vst [vmem:[#allocation9 + $0x8] sm:$0xff] %v3308_v3 }
 0x88b   :  { %v4302_v5 = vpop.eup %4301 }
 0x88c   :  { %v3311_v11 = vmul.f32 %v4302_v5, %v4300_v4  ;;  %v4304_v15 = vpop.eup %4303 }
 0x88d   :  { %v4306_v18 = vpop.eup %4305 }
 0x88e   :  { %3324 = vst [vmem:[#allocation7] sm:$0xff] %v3311_v11  ;;  %v3312_v47 = vmul.f32 %v4306_v18, %v4304_v15 }
 0x890   :  { %v3785_v61 = vpack.c.bf16 %v3312_v47, %v3311_v11  ;;  %3325 = vst [vmem:[#allocation7 + $0x8] sm:$0xff] %v3312_v47 }
 0x891   :  { %4340 = shalt.err (!%p4337_p12)
}
 0x892   :  { %s4341_s10 = scalar_lea.hbm %s5127_s7, 256 }
 0x893   :  { %p4342_p13 = scmp.ne.s32.totalorder %s5127_s7, %s4341_s10  ;;  %p4345_p0 = scmp.lt.u32.totalorder %s4341_s10, %s5127_s7 }
 0x895   :  { %p4347_p1 = pnand %p4345_p0, %p4342_p13 }
 0x897   :  { %4350 = shalt.err (!%p4347_p1)
}
 0x898   :  { %s4408_s15 = smov 128   ;;  %s4409_s16 = smov 8   ;;  %3786 = vst [vmem:[#allocation6 + $0x38] sm:$0xff] %v3785_v61  }
 0x899   :  { %3351 = dma.vmem_to_hbm [thread:$0]  %s3346_s25, 256, %s5127_s7, [#allocation8], %s4408_s15, %s4408_s15, %s4409_s16  }
 0x89a   :  { %s4351_s19 = scalar_lea.vmem %s5070_s27, 256  ;;  %p4356_p3 = scmp.lt.s32.totalorder %s5070_s27, %s5070_s27 }
 0x89b   :  { %p4352_p2 = scmp.ne.s32.totalorder %s5070_s27, %s4351_s19  ;;  %p4357_p4 = scmp.lt.s32.totalorder %s4351_s19, %s4351_s19 }
 0x89d   :  { %p4358_p5 = por %p4357_p4, %p4356_p3 }
 0x89f   :  { %p4359_p6 = pnand %p4358_p5, %p4352_p2 }
 0x8a1   :  { %4362 = shalt.err (!%p4359_p6)
}
 0x8a2   :  { %s4363_s22 = scalar_lea.hbm %s5128_s8, 256 }
 0x8a3   :  { %p4364_p7 = scmp.ne.s32.totalorder %s5128_s8, %s4363_s22  ;;  %p4367_p8 = scmp.lt.u32.totalorder %s4363_s22, %s5128_s8 }
 0x8a5   :  { %p4369_p9 = pnand %p4367_p8, %p4364_p7 }
 0x8a7   :  { %4372 = shalt.err (!%p4369_p9)
}
 0x8a8   :  { %3363 = dma.vmem_to_hbm [thread:$0]  %s5070_s27, 256, %s5128_s8, [#allocation8], %s4408_s15, %s4408_s15, %s4409_s16  }
 0x8a9   :  { %s4373_s2 = scalar_lea.vmem %s5072_s28, 1024  ;;  %p4378_p11 = scmp.lt.s32.totalorder %s5072_s28, %s5072_s28 }
 0x8aa   :  { %p4374_p10 = scmp.ne.s32.totalorder %s5072_s28, %s4373_s2  ;;  %p4379_p12 = scmp.lt.s32.totalorder %s4373_s2, %s4373_s2 }
 0x8ac   :  { %p4380_p13 = por %p4379_p12, %p4378_p11 }
 0x8ae   :  { %p4381_p0 = pnand %p4380_p13, %p4374_p10 }
 0x8b0   :  { %4384 = shalt.err (!%p4381_p0)
}
 0x8b1   :  { %s4385_s26 = scalar_lea.hbm %s5126_s6, 1024 }
 0x8b2   :  { %p4386_p1 = scmp.ne.s32.totalorder %s5126_s6, %s4385_s26  ;;  %p4389_p2 = scmp.lt.u32.totalorder %s4385_s26, %s5126_s6 }
 0x8b4   :  { %p4391_p3 = pnand %p4389_p2, %p4386_p1 }
 0x8b6   :  { %4394 = shalt.err (!%p4391_p3)
}
 0x8b7   :  { %s4410_s8 = smov 64   ;;  %s4411_s27 = smov 4  }
 0x8b8   :  { %3339 = dma.vmem_to_hbm [thread:$0]  %s5072_s28, 1024, %s5126_s6, [#allocation5], %s4410_s8, %s4410_s8, %s4411_s27  }
 0x8b9   :  { %4397 = dma.done.wait [#allocation5], 1024  }
 0x8ba   :  { %4398 = vsyncadd [#allocation5], 4294966272 }
 0x8bb   :  { %4399 = dma.done.wait [#allocation8], 512  }
 0x8bc   :  { %4400 = vsyncadd [#allocation8], 4294966784 }
 0x8bd   :  { %3373 = vsyncpa [#allocation4], 1 }
 0x8be   :  { %3374 = vsyncpa [#allocation5], 1 }
 0x8bf   :  { %3375 = vsyncpa [#allocation8], 1 }

// kernel: tpu_custom_call.1
= control target key start
LH: loop header
LB: loop body
LE: loop exit
PB: predicated region body
PF: predicated region fallthrough
CT: control target
= control target key end

     0   :  { %14 = vsyncpa [#allocation4], 0  ;;  %s5120_s0 = inlined_call_operand.vmem [shape: bf16[128,16], index: 0, kind: input, shape index: {}]   ;;  %s5121_s1 = inlined_call_operand.vmem [shape: bf16[16,512], index: 1, kind: input, shape index: {}]   ;;  %s5122_s2 = inlined_call_operand.hbm [shape: bf16[128,512], index: 2, kind: input, shape index: {}]   ;;  %s5123_s3 = inlined_call_operand.vmem [shape: f32[1,512], index: 3, kind: input, shape index: {}]   ;;  %s5124_s4 = inlined_call_operand.vmem [shape: f32[16,128], index: 4, kind: input, shape index: {}]   ;;  %s5125_s5 = inlined_call_operand.vmem [shape: f32[16,128], index: 5, kind: input, shape index: {}]   ;;  %s5126_s6 = inlined_call_operand.hbm [shape: bf16[128,128], index: 6, kind: output, shape index: {0}]   ;;  %s5127_s7 = inlined_call_operand.hbm [shape: f32[16,128], index: 7, kind: output, shape index: {1}]   ;;  %s5128_s8 = inlined_call_operand.hbm [shape: f32[16,128], index: 8, kind: output, shape index: {2}]  }
   0x1   :  { %15 = vsyncpa [#allocation5], 0 }
   0x2   :  { %16 = vsyncpa [#allocation8], 0  ;;  %s4401_s27 = smov [#allocation3]   ;;  %s4307_s9 = scalar_lea.hbm %s5122_s2, 4096 }
   0x3   :  { %s26_s28 = sshll.u32 %s4401_s27, 4  ;;  %p4308_p0 = scmp.ne.s32.totalorder %s5122_s2, %s4307_s9  ;;  %s27_s28 = int_to_ptr.vmem [resolvable:$true] %s26_s28 }
   0x4   :  { %p4311_p1 = scmp.lt.u32.totalorder %s4307_s9, %s5122_s2 }
   0x6   :  { %p4313_p2 = pnand %p4311_p1, %p4308_p0 }
   0x8   :  { %4316 = shalt.err (!%p4313_p2)
}
   0x9   :  { %s4317_s14 = scalar_lea.vmem %s27_s28, 4096  ;;  %p4322_p4 = scmp.lt.s32.totalorder %s27_s28, %s27_s28 }
   0xa   :  { %p4318_p3 = scmp.ne.s32.totalorder %s27_s28, %s4317_s14  ;;  %p4323_p5 = scmp.lt.s32.totalorder %s4317_s14, %s4317_s14 }
   0xc   :  { %p4324_p6 = por %p4323_p5, %p4322_p4 }
   0xe   :  { %p4325_p7 = pnand %p4324_p6, %p4318_p3 }
  0x10   :  { %4328 = shalt.err (!%p4325_p7)
}
  0x11   :  { %s4402_s15 = smov 256   ;;  %s4403_s16 = smov 16  }
  0x12   :  { %32 = dma.hbm_to_vmem [thread:$0]  %s5122_s2, 4096, %s27_s28, [#allocation4], %s4402_s15, %s4402_s15, %s4403_s16  }
  0x13   :  { %4395 = dma.done.wait [#allocation4], 4096  }
  0x14   :  { %4396 = vsyncadd [#allocation4], 4294963200  ;;  %v4404_v0 = vmov 0   ;;  %v3926_v1 = vld [vmem:[%s5121_s1 + $0x4] ss:$16 sps:$4 sm:$0xff]   ;;  %vm157_vm0 = vcmask 130048   ;;  %v77_v48 = vlaneseq }
  0x15   :  { %214 = vmatprep.mubr.bf16.mxu0 %v4404_v0  ;;  %327 = vmatprep.mubr.bf16.mxu1 %v4404_v0  ;;  %v3928_v2 = vld [vmem:[%s5121_s1 + $0xc] ss:$16 sps:$4 sm:$0xff]   ;;  %v3930_v3 = vld [vmem:[%s5121_s1] ss:$16 sps:$4 sm:$0xff]   ;;  %v3931_v4 = vld [vmem:[%s5121_s1 + $0x8] ss:$16 sps:$4 sm:$0xff]  }
  0x16   :  { %182 = vmatprep.subr.bf16.mxu0 %v3926_v1  ;;  %295 = vmatprep.subr.bf16.mxu1 %v3928_v2  ;;  %v3932_v5 = vld [vmem:[%s5120_s0] sm:$0xff]   ;;  %v4499_v10 = vld [vmem:[#allocation3 + $0x8] ss:$16 sps:$4 sm:$0xff]   ;;  %v4501_v11 = vld [vmem:[#allocation3 + $0xc] ss:$16 sps:$4 sm:$0xff]   ;;  %v78_v49 = vshrl.u32 %v77_v48, 7 }
  0x17   :  { %183 = vmatpush1.bf16.msra.mxu0 %v3930_v3  ;;  %296 = vmatpush1.bf16.msra.mxu1 %v3931_v4  ;;  %v4486_v6 = vld [vmem:[#allocation3] ss:$16 sps:$4 sm:$0xff]   ;;  %v4488_v7 = vld [vmem:[#allocation3 + $0x4] ss:$16 sps:$4 sm:$0xff]   ;;  %v3936_v12 = vld [vmem:[%s5120_s0 + $0x8] sm:$0xff]   ;;  %s4406_s26 = smov [#allocation9]  }
  0x18   :  { %680 = vmatprep.subr.bf16.mxu0 %v4488_v7  ;;  %v4491_v8 = vld [vmem:[#allocation3 + $0x20] ss:$16 sps:$4 sm:$0xff]   ;;  %v4495_v9 = vld [vmem:[#allocation3 + $0x24] ss:$16 sps:$4 sm:$0xff]   ;;  %723 = vmatprep.subr.bf16.mxu1 %v4501_v11  ;;  %v4515_v15 = vld [vmem:[#allocation3 + $0x2c] ss:$16 sps:$4 sm:$0xff]  }
  0x19   :  { %v4509_v13 = vld [vmem:[#allocation3 + $0x44] ss:$16 sps:$4 sm:$0xff]   ;;  %v4511_v14 = vld [vmem:[#allocation3 + $0x40] ss:$16 sps:$4 sm:$0xff]   ;;  %v4518_v16 = vld [vmem:[#allocation3 + $0x28] ss:$16 sps:$4 sm:$0xff]  }
  0x1a   :  { %3395 = vmatmul.mubr.msk.bf16.vlgmr.msra.gmra.mrb[0].mxu0 %vm157_vm0, %v3932_v5  ;;  %3403 = vmatmul.mubr.msk.bf16.vlgmr.msra.gmra.mrb[0].mxu1 %vm157_vm0, %v3932_v5  ;;  %v4521_v17 = vld [vmem:[#allocation3 + $0x64] ss:$16 sps:$4 sm:$0xff]   ;;  %v4525_v18 = vld [vmem:[#allocation3 + $0x4c] ss:$16 sps:$4 sm:$0xff]   ;;  %v4529_v19 = vld [vmem:[#allocation3 + $0x60] ss:$16 sps:$4 sm:$0xff]  }
  0x1b   :  { %681 = vmatpush1.bf16.msra.mxu0 %v4486_v6  ;;  %224 = vmatprep.mubr.bf16.mxu0 %v4404_v0  ;;  %v4533_v20 = vld [vmem:[#allocation3 + $0x48] ss:$16 sps:$4 sm:$0xff]   ;;  %v4537_v21 = vld [vmem:[#allocation3 + $0x84] ss:$16 sps:$4 sm:$0xff]   ;;  %v4542_v23 = vld [vmem:[#allocation3 + $0x6c] ss:$16 sps:$4 sm:$0xff]  }
  0x1c   :  { %337 = vmatprep.mubr.bf16.mxu1 %v4404_v0  ;;  %682 = vmatprep.subr.bf16.mxu0 %v4495_v9  ;;  %v3943_v22 = vld [vmem:[%s5120_s0 + $0x10] sm:$0xff]   ;;  %v4548_v25 = vld [vmem:[#allocation3 + $0x68] ss:$16 sps:$4 sm:$0xff]   ;;  %v4556_v27 = vld [vmem:[#allocation3 + $0x8c] ss:$16 sps:$4 sm:$0xff]   ;;  %v79_v50 = vsub.s32 0, %v78_v49 }
  0x1d   :  { %724 = vmatpush1.bf16.msra.mxu1 %v4499_v10  ;;  %v4545_v24 = vld [vmem:[#allocation3 + $0x80] ss:$16 sps:$4 sm:$0xff]   ;;  %v4552_v26 = vld [vmem:[#allocation3 + $0xa4] ss:$16 sps:$4 sm:$0xff]   ;;  %v4564_v29 = vld [vmem:[#allocation3 + $0x88] ss:$16 sps:$4 sm:$0xff]  }
  0x1e   :  { %725 = vmatprep.subr.bf16.mxu1 %v4515_v15  ;;  %v4561_v28 = vld [vmem:[#allocation3 + $0xa0] ss:$16 sps:$4 sm:$0xff]   ;;  %v4568_v30 = vld [vmem:[#allocation3 + $0xc4] ss:$16 sps:$4 sm:$0xff]   ;;  %v4570_v31 = vld [vmem:[#allocation3 + $0xac] ss:$16 sps:$4 sm:$0xff]  }
  0x1f   :  { %683 = vmatpush1.bf16.msra.mxu0 %v4491_v8  ;;  %v3950_v32 = vld [vmem:[%s5120_s0 + $0x18] sm:$0xff]   ;;  %v4575_v33 = vld [vmem:[#allocation3 + $0xc0] ss:$16 sps:$4 sm:$0xff]   ;;  %v4583_v35 = vld [vmem:[#allocation3 + $0xe4] ss:$16 sps:$4 sm:$0xff]   ;;  %v83_v52 = vsub.s32 1, %v78_v49 }
  0x20   :  { %684 = vmatprep.subr.bf16.mxu0 %v4509_v13  ;;  %v4579_v34 = vld [vmem:[#allocation3 + $0xa8] ss:$16 sps:$4 sm:$0xff]   ;;  %v4585_v36 = vld [vmem:[#allocation3 + $0xcc] ss:$16 sps:$4 sm:$0xff]   ;;  %v4591_v37 = vld [vmem:[#allocation3 + $0xe0] ss:$16 sps:$4 sm:$0xff]  }
  0x21   :  { %726 = vmatpush1.bf16.msra.mxu1 %v4518_v16  ;;  %v4593_v38 = vld [vmem:[#allocation3 + $0xc8] ss:$16 sps:$4 sm:$0xff]   ;;  %v4595_v39 = vld [vmem:[#allocation3 + $0xec] ss:$16 sps:$4 sm:$0xff]   ;;  %v3957_v40 = vld [vmem:[%s5120_s0 + $0x20] sm:$0xff]   ;;  %v87_v56 = vsub.s32 2, %v78_v49 }
  0x22   :  { %3396 = vmatmul.mubr.msk.bf16.gmra.mrb[4].mxu0 %vm157_vm0, %v3936_v12  ;;  %3404 = vmatmul.mubr.msk.bf16.gmra.mrb[4].mxu1 %vm157_vm0, %v3936_v12  ;;  %v4604_v41 = vld [vmem:[#allocation3 + $0xe8] ss:$16 sps:$4 sm:$0xff]   ;;  %v3971_v43 = vld [vmem:[%s5120_s0 + $0x30] sm:$0xff]   ;;  %v47_v45 = vld [vmem:[%s5124_s4] sm:$0xff]  ;;  %v91_v2 = vsub.s32 3, %v78_v49  ;;  %s3357_s27 = sshll.u32 %s4406_s26, 4  ;;  %s5070_s27 = int_to_ptr.vmem [resolvable:$true] %s3357_s27 }
  0x23   :  { %234 = vmatprep.mubr.bf16.mxu0 %v4404_v0  ;;  %347 = vmatprep.mubr.bf16.mxu1 %v4404_v0  ;;  %v3964_v42 = vld [vmem:[%s5120_s0 + $0x28] sm:$0xff]   ;;  %v3978_v44 = vld [vmem:[%s5120_s0 + $0x38] sm:$0xff]   ;;  %v75_v51 = vld [vmem:[%s5123_s3] sm:$0xf]  ;;  %s4407_s1 = smov [#allocation6]  }
  0x24   :  { %685 = vmatpush1.bf16.msra.mxu0 %v4511_v14  ;;  %727 = vmatprep.subr.bf16.mxu1 %v4525_v18  ;;  %v48_v46 = vld [vmem:[%s5124_s4 + $0x8] sm:$0xff]  ;;  %v4680_v53 = vrot.slane %v75_v51, %v79_v50  ;;  %v4682_v54 = vrot.slane %v75_v51, %v83_v52  ;;  %s3333_s28 = sshll.u32 %s4407_s1, 4  ;;  %s5072_s28 = int_to_ptr.vmem [resolvable:$true] %s3333_s28 }
  0x25   :  { %686 = vmatprep.subr.bf16.mxu0 %v4521_v17  ;;  %728 = vmatpush1.bf16.msra.mxu1 %v4533_v20  ;;  %v487_v47 = vpack.c.bf16 %v48_v46, %v47_v45 }
  0x26   :  { %729 = vmatprep.subr.bf16.mxu1 %v4542_v23 }
  0x28   :  { %687 = vmatpush1.bf16.msra.mxu0 %v4529_v19 }
  0x29   :  { %688 = vmatprep.subr.bf16.mxu0 %v4537_v21  ;;  %730 = vmatpush1.bf16.msra.mxu1 %v4548_v25 }
  0x2a   :  { %3397 = vmatmul.mubr.msk.bf16.gmra.mrb[8].mxu0 %vm157_vm0, %v3943_v22  ;;  %3405 = vmatmul.mubr.msk.bf16.gmra.mrb[8].mxu1 %vm157_vm0, %v3943_v22 }
  0x2b   :  { %244 = vmatprep.mubr.bf16.mxu0 %v4404_v0  ;;  %357 = vmatprep.mubr.bf16.mxu1 %v4404_v0 }
  0x2c   :  { %689 = vmatpush1.bf16.msra.mxu0 %v4545_v24  ;;  %731 = vmatprep.subr.bf16.mxu1 %v4556_v27 }
  0x2d   :  { %690 = vmatprep.subr.bf16.mxu0 %v4552_v26  ;;  %732 = vmatpush1.bf16.msra.mxu1 %v4564_v29 }
  0x2e   :  { %733 = vmatprep.subr.bf16.mxu1 %v4570_v31 }
  0x30   :  { %691 = vmatpush1.bf16.msra.mxu0 %v4561_v28 }
  0x31   :  { %692 = vmatprep.subr.bf16.mxu0 %v4568_v30  ;;  %734 = vmatpush1.bf16.msra.mxu1 %v4579_v34 }
  0x32   :  { %3398 = vmatmul.mubr.msk.bf16.gmra.mrb[12].mxu0 %vm157_vm0, %v3950_v32  ;;  %3406 = vmatmul.mubr.msk.bf16.gmra.mrb[12].mxu1 %vm157_vm0, %v3950_v32 }
  0x33   :  { %254 = vmatprep.mubr.bf16.mxu0 %v4404_v0  ;;  %367 = vmatprep.mubr.bf16.mxu1 %v4404_v0 }
  0x34   :  { %693 = vmatpush1.bf16.msra.mxu0 %v4575_v33  ;;  %735 = vmatprep.subr.bf16.mxu1 %v4585_v36 }
  0x35   :  { %694 = vmatprep.subr.bf16.mxu0 %v4583_v35  ;;  %736 = vmatpush1.bf16.msra.mxu1 %v4593_v38 }
  0x36   :  { %737 = vmatprep.subr.bf16.mxu1 %v4595_v39 }
  0x38   :  { %695 = vmatpush1.bf16.msra.mxu0 %v4591_v37 }
  0x39   :  { %1035 = vmatprep.subr.bf16.mxu0 %v4488_v7  ;;  %738 = vmatpush1.bf16.msra.mxu1 %v4604_v41 }
  0x3a   :  { %3399 = vmatmul.mubr.msk.bf16.gmra.mrb[16].mxu0 %vm157_vm0, %v3957_v40  ;;  %3407 = vmatmul.mubr.msk.bf16.gmra.mrb[16].mxu1 %vm157_vm0, %v3957_v40  ;;  %v4690_v40 = vrot.slane %v75_v51, %v91_v2 }
  0x3b   :  { %264 = vmatprep.mubr.bf16.mxu0 %v4404_v0  ;;  %377 = vmatprep.mubr.bf16.mxu1 %v4404_v0 }
  0x3c   :  { %1078 = vmatprep.subr.bf16.mxu1 %v4501_v11 }
  0x42   :  { %3400 = vmatmul.mubr.msk.bf16.gmra.mrb[20].mxu0 %vm157_vm0, %v3964_v42  ;;  %3408 = vmatmul.mubr.msk.bf16.gmra.mrb[20].mxu1 %vm157_vm0, %v3964_v42 }
  0x43   :  { %274 = vmatprep.mubr.bf16.mxu0 %v4404_v0  ;;  %387 = vmatprep.mubr.bf16.mxu1 %v4404_v0 }
  0x4a   :  { %3401 = vmatmul.mubr.msk.bf16.gmra.mrb[24].mxu0 %vm157_vm0, %v3971_v43  ;;  %3409 = vmatmul.mubr.msk.bf16.gmra.mrb[24].mxu1 %vm157_vm0, %v3971_v43 }
  0x4b   :  { %284 = vmatprep.mubr.bf16.mxu0 %v4404_v0  ;;  %397 = vmatprep.mubr.bf16.mxu1 %v4404_v0 }
  0x52   :  { %3402 = vmatmul.mubr.msk.bf16.gmra.mrb[28].mxu0 %vm157_vm0, %v3978_v44  ;;  %3410 = vmatmul.mubr.msk.bf16.gmra.mrb[28].mxu1 %vm157_vm0, %v3978_v44 }
  0x53   :  { %712 = vmatprep.mubr.bf16.mxu0 %v4404_v0  ;;  %755 = vmatprep.mubr.bf16.mxu1 %v4404_v0 }
  0x5a   :  { %713 = vmatmul.mubr.bf16.vlgmr.msra.gmra.mrb[0].mxu0 %v487_v47  ;;  %756 = vmatmul.mubr.bf16.vlgmr.msra.gmra.mrb[0].mxu1 %v487_v47 }
  0x5b   :  { %1036 = vmatpush1.bf16.msra.mxu0 %v4486_v6  ;;  %1079 = vmatpush1.bf16.msra.mxu1 %v4499_v10 }
  0x5c   :  { %1037 = vmatprep.subr.bf16.mxu0 %v4495_v9  ;;  %1080 = vmatprep.subr.bf16.mxu1 %v4515_v15 }
  0x5d   :  { %1067 = vmatprep.mubr.bf16.mxu0 %v4404_v0  ;;  %1110 = vmatprep.mubr.bf16.mxu1 %v4404_v0 }
  0x5f   :  { %1038 = vmatpush1.bf16.msra.mxu0 %v4491_v8  ;;  %1081 = vmatpush1.bf16.msra.mxu1 %v4518_v16 }
  0x60   :  { %1039 = vmatprep.subr.bf16.mxu0 %v4509_v13  ;;  %1082 = vmatprep.subr.bf16.mxu1 %v4525_v18 }
  0x63   :  { %1040 = vmatpush1.bf16.msra.mxu0 %v4511_v14  ;;  %1083 = vmatpush1.bf16.msra.mxu1 %v4533_v20 }
  0x64   :  { %1041 = vmatprep.subr.bf16.mxu0 %v4521_v17  ;;  %1084 = vmatprep.subr.bf16.mxu1 %v4542_v23 }
  0x67   :  { %1042 = vmatpush1.bf16.msra.mxu0 %v4529_v19  ;;  %1085 = vmatpush1.bf16.msra.mxu1 %v4548_v25 }
  0x68   :  { %1043 = vmatprep.subr.bf16.mxu0 %v4537_v21  ;;  %1086 = vmatprep.subr.bf16.mxu1 %v4556_v27 }
  0x6b   :  { %1044 = vmatpush1.bf16.msra.mxu0 %v4545_v24  ;;  %1087 = vmatpush1.bf16.msra.mxu1 %v4564_v29 }
  0x6c   :  { %1045 = vmatprep.subr.bf16.mxu0 %v4552_v26  ;;  %1088 = vmatprep.subr.bf16.mxu1 %v4570_v31 }
  0x6f   :  { %1046 = vmatpush1.bf16.msra.mxu0 %v4561_v28  ;;  %1089 = vmatpush1.bf16.msra.mxu1 %v4579_v34 }
  0x70   :  { %1047 = vmatprep.subr.bf16.mxu0 %v4568_v30  ;;  %1090 = vmatprep.subr.bf16.mxu1 %v4585_v36 }
  0x73   :  { %1048 = vmatpush1.bf16.msra.mxu0 %v4575_v33  ;;  %1091 = vmatpush1.bf16.msra.mxu1 %v4593_v38 }
  0x74   :  { %1049 = vmatprep.subr.bf16.mxu0 %v4583_v35  ;;  %1092 = vmatprep.subr.bf16.mxu1 %v4595_v39 }
  0x77   :  { %1050 = vmatpush1.bf16.msra.mxu0 %v4591_v37  ;;  %1093 = vmatpush1.bf16.msra.mxu1 %v4604_v41 }
  0x78   :  { %1391 = vmatprep.subr.bf16.mxu0 %v4488_v7  ;;  %1434 = vmatprep.subr.bf16.mxu1 %v4501_v11  ;;  %v4687_v7 = vrot.slane %v75_v51, %v87_v56 }
 0x12d   :  { %v714_v55 = vpop.f32.mrb[0].mxu0  ;;  %v757_v57 = vpop.f32.mrb[0].mxu1 }
 0x12e   :  { %v3787_v58 = vadd.f32 %v714_v55, %v4680_v53  ;;  %v716_v59 = vpop.f32.mrb[1].mxu0  ;;  %v759_v60 = vpop.f32.mrb[1].mxu1  ;;  %v3819_v42 = vadd.f32 %v757_v57, %v4687_v7 }
 0x12f   :  { %v3788_v61 = vadd.f32 %v716_v59, %v4682_v54  ;;  %v718_v62 = vpop.f32.mrb[2].mxu0  ;;  %v761_v63 = vpop.f32.mrb[2].mxu1  ;;  %v3820_v44 = vadd.f32 %v759_v60, %v4690_v40 }
 0x130   :  { %v3443_v1 = vmul.f32 -1.442695, %v3787_v58  ;;  %v3789_v3 = vadd.f32 %v718_v62, %v4680_v53  ;;  %v720_v4 = vpop.f32.mrb[3].mxu0  ;;  %v763_v5 = vpop.f32.mrb[3].mxu1  ;;  %v3821_v43 = vadd.f32 %v761_v63, %v4687_v7  ;;  %v3445_v45 = vmul.f32 -1.442695, %v3819_v42 }
 0x131   :  { %v3444_v11 = vmul.f32 -1.442695, %v3788_v61  ;;  %v3790_v12 = vadd.f32 %v720_v4, %v4682_v54  ;;  %v3822_v48 = vadd.f32 %v763_v5, %v4690_v40  ;;  %v51_v62 = vld [vmem:[%s5125_s5] sm:$0xff] }
 0x132   :  { %4051 = vpow2.f32 %v3443_v1  ;;  %v3446_v22 = vmul.f32 -1.442695, %v3789_v3  ;;  %v3448_v46 = vmul.f32 -1.442695, %v3821_v43 }
 0x133   :  { %v3447_v32 = vmul.f32 -1.442695, %v3790_v12  ;;  %4053 = vpow2.f32 %v3444_v11  ;;  %v52_v11 = vld [vmem:[%s5125_s5 + $0x8] sm:$0xff]  ;;  %s4405_s5 = smov [#allocation7]  }
 0x134   :  { %4055 = vpow2.f32 %v3446_v22  ;;  %s3345_s25 = sshll.u32 %s4405_s5, 4  ;;  %s3346_s25 = int_to_ptr.vmem [resolvable:$true] %s3345_s25 }
 0x135   :  { %4057 = vpow2.f32 %v3447_v32  ;;  %s4329_s29 = scalar_lea.vmem %s3346_s25, 256  ;;  %p4334_p9 = scmp.lt.s32.totalorder %s3346_s25, %s3346_s25 }
 0x136   :  { %4059 = vtanh.f32 %v3820_v44  ;;  %p4330_p8 = scmp.ne.s32.totalorder %s3346_s25, %s4329_s29  ;;  %p4335_p10 = scmp.lt.s32.totalorder %s4329_s29, %s4329_s29 }
 0x137   :  { %4061 = vpow2.f32 %v3445_v45 }
 0x138   :  { %4063 = vpow2.f32 %v3448_v46  ;;  %p4336_p11 = por %p4335_p10, %p4334_p9 }
 0x13a   :  { %p4337_p12 = pnand %p4336_p11, %p4330_p8 }
 0x13c   :  { %v4052_v47 = vpop.eup %4051 }
 0x13d   :  { %v792_v49 = vadd.f32 1.0, %v4052_v47  ;;  %v4054_v50 = vpop.eup %4053 }
 0x13e   :  { %v4056_v51 = vpop.eup %4055  ;;  %v793_v52 = vadd.f32 1.0, %v4054_v50 }
 0x13f   :  { %4065 = vrcp.f32 %v792_v49  ;;  %v795_v55 = vadd.f32 1.0, %v4056_v51  ;;  %v4058_v56 = vpop.eup %4057 }
 0x140   :  { %4067 = vtanh.f32 %v3822_v48  ;;  %v796_v57 = vadd.f32 1.0, %v4058_v56  ;;  %v4060_v58 = vpop.eup %4059 }
 0x141   :  { %4069 = vrcp.f32 %v793_v52  ;;  %v4062_v59 = vpop.eup %4061 }
 0x142   :  { %4071 = vrcp.f32 %v795_v55  ;;  %v4064_v60 = vpop.eup %4063  ;;  %v794_v4 = vadd.f32 1.0, %v4062_v59 }
 0x143   :  { %4073 = vrcp.f32 %v796_v57  ;;  %v797_v42 = vadd.f32 1.0, %v4064_v60 }
 0x144   :  { %4075 = vrcp.f32 %v794_v4 }
 0x149   :  { %v4066_v61 = vpop.eup %4065 }
 0x14a   :  { %v4068_v63 = vpop.eup %4067  ;;  %v814_v1 = vmul.f32 %v4066_v61, %v4060_v58 }
 0x14b   :  { %v4070_v2 = vpop.eup %4069 }
 0x14c   :  { %v4072_v3 = vpop.eup %4071  ;;  %v812_v5 = vmul.f32 %v4070_v2, %v51_v62 }
 0x14d   :  { %v815_v12 = vmul.f32 %v4072_v3, %v4068_v63  ;;  %v4074_v22 = vpop.eup %4073 }
 0x14e   :  { %v4702_v32 = vadd.f32 %v814_v1, %v812_v5  ;;  %v813_v43 = vmul.f32 %v4074_v22, %v52_v11  ;;  %v4076_v45 = vpop.eup %4075 }
 0x150   :  { %4077 = vtanh.f32 %v4702_v32  ;;  %v4705_v44 = vadd.f32 %v815_v12, %v813_v43 }
 0x151   :  { %4079 = vrcp.f32 %v797_v42 }
 0x152   :  { %4081 = vtanh.f32 %v4705_v44 }
 0x15a   :  { %v4078_v46 = vpop.eup %4077 }
 0x15b   :  { %v4080_v47 = vpop.eup %4079  ;;  %v820_v49 = vmul.f32 %v4078_v46, %v4076_v45 }
 0x15c   :  { %v4082_v48 = vpop.eup %4081 }
 0x15d   :  { %v821_v50 = vmul.f32 %v4082_v48, %v4080_v47 }
 0x15f   :  { %v822_v51 = vpack.c.bf16 %v821_v50, %v820_v49 }
 0x161   :  { %3751 = vst [vmem:[#allocation6] sm:$0xff] %v822_v51   ;;  %1068 = vmatmul.mubr.bf16.vlgmr.msra.gmra.mrb[4].mxu0 %v822_v51  ;;  %1111 = vmatmul.mubr.bf16.vlgmr.msra.gmra.mrb[4].mxu1 %v822_v51 }
 0x162   :  { %1392 = vmatpush1.bf16.msra.mxu0 %v4486_v6  ;;  %1435 = vmatpush1.bf16.msra.mxu1 %v4499_v10 }
 0x163   :  { %1393 = vmatprep.subr.bf16.mxu0 %v4495_v9  ;;  %1436 = vmatprep.subr.bf16.mxu1 %v4515_v15 }
 0x164   :  { %1423 = vmatprep.mubr.bf16.mxu0 %v4404_v0  ;;  %1466 = vmatprep.mubr.bf16.mxu1 %v4404_v0 }
 0x166   :  { %1394 = vmatpush1.bf16.msra.mxu0 %v4491_v8  ;;  %1437 = vmatpush1.bf16.msra.mxu1 %v4518_v16 }
 0x167   :  { %1395 = vmatprep.subr.bf16.mxu0 %v4509_v13  ;;  %1438 = vmatprep.subr.bf16.mxu1 %v4525_v18 }
 0x16a   :  { %1396 = vmatpush1.bf16.msra.mxu0 %v4511_v14  ;;  %1439 = vmatpush1.bf16.msra.mxu1 %v4533_v20 }
 0x16b   :  { %1397 = vmatprep.subr.bf16.mxu0 %v4521_v17  ;;  %1440 = vmatprep.subr.bf16.mxu1 %v4542_v23 }
 0x16e   :  { %1398 = vmatpush1.bf16.msra.mxu0 %v4529_v19  ;;  %1441 = vmatpush1.bf16.msra.mxu1 %v4548_v25 }
 0x16f   :  { %1399 = vmatprep.subr.bf16.mxu0 %v4537_v21  ;;  %1442 = vmatprep.subr.bf16.mxu1 %v4556_v27 }
 0x172   :  { %1400 = vmatpush1.bf16.msra.mxu0 %v4545_v24  ;;  %1443 = vmatpush1.bf16.msra.mxu1 %v4564_v29 }
 0x173   :  { %1401 = vmatprep.subr.bf16.mxu0 %v4552_v26  ;;  %1444 = vmatprep.subr.bf16.mxu1 %v4570_v31 }
 0x176   :  { %1402 = vmatpush1.bf16.msra.mxu0 %v4561_v28  ;;  %1445 = vmatpush1.bf16.msra.mxu1 %v4579_v34 }
 0x177   :  { %1403 = vmatprep.subr.bf16.mxu0 %v4568_v30  ;;  %1446 = vmatprep.subr.bf16.mxu1 %v4585_v36 }
 0x17a   :  { %1404 = vmatpush1.bf16.msra.mxu0 %v4575_v33  ;;  %1447 = vmatpush1.bf16.msra.mxu1 %v4593_v38 }
 0x17b   :  { %1405 = vmatprep.subr.bf16.mxu0 %v4583_v35  ;;  %1448 = vmatprep.subr.bf16.mxu1 %v4595_v39 }
 0x17e   :  { %1406 = vmatpush1.bf16.msra.mxu0 %v4591_v37  ;;  %1449 = vmatpush1.bf16.msra.mxu1 %v4604_v41 }
 0x234   :  { %v1069_v6 = vpop.f32.mrb[4].mxu0  ;;  %v1112_v8 = vpop.f32.mrb[4].mxu1 }
 0x235   :  { %v3791_v9 = vadd.f32 %v1069_v6, %v4680_v53  ;;  %v1071_v10 = vpop.f32.mrb[5].mxu0  ;;  %v1114_v13 = vpop.f32.mrb[5].mxu1  ;;  %v3823_v62 = vadd.f32 %v1112_v8, %v4687_v7 }
 0x236   :  { %v3792_v14 = vadd.f32 %v1071_v10, %v4682_v54  ;;  %v1073_v17 = vpop.f32.mrb[6].mxu0  ;;  %v1116_v19 = vpop.f32.mrb[6].mxu1  ;;  %v3824_v1 = vadd.f32 %v1114_v13, %v4690_v40 }
 0x237   :  { %v3483_v52 = vmul.f32 -1.442695, %v3791_v9  ;;  %v3793_v55 = vadd.f32 %v1073_v17, %v4680_v53  ;;  %v1075_v56 = vpop.f32.mrb[7].mxu0  ;;  %v1118_v57 = vpop.f32.mrb[7].mxu1  ;;  %v3825_v63 = vadd.f32 %v1116_v19, %v4687_v7  ;;  %v3485_v2 = vmul.f32 -1.442695, %v3823_v62 }
 0x238   :  { %v3484_v58 = vmul.f32 -1.442695, %v3792_v14  ;;  %v3794_v59 = vadd.f32 %v1075_v56, %v4682_v54  ;;  %v3826_v5 = vadd.f32 %v1118_v57, %v4690_v40 }
 0x239   :  { %4083 = vpow2.f32 %v3483_v52  ;;  %v3486_v60 = vmul.f32 -1.442695, %v3793_v55  ;;  %v3488_v3 = vmul.f32 -1.442695, %v3825_v63  ;;  %v4760_v63 = vld [vmem:[#allocation3 + $0xc] ss:$16 sps:$4 sm:$0xff]  }
 0x23a   :  { %v3487_v61 = vmul.f32 -1.442695, %v3794_v59  ;;  %4085 = vpow2.f32 %v3484_v58  ;;  %1790 = vmatprep.subr.bf16.mxu1 %v4760_v63 }
 0x23b   :  { %4087 = vpow2.f32 %v3486_v60 }
 0x23c   :  { %4089 = vpow2.f32 %v3487_v61 }
 0x23d   :  { %4091 = vtanh.f32 %v3824_v1  ;;  %v4762_v1 = vld [vmem:[#allocation3] ss:$16 sps:$4 sm:$0xff]  }
 0x23e   :  { %4093 = vpow2.f32 %v3485_v2  ;;  %v4764_v2 = vld [vmem:[#allocation3 + $0x8] ss:$16 sps:$4 sm:$0xff]  }
 0x23f   :  { %4095 = vpow2.f32 %v3488_v3  ;;  %v4770_v3 = vld [vmem:[#allocation3 + $0x24] ss:$16 sps:$4 sm:$0xff]  }
 0x243   :  { %v4084_v4 = vpop.eup %4083 }
 0x244   :  { %v1147_v11 = vadd.f32 1.0, %v4084_v4  ;;  %v4086_v12 = vpop.eup %4085  ;;  %v4773_v4 = vld [vmem:[#allocation3 + $0x20] ss:$16 sps:$4 sm:$0xff]  }
 0x245   :  { %v4088_v22 = vpop.eup %4087  ;;  %v1148_v42 = vadd.f32 1.0, %v4086_v12  ;;  %v4789_v12 = vld [vmem:[#allocation3 + $0x60] ss:$16 sps:$4 sm:$0xff]  }
 0x246   :  { %4097 = vrcp.f32 %v1147_v11  ;;  %v1150_v43 = vadd.f32 1.0, %v4088_v22  ;;  %v4090_v45 = vpop.eup %4089  ;;  %v4781_v11 = vld [vmem:[#allocation3 + $0x40] ss:$16 sps:$4 sm:$0xff]  }
 0x247   :  { %4099 = vtanh.f32 %v3826_v5  ;;  %v1151_v46 = vadd.f32 1.0, %v4090_v45  ;;  %v4092_v47 = vpop.eup %4091  ;;  %v4778_v5 = vld [vmem:[#allocation3 + $0x44] ss:$16 sps:$4 sm:$0xff]  }
 0x248   :  { %4101 = vrcp.f32 %v1148_v42  ;;  %v4094_v48 = vpop.eup %4093 }
 0x249   :  { %4103 = vrcp.f32 %v1150_v43  ;;  %v4096_v49 = vpop.eup %4095  ;;  %v1149_v10 = vadd.f32 1.0, %v4094_v48 }
 0x24a   :  { %4105 = vrcp.f32 %v1151_v46  ;;  %v1152_v52 = vadd.f32 1.0, %v4096_v49 }
 0x24b   :  { %4107 = vrcp.f32 %v1149_v10 }
 0x250   :  { %v4098_v50 = vpop.eup %4097 }
 0x251   :  { %v4100_v51 = vpop.eup %4099  ;;  %v1169_v6 = vmul.f32 %v4098_v50, %v4092_v47 }
 0x252   :  { %v4102_v8 = vpop.eup %4101 }
 0x253   :  { %v4104_v9 = vpop.eup %4103  ;;  %v1167_v13 = vmul.f32 %v4102_v8, %v4702_v32 }
 0x254   :  { %v1170_v14 = vmul.f32 %v4104_v9, %v4100_v51  ;;  %v4106_v17 = vpop.eup %4105 }
 0x255   :  { %v4749_v19 = vadd.f32 %v1169_v6, %v1167_v13  ;;  %v1168_v55 = vmul.f32 %v4106_v17, %v4705_v44  ;;  %v4108_v57 = vpop.eup %4107  ;;  %v4758_v44 = vld [vmem:[#allocation3 + $0x4] ss:$16 sps:$4 sm:$0xff]  }
 0x256   :  { %1747 = vmatprep.subr.bf16.mxu0 %v4758_v44 }
 0x257   :  { %4109 = vtanh.f32 %v4749_v19  ;;  %v4753_v56 = vadd.f32 %v1170_v14, %v1168_v55 }
 0x258   :  { %4111 = vrcp.f32 %v1152_v52 }
 0x259   :  { %4113 = vtanh.f32 %v4753_v56 }
 0x261   :  { %v4110_v58 = vpop.eup %4109 }
 0x262   :  { %v4112_v59 = vpop.eup %4111  ;;  %v1175_v32 = vmul.f32 %v4110_v58, %v4108_v57 }
 0x263   :  { %v4114_v60 = vpop.eup %4113 }
 0x264   :  { %v1176_v61 = vmul.f32 %v4114_v60, %v4112_v59 }
 0x266   :  { %v1177_v62 = vpack.c.bf16 %v1176_v61, %v1175_v32 }
 0x268   :  { %3756 = vst [vmem:[#allocation6 + $0x8] sm:$0xff] %v1177_v62   ;;  %1424 = vmatmul.mubr.bf16.vlgmr.msra.gmra.mrb[8].mxu0 %v1177_v62  ;;  %1467 = vmatmul.mubr.bf16.vlgmr.msra.gmra.mrb[8].mxu1 %v1177_v62 }
 0x269   :  { %1779 = vmatprep.mubr.bf16.mxu0 %v4404_v0  ;;  %1822 = vmatprep.mubr.bf16.mxu1 %v4404_v0 }
 0x26a   :  { %1748 = vmatpush1.bf16.msra.mxu0 %v4762_v1  ;;  %1791 = vmatpush1.bf16.msra.mxu1 %v4764_v2 }
 0x26b   :  { %1792 = vmatprep.subr.bf16.mxu1 %v4515_v15  ;;  %1749 = vmatprep.subr.bf16.mxu0 %v4770_v3  ;;  %v4786_v15 = vld [vmem:[#allocation3 + $0x64] ss:$16 sps:$4 sm:$0xff]  }
 0x26e   :  { %1750 = vmatpush1.bf16.msra.mxu0 %v4773_v4  ;;  %1793 = vmatpush1.bf16.msra.mxu1 %v4518_v16 }
 0x26f   :  { %1794 = vmatprep.subr.bf16.mxu1 %v4525_v18  ;;  %1751 = vmatprep.subr.bf16.mxu0 %v4778_v5 }
 0x272   :  { %1752 = vmatpush1.bf16.msra.mxu0 %v4781_v11  ;;  %1795 = vmatpush1.bf16.msra.mxu1 %v4533_v20 }
 0x273   :  { %1796 = vmatprep.subr.bf16.mxu1 %v4542_v23  ;;  %1753 = vmatprep.subr.bf16.mxu0 %v4786_v15 }
 0x276   :  { %1754 = vmatpush1.bf16.msra.mxu0 %v4789_v12  ;;  %1797 = vmatpush1.bf16.msra.mxu1 %v4548_v25 }
 0x277   :  { %1755 = vmatprep.subr.bf16.mxu0 %v4537_v21  ;;  %1798 = vmatprep.subr.bf16.mxu1 %v4556_v27 }
 0x27a   :  { %1756 = vmatpush1.bf16.msra.mxu0 %v4545_v24  ;;  %1799 = vmatpush1.bf16.msra.mxu1 %v4564_v29 }
 0x27b   :  { %1757 = vmatprep.subr.bf16.mxu0 %v4552_v26  ;;  %1800 = vmatprep.subr.bf16.mxu1 %v4570_v31 }
 0x27e   :  { %1758 = vmatpush1.bf16.msra.mxu0 %v4561_v28  ;;  %1801 = vmatpush1.bf16.msra.mxu1 %v4579_v34 }
 0x27f   :  { %1759 = vmatprep.subr.bf16.mxu0 %v4568_v30  ;;  %1802 = vmatprep.subr.bf16.mxu1 %v4585_v36 }
 0x282   :  { %1760 = vmatpush1.bf16.msra.mxu0 %v4575_v33  ;;  %1803 = vmatpush1.bf16.msra.mxu1 %v4593_v38 }
 0x283   :  { %1761 = vmatprep.subr.bf16.mxu0 %v4583_v35  ;;  %1804 = vmatprep.subr.bf16.mxu1 %v4595_v39 }
 0x286   :  { %1762 = vmatpush1.bf16.msra.mxu0 %v4591_v37  ;;  %1805 = vmatpush1.bf16.msra.mxu1 %v4604_v41 }
 0x287   :  { %2103 = vmatprep.subr.bf16.mxu0 %v4758_v44  ;;  %2146 = vmatprep.subr.bf16.mxu1 %v4760_v63 }
 0x33b   :  { %v1425_v16 = vpop.f32.mrb[8].mxu0  ;;  %v1468_v18 = vpop.f32.mrb[8].mxu1 }
 0x33c   :  { %v3795_v20 = vadd.f32 %v1425_v16, %v4680_v53  ;;  %v1427_v21 = vpop.f32.mrb[9].mxu0  ;;  %v1470_v23 = vpop.f32.mrb[9].mxu1  ;;  %v3827_v36 = vadd.f32 %v1468_v18, %v4687_v7 }
 0x33d   :  { %v3796_v24 = vadd.f32 %v1427_v21, %v4682_v54  ;;  %v1429_v25 = vpop.f32.mrb[10].mxu0  ;;  %v1472_v26 = vpop.f32.mrb[10].mxu1  ;;  %v3828_v38 = vadd.f32 %v1470_v23, %v4690_v40 }
 0x33e   :  { %v3523_v27 = vmul.f32 -1.442695, %v3795_v20  ;;  %v3797_v28 = vadd.f32 %v1429_v25, %v4680_v53  ;;  %v1431_v29 = vpop.f32.mrb[11].mxu0  ;;  %v1474_v30 = vpop.f32.mrb[11].mxu1  ;;  %v3829_v37 = vadd.f32 %v1472_v26, %v4687_v7  ;;  %v3525_v39 = vmul.f32 -1.442695, %v3827_v36 }
 0x33f   :  { %v3524_v31 = vmul.f32 -1.442695, %v3796_v24  ;;  %v3798_v33 = vadd.f32 %v1431_v29, %v4682_v54  ;;  %v3830_v42 = vadd.f32 %v1474_v30, %v4690_v40  ;;  %v4840_v24 = vld [vmem:[#allocation3 + $0x28] ss:$16 sps:$4 sm:$0xff]   ;;  %v4844_v25 = vld [vmem:[#allocation3 + $0x4c] ss:$16 sps:$4 sm:$0xff]  }
 0x340   :  { %4115 = vpow2.f32 %v3523_v27  ;;  %v3526_v34 = vmul.f32 -1.442695, %v3797_v28  ;;  %v3528_v41 = vmul.f32 -1.442695, %v3829_v37  ;;  %v4846_v26 = vld [vmem:[#allocation3 + $0x48] ss:$16 sps:$4 sm:$0xff]  }
 0x341   :  { %v3527_v35 = vmul.f32 -1.442695, %v3798_v33  ;;  %4117 = vpow2.f32 %v3524_v31  ;;  %v4850_v27 = vld [vmem:[#allocation3 + $0x6c] ss:$16 sps:$4 sm:$0xff]   ;;  %v4852_v28 = vld [vmem:[#allocation3 + $0x68] ss:$16 sps:$4 sm:$0xff]  }
 0x342   :  { %4119 = vpow2.f32 %v3526_v34  ;;  %v4856_v29 = vld [vmem:[#allocation3 + $0x80] ss:$16 sps:$4 sm:$0xff]   ;;  %v4858_v30 = vld [vmem:[#allocation3 + $0x84] ss:$16 sps:$4 sm:$0xff]   ;;  %v4860_v31 = vld [vmem:[#allocation3 + $0x88] ss:$16 sps:$4 sm:$0xff]  }
 0x343   :  { %4121 = vpow2.f32 %v3527_v35  ;;  %v4862_v33 = vld [vmem:[#allocation3 + $0x8c] ss:$16 sps:$4 sm:$0xff]   ;;  %v4864_v34 = vld [vmem:[#allocation3 + $0xa4] ss:$16 sps:$4 sm:$0xff]   ;;  %v4871_v36 = vld [vmem:[#allocation3 + $0xa0] ss:$16 sps:$4 sm:$0xff]  }
 0x344   :  { %4123 = vtanh.f32 %v3828_v38  ;;  %v4867_v35 = vld [vmem:[#allocation3 + $0xac] ss:$16 sps:$4 sm:$0xff]   ;;  %v4875_v37 = vld [vmem:[#allocation3 + $0xa8] ss:$16 sps:$4 sm:$0xff]   ;;  %v4877_v38 = vld [vmem:[#allocation3 + $0xc4] ss:$16 sps:$4 sm:$0xff]  }
 0x345   :  { %4125 = vpow2.f32 %v3525_v39  ;;  %v4880_v39 = vld [vmem:[#allocation3 + $0xcc] ss:$16 sps:$4 sm:$0xff]  }
 0x346   :  { %4127 = vpow2.f32 %v3528_v41  ;;  %v4883_v41 = vld [vmem:[#allocation3 + $0xc0] ss:$16 sps:$4 sm:$0xff]  }
 0x34a   :  { %v4116_v22 = vpop.eup %4115 }
 0x34b   :  { %v1503_v43 = vadd.f32 1.0, %v4116_v22  ;;  %v4118_v45 = vpop.eup %4117  ;;  %v4887_v22 = vld [vmem:[#allocation3 + $0xc8] ss:$16 sps:$4 sm:$0xff]  }
 0x34c   :  { %v4120_v46 = vpop.eup %4119  ;;  %v1504_v47 = vadd.f32 1.0, %v4118_v45  ;;  %v4895_v45 = vld [vmem:[#allocation3 + $0xe0] ss:$16 sps:$4 sm:$0xff]  }
 0x34d   :  { %4129 = vrcp.f32 %v1503_v43  ;;  %v1506_v48 = vadd.f32 1.0, %v4120_v46  ;;  %v4122_v49 = vpop.eup %4121  ;;  %v4892_v43 = vld [vmem:[#allocation3 + $0xec] ss:$16 sps:$4 sm:$0xff]   ;;  %v4899_v46 = vld [vmem:[#allocation3 + $0xe8] ss:$16 sps:$4 sm:$0xff]  }
 0x34e   :  { %4131 = vtanh.f32 %v3830_v42  ;;  %v1507_v50 = vadd.f32 1.0, %v4122_v49  ;;  %v4124_v51 = vpop.eup %4123  ;;  %v4889_v42 = vld [vmem:[#allocation3 + $0xe4] ss:$16 sps:$4 sm:$0xff]  }
 0x34f   :  { %4133 = vrcp.f32 %v1504_v47  ;;  %v4126_v6 = vpop.eup %4125 }
 0x350   :  { %4135 = vrcp.f32 %v1506_v48  ;;  %v4128_v8 = vpop.eup %4127  ;;  %v1505_v52 = vadd.f32 1.0, %v4126_v6 }
 0x351   :  { %4137 = vrcp.f32 %v1507_v50  ;;  %v1508_v60 = vadd.f32 1.0, %v4128_v8 }
 0x352   :  { %4139 = vrcp.f32 %v1505_v52 }
 0x357   :  { %v4130_v9 = vpop.eup %4129 }
 0x358   :  { %v4132_v10 = vpop.eup %4131  ;;  %v1525_v13 = vmul.f32 %v4130_v9, %v4124_v51 }
 0x359   :  { %v4134_v14 = vpop.eup %4133 }
 0x35a   :  { %v4136_v17 = vpop.eup %4135  ;;  %v1523_v55 = vmul.f32 %v4134_v14, %v4749_v19 }
 0x35b   :  { %v1526_v57 = vmul.f32 %v4136_v17, %v4132_v10  ;;  %v4138_v58 = vpop.eup %4137 }
 0x35c   :  { %v4821_v59 = vadd.f32 %v1525_v13, %v1523_v55  ;;  %v1524_v32 = vmul.f32 %v4138_v58, %v4753_v56  ;;  %v4140_v62 = vpop.eup %4139  ;;  %v4838_v56 = vld [vmem:[#allocation3 + $0x2c] ss:$16 sps:$4 sm:$0xff]  }
 0x35e   :  { %4141 = vtanh.f32 %v4821_v59  ;;  %v4825_v61 = vadd.f32 %v1526_v57, %v1524_v32 }
 0x35f   :  { %4143 = vrcp.f32 %v1508_v60 }
 0x360   :  { %4145 = vtanh.f32 %v4825_v61 }
 0x368   :  { %v4142_v16 = vpop.eup %4141 }
 0x369   :  { %v4144_v18 = vpop.eup %4143  ;;  %v1531_v19 = vmul.f32 %v4142_v16, %v4140_v62 }
 0x36a   :  { %v4146_v20 = vpop.eup %4145 }
 0x36b   :  { %v1532_v21 = vmul.f32 %v4146_v20, %v4144_v18 }
 0x36d   :  { %v1533_v23 = vpack.c.bf16 %v1532_v21, %v1531_v19 }
 0x36f   :  { %3761 = vst [vmem:[#allocation6 + $0x10] sm:$0xff] %v1533_v23   ;;  %1780 = vmatmul.mubr.bf16.vlgmr.msra.gmra.mrb[12].mxu0 %v1533_v23  ;;  %1823 = vmatmul.mubr.bf16.vlgmr.msra.gmra.mrb[12].mxu1 %v1533_v23 }
 0x370   :  { %2104 = vmatpush1.bf16.msra.mxu0 %v4762_v1  ;;  %2147 = vmatpush1.bf16.msra.mxu1 %v4764_v2 }
 0x371   :  { %2105 = vmatprep.subr.bf16.mxu0 %v4770_v3  ;;  %2135 = vmatprep.mubr.bf16.mxu0 %v4404_v0 }
 0x372   :  { %2178 = vmatprep.mubr.bf16.mxu1 %v4404_v0  ;;  %2148 = vmatprep.subr.bf16.mxu1 %v4838_v56 }
 0x374   :  { %2106 = vmatpush1.bf16.msra.mxu0 %v4773_v4  ;;  %2149 = vmatpush1.bf16.msra.mxu1 %v4840_v24 }
 0x375   :  { %2107 = vmatprep.subr.bf16.mxu0 %v4778_v5  ;;  %2150 = vmatprep.subr.bf16.mxu1 %v4844_v25 }
 0x378   :  { %2108 = vmatpush1.bf16.msra.mxu0 %v4781_v11  ;;  %2151 = vmatpush1.bf16.msra.mxu1 %v4846_v26 }
 0x379   :  { %2109 = vmatprep.subr.bf16.mxu0 %v4786_v15  ;;  %2152 = vmatprep.subr.bf16.mxu1 %v4850_v27 }
 0x37c   :  { %2110 = vmatpush1.bf16.msra.mxu0 %v4789_v12  ;;  %2153 = vmatpush1.bf16.msra.mxu1 %v4852_v28 }
 0x37d   :  { %2111 = vmatprep.subr.bf16.mxu0 %v4858_v30  ;;  %2154 = vmatprep.subr.bf16.mxu1 %v4862_v33 }
 0x380   :  { %2112 = vmatpush1.bf16.msra.mxu0 %v4856_v29  ;;  %2155 = vmatpush1.bf16.msra.mxu1 %v4860_v31 }
 0x381   :  { %2113 = vmatprep.subr.bf16.mxu0 %v4864_v34  ;;  %2156 = vmatprep.subr.bf16.mxu1 %v4867_v35 }
 0x384   :  { %2114 = vmatpush1.bf16.msra.mxu0 %v4871_v36  ;;  %2157 = vmatpush1.bf16.msra.mxu1 %v4875_v37 }
 0x385   :  { %2115 = vmatprep.subr.bf16.mxu0 %v4877_v38  ;;  %2158 = vmatprep.subr.bf16.mxu1 %v4880_v39 }
 0x388   :  { %2116 = vmatpush1.bf16.msra.mxu0 %v4883_v41  ;;  %2159 = vmatpush1.bf16.msra.mxu1 %v4887_v22 }
 0x389   :  { %2117 = vmatprep.subr.bf16.mxu0 %v4889_v42  ;;  %2160 = vmatprep.subr.bf16.mxu1 %v4892_v43 }
 0x38c   :  { %2118 = vmatpush1.bf16.msra.mxu0 %v4895_v45  ;;  %2161 = vmatpush1.bf16.msra.mxu1 %v4899_v46 }
 0x38d   :  { %2459 = vmatprep.subr.bf16.mxu0 %v4758_v44  ;;  %2502 = vmatprep.subr.bf16.mxu1 %v4760_v63 }
 0x442   :  { %v1781_v47 = vpop.f32.mrb[12].mxu0  ;;  %v1824_v48 = vpop.f32.mrb[12].mxu1 }
 0x443   :  { %v3799_v49 = vadd.f32 %v1781_v47, %v4680_v53  ;;  %v1783_v50 = vpop.f32.mrb[13].mxu0  ;;  %v1826_v51 = vpop.f32.mrb[13].mxu1  ;;  %v3831_v60 = vadd.f32 %v1824_v48, %v4687_v7 }
 0x444   :  { %v3800_v6 = vadd.f32 %v1783_v50, %v4682_v54  ;;  %v1785_v8 = vpop.f32.mrb[14].mxu0  ;;  %v1828_v9 = vpop.f32.mrb[14].mxu1  ;;  %v3832_v62 = vadd.f32 %v1826_v51, %v4690_v40 }
 0x445   :  { %v3563_v10 = vmul.f32 -1.442695, %v3799_v49  ;;  %v3801_v13 = vadd.f32 %v1785_v8, %v4680_v53  ;;  %v1787_v14 = vpop.f32.mrb[15].mxu0  ;;  %v1830_v17 = vpop.f32.mrb[15].mxu1  ;;  %v3833_v32 = vadd.f32 %v1828_v9, %v4687_v7  ;;  %v3565_v16 = vmul.f32 -1.442695, %v3831_v60 }
 0x446   :  { %v3564_v52 = vmul.f32 -1.442695, %v3800_v6  ;;  %v3802_v55 = vadd.f32 %v1787_v14, %v4682_v54  ;;  %v3834_v19 = vadd.f32 %v1830_v17, %v4690_v40 }
 0x447   :  { %4147 = vpow2.f32 %v3563_v10  ;;  %v3566_v57 = vmul.f32 -1.442695, %v3801_v13  ;;  %v3568_v18 = vmul.f32 -1.442695, %v3833_v32 }
 0x448   :  { %v3567_v58 = vmul.f32 -1.442695, %v3802_v55  ;;  %4149 = vpow2.f32 %v3564_v52 }
 0x449   :  { %4151 = vpow2.f32 %v3566_v57 }
 0x44a   :  { %4153 = vpow2.f32 %v3567_v58 }
 0x44b   :  { %4155 = vtanh.f32 %v3832_v62 }
 0x44c   :  { %4157 = vpow2.f32 %v3565_v16 }
 0x44d   :  { %4159 = vpow2.f32 %v3568_v18 }
 0x451   :  { %v4148_v20 = vpop.eup %4147 }
 0x452   :  { %v1859_v21 = vadd.f32 1.0, %v4148_v20  ;;  %v4150_v23 = vpop.eup %4149 }
 0x453   :  { %v4152_v47 = vpop.eup %4151  ;;  %v1860_v49 = vadd.f32 1.0, %v4150_v23 }
 0x454   :  { %4161 = vrcp.f32 %v1859_v21  ;;  %v1862_v48 = vadd.f32 1.0, %v4152_v47  ;;  %v4154_v50 = vpop.eup %4153 }
 0x455   :  { %4163 = vtanh.f32 %v3834_v19  ;;  %v1863_v6 = vadd.f32 1.0, %v4154_v50  ;;  %v4156_v51 = vpop.eup %4155 }
 0x456   :  { %4165 = vrcp.f32 %v1860_v49  ;;  %v4158_v8 = vpop.eup %4157 }
 0x457   :  { %4167 = vrcp.f32 %v1862_v48  ;;  %v4160_v9 = vpop.eup %4159  ;;  %v1861_v55 = vadd.f32 1.0, %v4158_v8 }
 0x458   :  { %4169 = vrcp.f32 %v1863_v6  ;;  %v1864_v62 = vadd.f32 1.0, %v4160_v9 }
 0x459   :  { %4171 = vrcp.f32 %v1861_v55 }
 0x45e   :  { %v4162_v10 = vpop.eup %4161 }
 0x45f   :  { %v4164_v13 = vpop.eup %4163  ;;  %v1881_v14 = vmul.f32 %v4162_v10, %v4156_v51 }
 0x460   :  { %v4166_v17 = vpop.eup %4165 }
 0x461   :  { %v4168_v52 = vpop.eup %4167  ;;  %v1879_v57 = vmul.f32 %v4166_v17, %v4821_v59 }
 0x462   :  { %v1882_v58 = vmul.f32 %v4168_v52, %v4164_v13  ;;  %v4170_v60 = vpop.eup %4169 }
 0x463   :  { %v4915_v32 = vadd.f32 %v1881_v14, %v1879_v57  ;;  %v1880_v16 = vmul.f32 %v4170_v60, %v4825_v61  ;;  %v4172_v20 = vpop.eup %4171 }
 0x465   :  { %4173 = vtanh.f32 %v4915_v32  ;;  %v4919_v18 = vadd.f32 %v1882_v58, %v1880_v16 }
 0x466   :  { %4175 = vrcp.f32 %v1864_v62 }
 0x467   :  { %4177 = vtanh.f32 %v4919_v18 }
 0x46f   :  { %v4174_v19 = vpop.eup %4173 }
 0x470   :  { %v4176_v21 = vpop.eup %4175  ;;  %v1887_v59 = vmul.f32 %v4174_v19, %v4172_v20 }
 0x471   :  { %v4178_v23 = vpop.eup %4177 }
 0x472   :  { %v1888_v47 = vmul.f32 %v4178_v23, %v4176_v21 }
 0x474   :  { %v1889_v49 = vpack.c.bf16 %v1888_v47, %v1887_v59 }
 0x476   :  { %3766 = vst [vmem:[#allocation6 + $0x18] sm:$0xff] %v1889_v49   ;;  %2136 = vmatmul.mubr.bf16.vlgmr.msra.gmra.mrb[16].mxu0 %v1889_v49  ;;  %2179 = vmatmul.mubr.bf16.vlgmr.msra.gmra.mrb[16].mxu1 %v1889_v49 }
 0x477   :  { %2460 = vmatpush1.bf16.msra.mxu0 %v4762_v1  ;;  %2503 = vmatpush1.bf16.msra.mxu1 %v4764_v2 }
 0x478   :  { %2461 = vmatprep.subr.bf16.mxu0 %v4770_v3  ;;  %2504 = vmatprep.subr.bf16.mxu1 %v4838_v56 }
 0x479   :  { %2491 = vmatprep.mubr.bf16.mxu0 %v4404_v0  ;;  %2534 = vmatprep.mubr.bf16.mxu1 %v4404_v0 }
 0x47b   :  { %2462 = vmatpush1.bf16.msra.mxu0 %v4773_v4  ;;  %2505 = vmatpush1.bf16.msra.mxu1 %v4840_v24 }
 0x47c   :  { %2463 = vmatprep.subr.bf16.mxu0 %v4778_v5  ;;  %2506 = vmatprep.subr.bf16.mxu1 %v4844_v25 }
 0x47f   :  { %2464 = vmatpush1.bf16.msra.mxu0 %v4781_v11  ;;  %2507 = vmatpush1.bf16.msra.mxu1 %v4846_v26 }
 0x480   :  { %2465 = vmatprep.subr.bf16.mxu0 %v4786_v15  ;;  %2508 = vmatprep.subr.bf16.mxu1 %v4850_v27 }
 0x483   :  { %2466 = vmatpush1.bf16.msra.mxu0 %v4789_v12  ;;  %2509 = vmatpush1.bf16.msra.mxu1 %v4852_v28 }
 0x484   :  { %2467 = vmatprep.subr.bf16.mxu0 %v4858_v30  ;;  %2510 = vmatprep.subr.bf16.mxu1 %v4862_v33 }
 0x487   :  { %2468 = vmatpush1.bf16.msra.mxu0 %v4856_v29  ;;  %2511 = vmatpush1.bf16.msra.mxu1 %v4860_v31 }
 0x488   :  { %2469 = vmatprep.subr.bf16.mxu0 %v4864_v34  ;;  %2512 = vmatprep.subr.bf16.mxu1 %v4867_v35 }
 0x48b   :  { %2470 = vmatpush1.bf16.msra.mxu0 %v4871_v36  ;;  %2513 = vmatpush1.bf16.msra.mxu1 %v4875_v37 }
 0x48c   :  { %2471 = vmatprep.subr.bf16.mxu0 %v4877_v38  ;;  %2514 = vmatprep.subr.bf16.mxu1 %v4880_v39 }
 0x48f   :  { %2472 = vmatpush1.bf16.msra.mxu0 %v4883_v41  ;;  %2515 = vmatpush1.bf16.msra.mxu1 %v4887_v22 }
 0x490   :  { %2473 = vmatprep.subr.bf16.mxu0 %v4889_v42  ;;  %2516 = vmatprep.subr.bf16.mxu1 %v4892_v43 }
 0x493   :  { %2474 = vmatpush1.bf16.msra.mxu0 %v4895_v45  ;;  %2517 = vmatpush1.bf16.msra.mxu1 %v4899_v46 }
 0x494   :  { %2815 = vmatprep.subr.bf16.mxu0 %v4758_v44  ;;  %2858 = vmatprep.subr.bf16.mxu1 %v4760_v63 }
 0x549   :  { %v2137_v61 = vpop.f32.mrb[16].mxu0  ;;  %v2180_v48 = vpop.f32.mrb[16].mxu1 }
 0x54a   :  { %v3803_v50 = vadd.f32 %v2137_v61, %v4680_v53  ;;  %v2139_v6 = vpop.f32.mrb[17].mxu0  ;;  %v2182_v51 = vpop.f32.mrb[17].mxu1  ;;  %v3835_v58 = vadd.f32 %v2180_v48, %v4687_v7 }
 0x54b   :  { %v3804_v8 = vadd.f32 %v2139_v6, %v4682_v54  ;;  %v2141_v9 = vpop.f32.mrb[18].mxu0  ;;  %v2184_v10 = vpop.f32.mrb[18].mxu1  ;;  %v3836_v62 = vadd.f32 %v2182_v51, %v4690_v40 }
 0x54c   :  { %v3603_v13 = vmul.f32 -1.442695, %v3803_v50  ;;  %v3805_v14 = vadd.f32 %v2141_v9, %v4680_v53  ;;  %v2143_v17 = vpop.f32.mrb[19].mxu0  ;;  %v2186_v52 = vpop.f32.mrb[19].mxu1  ;;  %v3837_v60 = vadd.f32 %v2184_v10, %v4687_v7  ;;  %v3605_v16 = vmul.f32 -1.442695, %v3835_v58 }
 0x54d   :  { %v3604_v55 = vmul.f32 -1.442695, %v3804_v8  ;;  %v3806_v44 = vadd.f32 %v2143_v17, %v4682_v54  ;;  %v3838_v21 = vadd.f32 %v2186_v52, %v4690_v40 }
 0x54e   :  { %4179 = vpow2.f32 %v3603_v13  ;;  %v3606_v63 = vmul.f32 -1.442695, %v3805_v14  ;;  %v3608_v20 = vmul.f32 -1.442695, %v3837_v60 }
 0x54f   :  { %v3607_v57 = vmul.f32 -1.442695, %v3806_v44  ;;  %4181 = vpow2.f32 %v3604_v55 }
 0x550   :  { %4183 = vpow2.f32 %v3606_v63 }
 0x551   :  { %4185 = vpow2.f32 %v3607_v57 }
 0x552   :  { %4187 = vtanh.f32 %v3836_v62 }
 0x553   :  { %4189 = vpow2.f32 %v3605_v16 }
 0x554   :  { %4191 = vpow2.f32 %v3608_v20 }
 0x558   :  { %v4180_v19 = vpop.eup %4179 }
 0x559   :  { %v2215_v23 = vadd.f32 1.0, %v4180_v19  ;;  %v4182_v59 = vpop.eup %4181 }
 0x55a   :  { %v4184_v47 = vpop.eup %4183  ;;  %v2216_v49 = vadd.f32 1.0, %v4182_v59 }
 0x55b   :  { %4193 = vrcp.f32 %v2215_v23  ;;  %v2218_v61 = vadd.f32 1.0, %v4184_v47  ;;  %v4186_v48 = vpop.eup %4185 }
 0x55c   :  { %4195 = vtanh.f32 %v3838_v21  ;;  %v2219_v50 = vadd.f32 1.0, %v4186_v48  ;;  %v4188_v6 = vpop.eup %4187 }
 0x55d   :  { %4197 = vrcp.f32 %v2216_v49  ;;  %v4190_v51 = vpop.eup %4189 }
 0x55e   :  { %4199 = vrcp.f32 %v2218_v61  ;;  %v4192_v8 = vpop.eup %4191  ;;  %v2217_v52 = vadd.f32 1.0, %v4190_v51 }
 0x55f   :  { %4201 = vrcp.f32 %v2219_v50  ;;  %v2220_v58 = vadd.f32 1.0, %v4192_v8 }
 0x560   :  { %4203 = vrcp.f32 %v2217_v52 }
 0x565   :  { %v4194_v9 = vpop.eup %4193 }
 0x566   :  { %v4196_v10 = vpop.eup %4195  ;;  %v2237_v13 = vmul.f32 %v4194_v9, %v4188_v6 }
 0x567   :  { %v4198_v14 = vpop.eup %4197 }
 0x568   :  { %v4200_v17 = vpop.eup %4199  ;;  %v2235_v55 = vmul.f32 %v4198_v14, %v4915_v32 }
 0x569   :  { %v2238_v44 = vmul.f32 %v4200_v17, %v4196_v10  ;;  %v4202_v63 = vpop.eup %4201 }
 0x56a   :  { %v4965_v57 = vadd.f32 %v2237_v13, %v2235_v55  ;;  %v2236_v60 = vmul.f32 %v4202_v63, %v4919_v18  ;;  %v4204_v16 = vpop.eup %4203 }
 0x56c   :  { %4205 = vtanh.f32 %v4965_v57  ;;  %v4969_v62 = vadd.f32 %v2238_v44, %v2236_v60 }
 0x56d   :  { %4207 = vrcp.f32 %v2220_v58 }
 0x56e   :  { %4209 = vtanh.f32 %v4969_v62 }
 0x576   :  { %v4206_v20 = vpop.eup %4205 }
 0x577   :  { %v4208_v19 = vpop.eup %4207  ;;  %v2243_v32 = vmul.f32 %v4206_v20, %v4204_v16 }
 0x578   :  { %v4210_v21 = vpop.eup %4209 }
 0x579   :  { %v2244_v23 = vmul.f32 %v4210_v21, %v4208_v19 }
 0x57b   :  { %v2245_v59 = vpack.c.bf16 %v2244_v23, %v2243_v32 }
 0x57d   :  { %3771 = vst [vmem:[#allocation6 + $0x20] sm:$0xff] %v2245_v59   ;;  %2492 = vmatmul.mubr.bf16.vlgmr.msra.gmra.mrb[20].mxu0 %v2245_v59  ;;  %2535 = vmatmul.mubr.bf16.vlgmr.msra.gmra.mrb[20].mxu1 %v2245_v59 }
 0x57e   :  { %2816 = vmatpush1.bf16.msra.mxu0 %v4762_v1  ;;  %2859 = vmatpush1.bf16.msra.mxu1 %v4764_v2 }
 0x57f   :  { %2817 = vmatprep.subr.bf16.mxu0 %v4770_v3  ;;  %2860 = vmatprep.subr.bf16.mxu1 %v4838_v56 }
 0x580   :  { %2847 = vmatprep.mubr.bf16.mxu0 %v4404_v0  ;;  %2890 = vmatprep.mubr.bf16.mxu1 %v4404_v0 }
 0x582   :  { %2818 = vmatpush1.bf16.msra.mxu0 %v4773_v4  ;;  %2861 = vmatpush1.bf16.msra.mxu1 %v4840_v24 }
 0x583   :  { %2819 = vmatprep.subr.bf16.mxu0 %v4778_v5  ;;  %2862 = vmatprep.subr.bf16.mxu1 %v4844_v25 }
 0x586   :  { %2820 = vmatpush1.bf16.msra.mxu0 %v4781_v11  ;;  %2863 = vmatpush1.bf16.msra.mxu1 %v4846_v26 }
 0x587   :  { %2821 = vmatprep.subr.bf16.mxu0 %v4786_v15  ;;  %2864 = vmatprep.subr.bf16.mxu1 %v4850_v27 }
 0x58a   :  { %2822 = vmatpush1.bf16.msra.mxu0 %v4789_v12  ;;  %2865 = vmatpush1.bf16.msra.mxu1 %v4852_v28 }
 0x58b   :  { %2823 = vmatprep.subr.bf16.mxu0 %v4858_v30  ;;  %2866 = vmatprep.subr.bf16.mxu1 %v4862_v33 }
 0x58e   :  { %2824 = vmatpush1.bf16.msra.mxu0 %v4856_v29  ;;  %2867 = vmatpush1.bf16.msra.mxu1 %v4860_v31 }
 0x58f   :  { %2825 = vmatprep.subr.bf16.mxu0 %v4864_v34  ;;  %2868 = vmatprep.subr.bf16.mxu1 %v4867_v35 }
 0x592   :  { %2826 = vmatpush1.bf16.msra.mxu0 %v4871_v36  ;;  %2869 = vmatpush1.bf16.msra.mxu1 %v4875_v37 }
 0x593   :  { %2827 = vmatprep.subr.bf16.mxu0 %v4877_v38  ;;  %2870 = vmatprep.subr.bf16.mxu1 %v4880_v39 }
 0x596   :  { %2828 = vmatpush1.bf16.msra.mxu0 %v4883_v41  ;;  %2871 = vmatpush1.bf16.msra.mxu1 %v4887_v22 }
 0x597   :  { %2829 = vmatprep.subr.bf16.mxu0 %v4889_v42  ;;  %2872 = vmatprep.subr.bf16.mxu1 %v4892_v43 }
 0x59a   :  { %2830 = vmatpush1.bf16.msra.mxu0 %v4895_v45  ;;  %2873 = vmatpush1.bf16.msra.mxu1 %v4899_v46 }
 0x650   :  { %v2493_v1 = vpop.f32.mrb[20].mxu0  ;;  %v2536_v2 = vpop.f32.mrb[20].mxu1 }
 0x651   :  { %v3807_v3 = vadd.f32 %v2493_v1, %v4680_v53  ;;  %v2495_v4 = vpop.f32.mrb[21].mxu0  ;;  %v2538_v5 = vpop.f32.mrb[21].mxu1  ;;  %v3839_v8 = vadd.f32 %v2536_v2, %v4687_v7 }
 0x652   :  { %v3808_v11 = vadd.f32 %v2495_v4, %v4682_v54  ;;  %v2497_v15 = vpop.f32.mrb[22].mxu0  ;;  %v2540_v12 = vpop.f32.mrb[22].mxu1  ;;  %v3840_v10 = vadd.f32 %v2538_v5, %v4690_v40 }
 0x653   :  { %v3643_v18 = vmul.f32 -1.442695, %v3807_v3  ;;  %v3809_v47 = vadd.f32 %v2497_v15, %v4680_v53  ;;  %v2499_v49 = vpop.f32.mrb[23].mxu0  ;;  %v2542_v61 = vpop.f32.mrb[23].mxu1  ;;  %v3841_v9 = vadd.f32 %v2540_v12, %v4687_v7  ;;  %v3645_v13 = vmul.f32 -1.442695, %v3839_v8 }
 0x654   :  { %v3644_v48 = vmul.f32 -1.442695, %v3808_v11  ;;  %v3810_v50 = vadd.f32 %v2499_v49, %v4682_v54  ;;  %v3842_v52 = vadd.f32 %v2542_v61, %v4690_v40 }
 0x655   :  { %4211 = vpow2.f32 %v3643_v18  ;;  %v3646_v6 = vmul.f32 -1.442695, %v3809_v47  ;;  %v3648_v14 = vmul.f32 -1.442695, %v3841_v9  ;;  %v4041_v9 = vld [vmem:[#allocation3 + $0xc] ss:$16 sps:$4 sm:$0xff]  }
 0x656   :  { %v3647_v51 = vmul.f32 -1.442695, %v3810_v50  ;;  %4213 = vpow2.f32 %v3644_v48  ;;  %3214 = vmatprep.subr.bf16.mxu1 %v4041_v9 }
 0x657   :  { %4215 = vpow2.f32 %v3646_v6 }
 0x658   :  { %4217 = vpow2.f32 %v3647_v51 }
 0x659   :  { %4219 = vtanh.f32 %v3840_v10  ;;  %v4036_v10 = vld [vmem:[#allocation3] ss:$16 sps:$4 sm:$0xff]  }
 0x65a   :  { %4221 = vpow2.f32 %v3645_v13  ;;  %v4039_v13 = vld [vmem:[#allocation3 + $0x8] ss:$16 sps:$4 sm:$0xff]  }
 0x65b   :  { %4223 = vpow2.f32 %v3648_v14  ;;  %v4044_v14 = vld [vmem:[#allocation3 + $0x24] ss:$16 sps:$4 sm:$0xff]  }
 0x65f   :  { %v4212_v17 = vpop.eup %4211 }
 0x660   :  { %v2571_v55 = vadd.f32 1.0, %v4212_v17  ;;  %v4214_v44 = vpop.eup %4213  ;;  %v4042_v17 = vld [vmem:[#allocation3 + $0x20] ss:$16 sps:$4 sm:$0xff]  }
 0x661   :  { %v4216_v63 = vpop.eup %4215  ;;  %v2572_v58 = vadd.f32 1.0, %v4214_v44  ;;  %v4048_v44 = vld [vmem:[#allocation3 + $0x60] ss:$16 sps:$4 sm:$0xff]  }
 0x662   :  { %4225 = vrcp.f32 %v2571_v55  ;;  %v2574_v60 = vadd.f32 1.0, %v4216_v63  ;;  %v4218_v16 = vpop.eup %4217  ;;  %v4050_v55 = vld [vmem:[#allocation3 + $0x64] ss:$16 sps:$4 sm:$0xff]  }
 0x663   :  { %4227 = vtanh.f32 %v3842_v52  ;;  %v2575_v20 = vadd.f32 1.0, %v4218_v16  ;;  %v4220_v19 = vpop.eup %4219  ;;  %v4047_v52 = vld [vmem:[#allocation3 + $0x44] ss:$16 sps:$4 sm:$0xff]  }
 0x664   :  { %4229 = vrcp.f32 %v2572_v58  ;;  %v4222_v21 = vpop.eup %4221 }
 0x665   :  { %4231 = vrcp.f32 %v2574_v60  ;;  %v4224_v32 = vpop.eup %4223  ;;  %v2573_v4 = vadd.f32 1.0, %v4222_v21 }
 0x666   :  { %4233 = vrcp.f32 %v2575_v20  ;;  %v2576_v18 = vadd.f32 1.0, %v4224_v32 }
 0x667   :  { %4235 = vrcp.f32 %v2573_v4 }
 0x66c   :  { %v4226_v23 = vpop.eup %4225 }
 0x66d   :  { %v4228_v59 = vpop.eup %4227  ;;  %v2593_v1 = vmul.f32 %v4226_v23, %v4220_v19 }
 0x66e   :  { %v4230_v2 = vpop.eup %4229 }
 0x66f   :  { %v4232_v3 = vpop.eup %4231  ;;  %v2591_v5 = vmul.f32 %v4230_v2, %v4965_v57 }
 0x670   :  { %v2594_v11 = vmul.f32 %v4232_v3, %v4228_v59  ;;  %v4234_v15 = vpop.eup %4233 }
 0x671   :  { %v5013_v12 = vadd.f32 %v2593_v1, %v2591_v5  ;;  %v2592_v47 = vmul.f32 %v4234_v15, %v4969_v62  ;;  %v4236_v61 = vpop.eup %4235  ;;  %v4038_v62 = vld [vmem:[#allocation3 + $0x4] ss:$16 sps:$4 sm:$0xff]  }
 0x672   :  { %3171 = vmatprep.subr.bf16.mxu0 %v4038_v62 }
 0x673   :  { %4237 = vtanh.f32 %v5013_v12  ;;  %v5017_v49 = vadd.f32 %v2594_v11, %v2592_v47 }
 0x674   :  { %4239 = vrcp.f32 %v2576_v18 }
 0x675   :  { %4241 = vtanh.f32 %v5017_v49 }
 0x67d   :  { %v4238_v48 = vpop.eup %4237 }
 0x67e   :  { %v4240_v50 = vpop.eup %4239  ;;  %v2599_v57 = vmul.f32 %v4238_v48, %v4236_v61 }
 0x67f   :  { %v4242_v6 = vpop.eup %4241 }
 0x680   :  { %v2600_v51 = vmul.f32 %v4242_v6, %v4240_v50 }
 0x682   :  { %v2601_v8 = vpack.c.bf16 %v2600_v51, %v2599_v57 }
 0x684   :  { %3776 = vst [vmem:[#allocation6 + $0x28] sm:$0xff] %v2601_v8   ;;  %2848 = vmatmul.mubr.bf16.vlgmr.msra.gmra.mrb[24].mxu0 %v2601_v8  ;;  %2891 = vmatmul.mubr.bf16.vlgmr.msra.gmra.mrb[24].mxu1 %v2601_v8 }
 0x685   :  { %3203 = vmatprep.mubr.bf16.mxu0 %v4404_v0  ;;  %3246 = vmatprep.mubr.bf16.mxu1 %v4404_v0  ;;  %v4045_v0 = vld [vmem:[#allocation3 + $0x40] ss:$16 sps:$4 sm:$0xff]  }
 0x686   :  { %3172 = vmatpush1.bf16.msra.mxu0 %v4036_v10  ;;  %3215 = vmatpush1.bf16.msra.mxu1 %v4039_v13 }
 0x687   :  { %3216 = vmatprep.subr.bf16.mxu1 %v4838_v56  ;;  %3173 = vmatprep.subr.bf16.mxu0 %v4044_v14 }
 0x68a   :  { %3174 = vmatpush1.bf16.msra.mxu0 %v4042_v17  ;;  %3217 = vmatpush1.bf16.msra.mxu1 %v4840_v24 }
 0x68b   :  { %3218 = vmatprep.subr.bf16.mxu1 %v4844_v25  ;;  %3175 = vmatprep.subr.bf16.mxu0 %v4047_v52 }
 0x68e   :  { %3176 = vmatpush1.bf16.msra.mxu0 %v4045_v0  ;;  %3219 = vmatpush1.bf16.msra.mxu1 %v4846_v26 }
 0x68f   :  { %3220 = vmatprep.subr.bf16.mxu1 %v4850_v27  ;;  %3177 = vmatprep.subr.bf16.mxu0 %v4050_v55 }
 0x692   :  { %3178 = vmatpush1.bf16.msra.mxu0 %v4048_v44  ;;  %3221 = vmatpush1.bf16.msra.mxu1 %v4852_v28 }
 0x693   :  { %3179 = vmatprep.subr.bf16.mxu0 %v4858_v30  ;;  %3222 = vmatprep.subr.bf16.mxu1 %v4862_v33 }
 0x696   :  { %3180 = vmatpush1.bf16.msra.mxu0 %v4856_v29  ;;  %3223 = vmatpush1.bf16.msra.mxu1 %v4860_v31 }
 0x697   :  { %3181 = vmatprep.subr.bf16.mxu0 %v4864_v34  ;;  %3224 = vmatprep.subr.bf16.mxu1 %v4867_v35 }
 0x69a   :  { %3182 = vmatpush1.bf16.msra.mxu0 %v4871_v36  ;;  %3225 = vmatpush1.bf16.msra.mxu1 %v4875_v37 }
 0x69b   :  { %3183 = vmatprep.subr.bf16.mxu0 %v4877_v38  ;;  %3226 = vmatprep.subr.bf16.mxu1 %v4880_v39 }
 0x69e   :  { %3184 = vmatpush1.bf16.msra.mxu0 %v4883_v41  ;;  %3227 = vmatpush1.bf16.msra.mxu1 %v4887_v22 }
 0x69f   :  { %3185 = vmatprep.subr.bf16.mxu0 %v4889_v42  ;;  %3228 = vmatprep.subr.bf16.mxu1 %v4892_v43 }
 0x6a2   :  { %3186 = vmatpush1.bf16.msra.mxu0 %v4895_v45  ;;  %3229 = vmatpush1.bf16.msra.mxu1 %v4899_v46 }
 0x757   :  { %v2849_v56 = vpop.f32.mrb[24].mxu0  ;;  %v2892_v24 = vpop.f32.mrb[24].mxu1 }
 0x758   :  { %v3811_v25 = vadd.f32 %v2849_v56, %v4680_v53  ;;  %v2851_v26 = vpop.f32.mrb[25].mxu0  ;;  %v2894_v27 = vpop.f32.mrb[25].mxu1  ;;  %v3843_v41 = vadd.f32 %v2892_v24, %v4687_v7 }
 0x759   :  { %v3812_v28 = vadd.f32 %v2851_v26, %v4682_v54  ;;  %v2853_v29 = vpop.f32.mrb[26].mxu0  ;;  %v2896_v30 = vpop.f32.mrb[26].mxu1  ;;  %v3844_v42 = vadd.f32 %v2894_v27, %v4690_v40 }
 0x75a   :  { %v3683_v31 = vmul.f32 -1.442695, %v3811_v25  ;;  %v3813_v33 = vadd.f32 %v2853_v29, %v4680_v53  ;;  %v2855_v34 = vpop.f32.mrb[27].mxu0  ;;  %v2898_v35 = vpop.f32.mrb[27].mxu1  ;;  %v3845_v22 = vadd.f32 %v2896_v30, %v4687_v7  ;;  %v3685_v43 = vmul.f32 -1.442695, %v3843_v41 }
 0x75b   :  { %v3684_v36 = vmul.f32 -1.442695, %v3812_v28  ;;  %v3814_v37 = vadd.f32 %v2855_v34, %v4682_v54  ;;  %v3846_v63 = vadd.f32 %v2898_v35, %v4690_v40 }
 0x75c   :  { %4243 = vpow2.f32 %v3683_v31  ;;  %v3686_v38 = vmul.f32 -1.442695, %v3813_v33  ;;  %v3688_v45 = vmul.f32 -1.442695, %v3845_v22 }
 0x75d   :  { %v3687_v39 = vmul.f32 -1.442695, %v3814_v37  ;;  %4245 = vpow2.f32 %v3684_v36 }
 0x75e   :  { %4247 = vpow2.f32 %v3686_v38 }
 0x75f   :  { %4249 = vpow2.f32 %v3687_v39 }
 0x760   :  { %4251 = vtanh.f32 %v3844_v42 }
 0x761   :  { %4253 = vpow2.f32 %v3685_v43 }
 0x762   :  { %4255 = vpow2.f32 %v3688_v45 }
 0x766   :  { %v4244_v46 = vpop.eup %4243 }
 0x767   :  { %v2927_v58 = vadd.f32 1.0, %v4244_v46  ;;  %v4246_v60 = vpop.eup %4245 }
 0x768   :  { %v4248_v16 = vpop.eup %4247  ;;  %v2928_v20 = vadd.f32 1.0, %v4246_v60 }
 0x769   :  { %4257 = vrcp.f32 %v2927_v58  ;;  %v2930_v19 = vadd.f32 1.0, %v4248_v16  ;;  %v4250_v21 = vpop.eup %4249 }
 0x76a   :  { %4259 = vtanh.f32 %v3846_v63  ;;  %v2931_v32 = vadd.f32 1.0, %v4250_v21  ;;  %v4252_v23 = vpop.eup %4251 }
 0x76b   :  { %4261 = vrcp.f32 %v2928_v20  ;;  %v4254_v59 = vpop.eup %4253 }
 0x76c   :  { %4263 = vrcp.f32 %v2930_v19  ;;  %v4256_v1 = vpop.eup %4255  ;;  %v2929_v15 = vadd.f32 1.0, %v4254_v59 }
 0x76d   :  { %4265 = vrcp.f32 %v2931_v32  ;;  %v2932_v50 = vadd.f32 1.0, %v4256_v1 }
 0x76e   :  { %4267 = vrcp.f32 %v2929_v15 }
 0x773   :  { %v4258_v2 = vpop.eup %4257 }
 0x774   :  { %v4260_v3 = vpop.eup %4259  ;;  %v2949_v4 = vmul.f32 %v4258_v2, %v4252_v23 }
 0x775   :  { %v4262_v5 = vpop.eup %4261 }
 0x776   :  { %v4264_v11 = vpop.eup %4263  ;;  %v2947_v18 = vmul.f32 %v4262_v5, %v5013_v12 }
 0x777   :  { %v2950_v47 = vmul.f32 %v4264_v11, %v4260_v3  ;;  %v4266_v61 = vpop.eup %4265 }
 0x778   :  { %v5053_v48 = vadd.f32 %v2949_v4, %v2947_v18  ;;  %v2948_v6 = vmul.f32 %v4266_v61, %v5017_v49  ;;  %v4268_v51 = vpop.eup %4267 }
 0x77a   :  { %4269 = vtanh.f32 %v5053_v48  ;;  %v5057_v57 = vadd.f32 %v2950_v47, %v2948_v6 }
 0x77b   :  { %4271 = vrcp.f32 %v2932_v50 }
 0x77c   :  { %4273 = vtanh.f32 %v5057_v57 }
 0x784   :  { %v4270_v8 = vpop.eup %4269 }
 0x785   :  { %v4272_v62 = vpop.eup %4271  ;;  %v2955_v12 = vmul.f32 %v4270_v8, %v4268_v51 }
 0x786   :  { %v4274_v9 = vpop.eup %4273 }
 0x787   :  { %v2956_v10 = vmul.f32 %v4274_v9, %v4272_v62 }
 0x789   :  { %v2957_v13 = vpack.c.bf16 %v2956_v10, %v2955_v12 }
 0x78b   :  { %3781 = vst [vmem:[#allocation6 + $0x30] sm:$0xff] %v2957_v13   ;;  %3204 = vmatmul.mubr.bf16.vlgmr.msra.gmra.mrb[28].mxu0 %v2957_v13  ;;  %3247 = vmatmul.mubr.bf16.vlgmr.msra.gmra.mrb[28].mxu1 %v2957_v13 }
 0x85e   :  { %v3205_v14 = vpop.f32.mrb[28].mxu0  ;;  %v3248_v49 = vpop.f32.mrb[28].mxu1 }
 0x85f   :  { %v3815_v17 = vadd.f32 %v3205_v14, %v4680_v53  ;;  %v3207_v52 = vpop.f32.mrb[29].mxu0  ;;  %v3250_v0 = vpop.f32.mrb[29].mxu1  ;;  %v3847_v33 = vadd.f32 %v3248_v49, %v4687_v7 }
 0x860   :  { %v3816_v55 = vadd.f32 %v3207_v52, %v4682_v54  ;;  %v3209_v44 = vpop.f32.mrb[30].mxu0  ;;  %v3252_v56 = vpop.f32.mrb[30].mxu1  ;;  %v3848_v35 = vadd.f32 %v3250_v0, %v4690_v40 }
 0x861   :  { %v3723_v24 = vmul.f32 -1.442695, %v3815_v17  ;;  %v3817_v25 = vadd.f32 %v3209_v44, %v4680_v53  ;;  %v3211_v26 = vpop.f32.mrb[31].mxu0  ;;  %v3254_v27 = vpop.f32.mrb[31].mxu1  ;;  %v3849_v34 = vadd.f32 %v3252_v56, %v4687_v7  ;;  %v3725_v36 = vmul.f32 -1.442695, %v3847_v33 }
 0x862   :  { %v3724_v28 = vmul.f32 -1.442695, %v3816_v55  ;;  %v3818_v29 = vadd.f32 %v3211_v26, %v4682_v54  ;;  %v3850_v38 = vadd.f32 %v3254_v27, %v4690_v40 }
 0x863   :  { %4275 = vpow2.f32 %v3723_v24  ;;  %v3726_v30 = vmul.f32 -1.442695, %v3817_v25  ;;  %v3728_v37 = vmul.f32 -1.442695, %v3849_v34 }
 0x864   :  { %v3727_v31 = vmul.f32 -1.442695, %v3818_v29  ;;  %4277 = vpow2.f32 %v3724_v28 }
 0x865   :  { %4279 = vpow2.f32 %v3726_v30 }
 0x866   :  { %4281 = vpow2.f32 %v3727_v31 }
 0x867   :  { %4283 = vtanh.f32 %v3848_v35 }
 0x868   :  { %4285 = vpow2.f32 %v3725_v36 }
 0x869   :  { %4287 = vpow2.f32 %v3728_v37 }
 0x86d   :  { %v4276_v53 = vpop.eup %4275 }
 0x86e   :  { %v3283_v39 = vadd.f32 1.0, %v4276_v53  ;;  %v4278_v54 = vpop.eup %4277 }
 0x86f   :  { %v4280_v41 = vpop.eup %4279  ;;  %v3284_v22 = vadd.f32 1.0, %v4278_v54 }
 0x870   :  { %4289 = vrcp.f32 %v3283_v39  ;;  %v3286_v42 = vadd.f32 1.0, %v4280_v41  ;;  %v4282_v43 = vpop.eup %4281 }
 0x871   :  { %4291 = vtanh.f32 %v3850_v38  ;;  %v3287_v7 = vadd.f32 1.0, %v4282_v43  ;;  %v4284_v45 = vpop.eup %4283 }
 0x872   :  { %4293 = vrcp.f32 %v3284_v22  ;;  %v4286_v46 = vpop.eup %4285 }
 0x873   :  { %4295 = vrcp.f32 %v3286_v42  ;;  %v4288_v63 = vpop.eup %4287  ;;  %v3285_v20 = vadd.f32 1.0, %v4286_v46 }
 0x874   :  { %4297 = vrcp.f32 %v3287_v7  ;;  %v3288_v1 = vadd.f32 1.0, %v4288_v63 }
 0x875   :  { %4299 = vrcp.f32 %v3285_v20 }
 0x87a   :  { %v4290_v58 = vpop.eup %4289 }
 0x87b   :  { %v4292_v60 = vpop.eup %4291  ;;  %v3305_v40 = vmul.f32 %v4290_v58, %v4284_v45 }
 0x87c   :  { %v4294_v16 = vpop.eup %4293 }
 0x87d   :  { %v4296_v19 = vpop.eup %4295  ;;  %v3303_v21 = vmul.f32 %v4294_v16, %v5053_v48 }
 0x87e   :  { %v3306_v32 = vmul.f32 %v4296_v19, %v4292_v60  ;;  %v4298_v23 = vpop.eup %4297 }
 0x87f   :  { %v3307_v59 = vadd.f32 %v3305_v40, %v3303_v21  ;;  %v3304_v2 = vmul.f32 %v4298_v23, %v5057_v57  ;;  %v4300_v4 = vpop.eup %4299 }
 0x881   :  { %4301 = vtanh.f32 %v3307_v59  ;;  %3326 = vst [vmem:[#allocation9] sm:$0xff] %v3307_v59  ;;  %v3308_v3 = vadd.f32 %v3306_v32, %v3304_v2 }
 0x882   :  { %4303 = vrcp.f32 %v3288_v1 }
 0x883   :  { %4305 = vtanh.f32 %v3308_v3  ;;  %3327 = vst [vmem:[#allocation9 + $0x8] sm:$0xff] %v3308_v3 }
 0x88b   :  { %v4302_v5 = vpop.eup %4301 }
 0x88c   :  { %v3311_v11 = vmul.f32 %v4302_v5, %v4300_v4  ;;  %v4304_v15 = vpop.eup %4303 }
 0x88d   :  { %v4306_v18 = vpop.eup %4305 }
 0x88e   :  { %3324 = vst [vmem:[#allocation7] sm:$0xff] %v3311_v11  ;;  %v3312_v47 = vmul.f32 %v4306_v18, %v4304_v15 }
 0x890   :  { %v3785_v61 = vpack.c.bf16 %v3312_v47, %v3311_v11  ;;  %3325 = vst [vmem:[#allocation7 + $0x8] sm:$0xff] %v3312_v47 }
 0x891   :  { %4340 = shalt.err (!%p4337_p12)
}
 0x892   :  { %s4341_s10 = scalar_lea.hbm %s5127_s7, 256 }
 0x893   :  { %p4342_p13 = scmp.ne.s32.totalorder %s5127_s7, %s4341_s10  ;;  %p4345_p0 = scmp.lt.u32.totalorder %s4341_s10, %s5127_s7 }
 0x895   :  { %p4347_p1 = pnand %p4345_p0, %p4342_p13 }
 0x897   :  { %4350 = shalt.err (!%p4347_p1)
}
 0x898   :  { %s4408_s15 = smov 128   ;;  %s4409_s16 = smov 8   ;;  %3786 = vst [vmem:[#allocation6 + $0x38] sm:$0xff] %v3785_v61  }
 0x899   :  { %3351 = dma.vmem_to_hbm [thread:$0]  %s3346_s25, 256, %s5127_s7, [#allocation8], %s4408_s15, %s4408_s15, %s4409_s16  }
 0x89a   :  { %s4351_s19 = scalar_lea.vmem %s5070_s27, 256  ;;  %p4356_p3 = scmp.lt.s32.totalorder %s5070_s27, %s5070_s27 }
 0x89b   :  { %p4352_p2 = scmp.ne.s32.totalorder %s5070_s27, %s4351_s19  ;;  %p4357_p4 = scmp.lt.s32.totalorder %s4351_s19, %s4351_s19 }
 0x89d   :  { %p4358_p5 = por %p4357_p4, %p4356_p3 }
 0x89f   :  { %p4359_p6 = pnand %p4358_p5, %p4352_p2 }
 0x8a1   :  { %4362 = shalt.err (!%p4359_p6)
}
 0x8a2   :  { %s4363_s22 = scalar_lea.hbm %s5128_s8, 256 }
 0x8a3   :  { %p4364_p7 = scmp.ne.s32.totalorder %s5128_s8, %s4363_s22  ;;  %p4367_p8 = scmp.lt.u32.totalorder %s4363_s22, %s5128_s8 }
 0x8a5   :  { %p4369_p9 = pnand %p4367_p8, %p4364_p7 }
 0x8a7   :  { %4372 = shalt.err (!%p4369_p9)
}
 0x8a8   :  { %3363 = dma.vmem_to_hbm [thread:$0]  %s5070_s27, 256, %s5128_s8, [#allocation8], %s4408_s15, %s4408_s15, %s4409_s16  }
 0x8a9   :  { %s4373_s2 = scalar_lea.vmem %s5072_s28, 1024  ;;  %p4378_p11 = scmp.lt.s32.totalorder %s5072_s28, %s5072_s28 }
 0x8aa   :  { %p4374_p10 = scmp.ne.s32.totalorder %s5072_s28, %s4373_s2  ;;  %p4379_p12 = scmp.lt.s32.totalorder %s4373_s2, %s4373_s2 }
 0x8ac   :  { %p4380_p13 = por %p4379_p12, %p4378_p11 }
 0x8ae   :  { %p4381_p0 = pnand %p4380_p13, %p4374_p10 }
 0x8b0   :  { %4384 = shalt.err (!%p4381_p0)
}
 0x8b1   :  { %s4385_s26 = scalar_lea.hbm %s5126_s6, 1024 }
 0x8b2   :  { %p4386_p1 = scmp.ne.s32.totalorder %s5126_s6, %s4385_s26  ;;  %p4389_p2 = scmp.lt.u32.totalorder %s4385_s26, %s5126_s6 }
 0x8b4   :  { %p4391_p3 = pnand %p4389_p2, %p4386_p1 }
 0x8b6   :  { %4394 = shalt.err (!%p4391_p3)
}
 0x8b7   :  { %s4410_s8 = smov 64   ;;  %s4411_s27 = smov 4  }
 0x8b8   :  { %3339 = dma.vmem_to_hbm [thread:$0]  %s5072_s28, 1024, %s5126_s6, [#allocation5], %s4410_s8, %s4410_s8, %s4411_s27  }
 0x8b9   :  { %4397 = dma.done.wait [#allocation5], 1024  }
 0x8ba   :  { %4398 = vsyncadd [#allocation5], 4294966272 }
 0x8bb   :  { %4399 = dma.done.wait [#allocation8], 512  }
 0x8bc   :  { %4400 = vsyncadd [#allocation8], 4294966784 }
 0x8bd   :  { %3373 = vsyncpa [#allocation4], 1 }
 0x8be   :  { %3374 = vsyncpa [#allocation5], 1 }
 0x8bf   :  { %3375 = vsyncpa [#allocation8], 1 }

</bundles_post_ra>
